<compile_context>
chip_gen: v5e
topology: v5e:2x2
jax: 0.10.0
libtpu: 0.0.40
codegen_flags: <defaults>
</compile_context>

<pallas_src>
import functools

import jax
import jax.numpy as jnp
from jax.experimental import pallas as pl
from jax.experimental.pallas import tpu as pltpu


def _round_up(x, m):
    return ((x + m - 1) // m) * m


# ------------------------------ Pallas kernel -------------------------------

def all_embedding_kernel(tid_ref, cid_ref, tok_tab_ref, char_tab_ref,
                         w_ref, b_ref, out_ref, *, c_len, k_size, hid_dim):
    """Fused AllEmbedding forward for one tile of tokens.

    tid_ref:      (tile, 1)          int32 token ids
    cid_ref:      (tile*c_len, 1)    int32 char ids (token-major: row = b*c_len + t)
    tok_tab_ref:  (Vt, Dt)           f32 token embedding table   (VMEM-resident)
    char_tab_ref: (Vc, Dc)           f32 char embedding table    (VMEM-resident)
    w_ref:        (K*Dc, H)          f32 conv weights, tap-major rows
    b_ref:        (1, H)             f32 conv bias
    out_ref:      (tile, Dt + H)     f32 [token_emb | char_cnn_feature]  (fused concat)
    """
    tile = tid_ref.shape[0]
    n2 = cid_ref.shape[0]                  # tile * c_len
    l_out = c_len - k_size + 1             # valid conv positions

    # --- token embedding: exact f32 one-hot @ table on the MXU ---------------
    # TODO(synk): for very large vocabularies a DMA/gather path would beat the
    # one-hot matmul; fine for the small tables here.
    tok_tab = tok_tab_ref[...]                                        # (Vt, Dt)
    vt = tok_tab.shape[0]
    t_ids = tid_ref[...]                                              # (tile, 1)
    t_oh = (jax.lax.broadcasted_iota(jnp.int32, (tile, vt), 1)
            == t_ids).astype(jnp.float32)
    tok_emb = jnp.dot(t_oh, tok_tab, preferred_element_type=jnp.float32)

    # --- char embedding (fused, never written to HBM) ------------------------
    char_tab = char_tab_ref[...]                                      # (Vc, Dc)
    vc = char_tab.shape[0]
    c_ids = cid_ref[...]                                              # (n2, 1)
    c_oh = (jax.lax.broadcasted_iota(jnp.int32, (n2, vc), 1)
            == c_ids).astype(jnp.float32)
    c_emb = jnp.dot(c_oh, char_tab, preferred_element_type=jnp.float32)  # (n2, Dc)

    # --- char CNN: fold the K taps into a single K*Dc MXU contraction --------
    # Row r = b*c_len + t holds char position t of token b; tap k needs row r+k.
    # pltpu.roll follows jnp.roll semantics, so shift = n2-k (== -k mod n2) puts
    # input row (r+k) mod n2 at output row r. Every operand stays full-tile and
    # (8,128)-aligned; the wrapped / cross-token rows only land on positions
    # t >= l_out, which are masked out of the max-pool below.
    taps = [c_emb]
    for k in range(1, k_size):
        taps.append(pltpu.roll(c_emb, shift=n2 - k, axis=0))
    x_cat = jnp.concatenate(taps, axis=-1)                            # (n2, K*Dc)
    conv = jnp.dot(x_cat, w_ref[...], preferred_element_type=jnp.float32)  # (n2, H)

    # --- masked max-over-time, then bias + ReLU (monotone, so order swaps) ---
    conv3 = conv.reshape(tile, c_len, hid_dim)
    t_pos = jax.lax.broadcasted_iota(jnp.int32, (tile, c_len, 1), 1)
    conv3 = jnp.where(t_pos < l_out, conv3, jnp.float32(-1e30))
    char_feat = jnp.max(conv3, axis=1)                                # (tile, H)
    char_feat = jnp.maximum(char_feat + b_ref[...], 0.0)              # == max_t relu(x_t + b)

    # --- fused concat: one block store of the full (tile, Dt+H) slab ---------
    out_ref[...] = jnp.concatenate([tok_emb, char_feat], axis=-1)


# ------------------------------ Module glue ---------------------------------

class Config:
    maxlen = 8
    vocab_file = None
    cased = True
    vocab_size = 64            # token embedding rows
    token_emb_dim = 32
    char_emb_dim = 32          # -> _config.hidden_dim for the char CNN
    lm_emb_dim = 0             # PreEmbeddedLM branch disabled
    char_encoder = "cnn"
    dropout = 0.0              # eval mode -> identity
    device = None


def init_params(key, cfg):
    """Deterministic synthetic parameter init (mirrors init_embedding bounds)."""
    k1, k2, k3, k4 = jax.random.split(key, 4)
    tok_b = (3.0 / cfg.token_emb_dim) ** 0.5
    token_table = jax.random.uniform(
        k1, (cfg.vocab_size, cfg.token_emb_dim), jnp.float32, -tok_b, tok_b)
    ch_b = (3.0 / cfg.char_emb_dim) ** 0.5
    char_table = jax.random.uniform(
        k2, (1000, cfg.char_emb_dim), jnp.float32, -ch_b, ch_b)   # nn.Embedding(1000, char_emb_dim)
    # CNNEncoding(Ks=[3]): Conv1d(char_emb_dim -> hidden_dim=char_emb_dim, K=3)
    fan_in = 3 * cfg.char_emb_dim
    w_b = (1.0 / fan_in) ** 0.5
    conv_w = jax.random.uniform(
        k3, (3, cfg.char_emb_dim, cfg.char_emb_dim), jnp.float32, -w_b, w_b)
    conv_b = jax.random.uniform(
        k4, (1, cfg.char_emb_dim), jnp.float32, -w_b, w_b)
    return dict(token_table=token_table, char_table=char_table,
                conv_w=conv_w, conv_b=conv_b)


def all_embedding_forward(params, t_indexs, c_indexs, *, cfg, tile_bt=128):
    """Forward of AllEmbedding (returns embeddings, masks).

    t_indexs: (bs, T) int32 token ids      (string tokenization is done offline)
    c_indexs: (bs, T, C) int32 char ids
    """
    bs, t_len = t_indexs.shape
    c_len = c_indexs.shape[-1]
    bt = bs * t_len
    k_size, d_char, h = params["conv_w"].shape
    d_tok = params["token_table"].shape[1]

    # Masking(t_indexs, mask_val=0)
    masks = t_indexs != 0                                    # (bs, T) bool
    # NOTE: the reference also computes c_lens = c_masks.sum(-1) + (1 - masks);
    # CharCNNEncoding ignores it, so it is omitted (dead code).

    # Pad the flattened token axis to a multiple of the tile.
    tile = min(tile_bt, _round_up(bt, 8))
    bt_pad = _round_up(bt, tile)
    t_flat = t_indexs.reshape(bt).astype(jnp.int32)
    c_flat = c_indexs.reshape(bt, c_len).astype(jnp.int32)
    if bt_pad != bt:
        t_flat = jnp.pad(t_flat, (0, bt_pad - bt))
        c_flat = jnp.pad(c_flat, ((0, bt_pad - bt), (0, 0)))
    t_ids = t_flat.reshape(bt_pad, 1)
    c_ids = c_flat.reshape(bt_pad * c_len, 1)

    w_flat = params["conv_w"].reshape(k_size * d_char, h)    # (K*D, H), tap-major rows

    fused = pl.pallas_call(
        functools.partial(all_embedding_kernel,
                          c_len=c_len, k_size=k_size, hid_dim=h),
        out_shape=jax.ShapeDtypeStruct((bt_pad, d_tok + h), jnp.float32),
        grid_spec=pltpu.PrefetchScalarGridSpec(
            num_scalar_prefetch=0,
            grid=(bt_pad // tile,),
            in_specs=[
                pl.BlockSpec((tile, 1), lambda i: (i, 0)),                 # token ids
                pl.BlockSpec((tile * c_len, 1), lambda i: (i, 0)),         # char ids
                pl.BlockSpec(params["token_table"].shape, lambda i: (0, 0)),
                pl.BlockSpec(params["char_table"].shape, lambda i: (0, 0)),
                pl.BlockSpec((k_size * d_char, h), lambda i: (0, 0)),
                pl.BlockSpec((1, h), lambda i: (0, 0)),
            ],
            out_specs=pl.BlockSpec((tile, d_tok + h), lambda i: (i, 0)),
        ),
        compiler_params=pltpu.CompilerParams(
            dimension_semantics=("parallel",),
            vmem_limit_bytes=32 * 1024 * 1024,
        ),
    )(t_ids, c_ids, params["token_table"], params["char_table"], w_flat,
      params["conv_b"])

    embs = fused[:bt].reshape(bs, t_len, d_tok + h)
    # dropout(p=0, eval) is identity.
    # TODO(synk): PreEmbeddedLM (lm_emb_dim > 0) needs an external pretrained LM; omitted.
    # TODO(synk): CharLSTMEncoding path (char_encoder != "cnn") not implemented.
    return embs, masks


# ------------------------------ Pure-JAX reference --------------------------

def all_embedding_reference(params, t_indexs, c_indexs):
    """Straight-line JAX reference (gather + explicit valid conv + relu + max)."""
    tok_emb = jnp.take(params["token_table"], t_indexs, axis=0)        # (bs,T,Dt)
    masks = t_indexs != 0
    c_emb = jnp.take(params["char_table"], c_indexs, axis=0)           # (bs,T,C,Dc)
    k_size, _, h = params["conv_w"].shape
    c_len = c_indexs.shape[-1]
    l_out = c_len - k_size + 1
    taps = jnp.stack([c_emb[:, :, k:k + l_out, :] for k in range(k_size)],
                     axis=-2)                                          # (bs,T,l_out,K,D)
    conv = jnp.einsum("btlkd,kdh->btlh", taps, params["conv_w"]) + params["conv_b"][0]
    char_feat = jnp.max(jnp.maximum(conv, 0.0), axis=2)                # (bs,T,H)
    return jnp.concatenate([tok_emb, char_feat], axis=-1), masks


if __name__ == "__main__":
    cfg = Config()
    key = jax.random.PRNGKey(0)
    pkey, tkey, ckey = jax.random.split(key, 3)
    params = init_params(pkey, cfg)

    bs, t_len, c_len = 2, 8, 16
    t_indexs = jax.random.randint(tkey, (bs, t_len), 0, cfg.vocab_size, jnp.int32)
    c_indexs = jax.random.randint(ckey, (bs, t_len, c_len), 0, 1000, jnp.int32)

    fwd = jax.jit(functools.partial(all_embedding_forward, cfg=cfg))
    embs, masks = fwd(params, t_indexs, c_indexs)
    jax.block_until_ready((embs, masks))

    assert embs.shape == (bs, t_len, cfg.token_emb_dim + cfg.char_emb_dim)
    assert embs.dtype == jnp.float32
    assert masks.shape == (bs, t_len)
    assert bool(jnp.all(jnp.isfinite(embs)))

    # Correctness check against the pure-JAX reference.
    ref_embs, ref_masks = all_embedding_reference(params, t_indexs, c_indexs)
    assert bool(jnp.array_equal(masks, ref_masks))
    assert bool(jnp.allclose(embs, ref_embs, atol=1e-4, rtol=1e-4)), (
        float(jnp.max(jnp.abs(embs - ref_embs))))
    print("KERNEL_OK")
</pallas_src>

<mosaic_0001>
module attributes {stable_mosaic.version = 11 : i64} {
  func.func @all_embedding_kernel(%arg0: i32, %arg1: memref<16x1xi32, #tpu.memory_space<vmem>>, %arg2: memref<256x1xi32, #tpu.memory_space<vmem>>, %arg3: memref<64x32xf32, #tpu.memory_space<vmem>>, %arg4: memref<1000x32xf32, #tpu.memory_space<vmem>>, %arg5: memref<96x32xf32, #tpu.memory_space<vmem>>, %arg6: memref<1x32xf32, #tpu.memory_space<vmem>>, %arg7: memref<16x64xf32, #tpu.memory_space<vmem>>) attributes {dimension_semantics = [#tpu.dimension_semantics<parallel>], iteration_bounds = array<i64: 1>, scalar_prefetch = 0 : i64, scratch_operands = 0 : i64, tpu.core_type = #tpu.core_type<tc>, window_params = [{transform_indices = @transform_0, window_bounds = array<i64: 16, 1>}, {transform_indices = @transform_1, window_bounds = array<i64: 256, 1>}, {pipeline_mode = #tpu.pipeline_mode<synchronous>, transform_indices = @transform_2, window_bounds = array<i64: 64, 32>}, {pipeline_mode = #tpu.pipeline_mode<synchronous>, transform_indices = @transform_3, window_bounds = array<i64: 1000, 32>}, {pipeline_mode = #tpu.pipeline_mode<synchronous>, transform_indices = @transform_4, window_bounds = array<i64: 96, 32>}, {pipeline_mode = #tpu.pipeline_mode<synchronous>, transform_indices = @transform_5, window_bounds = array<i64: 1, 32>}, {transform_indices = @transform_6, window_bounds = array<i64: 16, 64>}]} {
    %c0 = arith.constant 0 : index
    %c0_0 = arith.constant 0 : index
    %0 = vector.load %arg3[%c0, %c0_0] : memref<64x32xf32, #tpu.memory_space<vmem>>, vector<64x32xf32>
    %c0_1 = arith.constant 0 : index
    %c0_2 = arith.constant 0 : index
    %1 = vector.load %arg1[%c0_1, %c0_2] : memref<16x1xi32, #tpu.memory_space<vmem>>, vector<16x1xi32>
    %2 = tpu.iota {dimensions = array<i32: 1>} : vector<16x64xi32>
    %3 = vector.broadcast %1 : vector<16x1xi32> to vector<16x64xi32>
    %4 = arith.cmpi eq, %2, %3 : vector<16x64xi32>
    %5 = arith.extui %4 : vector<16x64xi1> to vector<16x64xi32>
    %6 = arith.sitofp %5 : vector<16x64xi32> to vector<16x64xf32>
    %cst = arith.constant dense<0.000000e+00> : vector<16x32xf32>
    %7 = tpu.matmul %6, %0, %cst {dimension_numbers = #tpu.dot_dimension_numbers<[1], [0], [0], [1], [0, 0, 1, 1], [], []>} : vector<16x64xf32>, vector<64x32xf32>, vector<16x32xf32> -> vector<16x32xf32>
    %c0_3 = arith.constant 0 : index
    %c0_4 = arith.constant 0 : index
    %8 = vector.load %arg4[%c0_3, %c0_4] : memref<1000x32xf32, #tpu.memory_space<vmem>>, vector<1000x32xf32>
    %c0_5 = arith.constant 0 : index
    %c0_6 = arith.constant 0 : index
    %9 = vector.load %arg2[%c0_5, %c0_6] : memref<256x1xi32, #tpu.memory_space<vmem>>, vector<256x1xi32>
    %10 = tpu.iota {dimensions = array<i32: 1>} : vector<256x1000xi32>
    %11 = vector.broadcast %9 : vector<256x1xi32> to vector<256x1000xi32>
    %12 = arith.cmpi eq, %10, %11 : vector<256x1000xi32>
    %13 = arith.extui %12 : vector<256x1000xi1> to vector<256x1000xi32>
    %14 = arith.sitofp %13 : vector<256x1000xi32> to vector<256x1000xf32>
    %cst_7 = arith.constant dense<0.000000e+00> : vector<256x32xf32>
    %15 = tpu.matmul %14, %8, %cst_7 {dimension_numbers = #tpu.dot_dimension_numbers<[1], [0], [0], [1], [0, 0, 1, 1], [], []>} : vector<256x1000xf32>, vector<1000x32xf32>, vector<256x32xf32> -> vector<256x32xf32>
    %c255_i32 = arith.constant 255 : i32
    %16 = tpu.dynamic_rotate %15 by %c255_i32 dim 0 : vector<256x32xf32>, i32 -> vector<256x32xf32>
    %c254_i32 = arith.constant 254 : i32
    %17 = tpu.dynamic_rotate %15 by %c254_i32 dim 0 : vector<256x32xf32>, i32 -> vector<256x32xf32>
    %18 = tpu.concatenate %15, %16, %17 in 1 : vector<256x32xf32>, vector<256x32xf32>, vector<256x32xf32> -> vector<256x96xf32>
    %c0_8 = arith.constant 0 : index
    %c0_9 = arith.constant 0 : index
    %19 = vector.load %arg5[%c0_8, %c0_9] : memref<96x32xf32, #tpu.memory_space<vmem>>, vector<96x32xf32>
    %cst_10 = arith.constant dense<0.000000e+00> : vector<256x32xf32>
    %20 = tpu.matmul %18, %19, %cst_10 {dimension_numbers = #tpu.dot_dimension_numbers<[1], [0], [0], [1], [0, 0, 1, 1], [], []>} : vector<256x96xf32>, vector<96x32xf32>, vector<256x32xf32> -> vector<256x32xf32>
    %21 = vector.shape_cast %20 : vector<256x32xf32> to vector<16x16x32xf32>
    %22 = tpu.iota {dimensions = array<i32: 1>} : vector<16x16x1xi32>
    %c14_i32 = arith.constant 14 : i32
    %23 = vector.broadcast %c14_i32 : i32 to vector<16x16x1xi32>
    %24 = arith.cmpi slt, %22, %23 : vector<16x16x1xi32>
    %cst_11 = arith.constant -1.000000e+30 : f32
    %25 = vector.shape_cast %24 : vector<16x16x1xi1> to vector<16x16x1xi1>
    %26 = vector.broadcast %25 : vector<16x16x1xi1> to vector<16x16x32xi1>
    %27 = vector.broadcast %cst_11 : f32 to vector<16x16x32xf32>
    %28 = arith.select %26, %21, %27 : vector<16x16x32xi1>, vector<16x16x32xf32>
    %cst_12 = arith.constant dense<0xFF800000> : vector<16x32xf32>
    %29 = vector.multi_reduction <maximumf>, %28, %cst_12 [1] : vector<16x16x32xf32> to vector<16x32xf32>
    %c0_13 = arith.constant 0 : index
    %c0_14 = arith.constant 0 : index
    %30 = vector.load %arg6[%c0_13, %c0_14] : memref<1x32xf32, #tpu.memory_space<vmem>>, vector<1x32xf32>
    %31 = vector.broadcast %30 : vector<1x32xf32> to vector<16x32xf32>
    %32 = arith.addf %29, %31 : vector<16x32xf32>
    %cst_15 = arith.constant 0.000000e+00 : f32
    %33 = vector.broadcast %cst_15 : f32 to vector<16x32xf32>
    %34 = arith.maximumf %32, %33 : vector<16x32xf32>
    %35 = tpu.concatenate %7, %34 in 1 : vector<16x32xf32>, vector<16x32xf32> -> vector<16x64xf32>
    %c0_16 = arith.constant 0 : index
    %c0_17 = arith.constant 0 : index
    %36 = vector.load %arg7[%c0_16, %c0_17] : memref<16x64xf32, #tpu.memory_space<vmem>>, vector<16x64xf32>
    tpu.vector_store %arg7[%c0_16, %c0_17], %35 {strides = array<i32>} : memref<16x64xf32, #tpu.memory_space<vmem>>, vector<16x64xf32>,
    return
  }
  func.func @transform_0(%arg0: i32) -> (i32, i32) {
    %c0_i32 = arith.constant 0 : i32
    %c0_i32_0 = arith.constant 0 : i32
    return %arg0, %c0_i32 : i32, i32
  }
  func.func @transform_1(%arg0: i32) -> (i32, i32) {
    %c0_i32 = arith.constant 0 : i32
    %c0_i32_0 = arith.constant 0 : i32
    return %arg0, %c0_i32 : i32, i32
  }
  func.func @transform_2(%arg0: i32) -> (i32, i32) {
    %c0_i32 = arith.constant 0 : i32
    %c0_i32_0 = arith.constant 0 : i32
    %c0_i32_1 = arith.constant 0 : i32
    return %c0_i32, %c0_i32_0 : i32, i32
  }
  func.func @transform_3(%arg0: i32) -> (i32, i32) {
    %c0_i32 = arith.constant 0 : i32
    %c0_i32_0 = arith.constant 0 : i32
    %c0_i32_1 = arith.constant 0 : i32
    return %c0_i32, %c0_i32_0 : i32, i32
  }
  func.func @transform_4(%arg0: i32) -> (i32, i32) {
    %c0_i32 = arith.constant 0 : i32
    %c0_i32_0 = arith.constant 0 : i32
    %c0_i32_1 = arith.constant 0 : i32
    return %c0_i32, %c0_i32_0 : i32, i32
  }
  func.func @transform_5(%arg0: i32) -> (i32, i32) {
    %c0_i32 = arith.constant 0 : i32
    %c0_i32_0 = arith.constant 0 : i32
    %c0_i32_1 = arith.constant 0 : i32
    return %c0_i32, %c0_i32_0 : i32, i32
  }
  func.func @transform_6(%arg0: i32) -> (i32, i32) {
    %c0_i32 = arith.constant 0 : i32
    %c0_i32_0 = arith.constant 0 : i32
    return %arg0, %c0_i32 : i32, i32
  }
}

</mosaic_0001>

<bundles_post_ra>
// kernel: all_embedding_forward.1
= control target key start
LH: loop header
LB: loop body
LE: loop exit
PB: predicated region body
PF: predicated region fallthrough
CT: control target
= control target key end

     0   :  { %v3714_v3 = vmov 0   ;;  %s6100_s0 = inlined_call_operand.vmem [shape: s32[16,1], index: 0, kind: input, shape index: {}]   ;;  %s6101_s1 = inlined_call_operand.vmem [shape: s32[256,1], index: 1, kind: input, shape index: {}]   ;;  %s6102_s2 = inlined_call_operand.vmem [shape: f32[64,32], index: 2, kind: input, shape index: {}]   ;;  %s6103_s3 = inlined_call_operand.vmem [shape: f32[1000,32], index: 3, kind: input, shape index: {}]   ;;  %s6104_s4 = inlined_call_operand.vmem [shape: f32[96,32], index: 4, kind: input, shape index: {}]   ;;  %s6105_s5 = inlined_call_operand.vmem [shape: f32[1,32], index: 5, kind: input, shape index: {}]   ;;  %s6106_s6 = inlined_call_operand.hbm [shape: f32[16,64], index: 6, kind: output, shape index: {}]  }
   0x1   :  { %v219_v0 = vld [vmem:[%s6101_s1 + $0x80] sm:$0xff]  ;;  %v218_v1 = vld [vmem:[%s6101_s1 + $0x78] sm:$0xff]  ;;  %v217_v2 = vld [vmem:[%s6101_s1 + $0x70] sm:$0xff]  ;;  %3686 = vset.pattern.permute.xlu2 %v3714_v3  ;;  %3685 = vset.pattern.permute.xlu1 %v3714_v3 }
   0x2   :  { %3684 = vset.pattern.permute.xlu0 %v3714_v3  ;;  %291 = vperm.xlu2 %3686, %v219_v0  }
   0x3   :  { %288 = vperm.xlu1 %3685, %v218_v1   ;;  %285 = vperm.xlu0 %3684, %v217_v2  }
   0x4   :  { %11 = vsyncpa [#allocation3], 0  ;;  %v228_v4 = vld [vmem:[%s6101_s1 + $0xc8] sm:$0xff]  ;;  %v227_v5 = vld [vmem:[%s6101_s1 + $0xc0] sm:$0xff]  ;;  %vm48_vm4 = vcmask 523264   ;;  %s3718_s28 = smov 32  }
   0x5   :  { %v226_v6 = vld [vmem:[%s6101_s1 + $0xb8] sm:$0xff]  ;;  %v229_v7 = vld [vmem:[%s6101_s1 + $0xd0] sm:$0xff]  ;;  %v220_v8 = vld [vmem:[%s6101_s1 + $0x88] sm:$0xff]  ;;  %s3720_s15 = smov 128   ;;  %s3721_s16 = smov 8  }
   0x6   :  { %v32_v9 = vld [vmem:[%s6100_s0] sm:$0xff]  ;;  %v230_v10 = vld [vmem:[%s6101_s1 + $0xd8] sm:$0xff]  ;;  %v221_v11 = vld [vmem:[%s6101_s1 + $0x90] sm:$0xff] }
   0x7   :  { %v33_v12 = vld [vmem:[%s6100_s0 + $0x8] sm:$0xff]  ;;  %v231_v13 = vld [vmem:[%s6101_s1 + $0xe0] sm:$0xff]  ;;  %v222_v14 = vld [vmem:[%s6101_s1 + $0x98] sm:$0xff]  ;;  %s3717_s0 = smov 64  }
   0x8   :  { %v203_v15 = vld [vmem:[%s6101_s1] sm:$0xff]  ;;  %v232_v16 = vld [vmem:[%s6101_s1 + $0xe8] sm:$0xff]  ;;  %v233_v19 = vld [vmem:[%s6101_s1 + $0xf0] sm:$0xff] }
   0x9   :  { %v223_v17 = vld [vmem:[%s6101_s1 + $0xa0] sm:$0xff]  ;;  %v204_v18 = vld [vmem:[%s6101_s1 + $0x8] sm:$0xff]  ;;  %v205_v21 = vld [vmem:[%s6101_s1 + $0x10] sm:$0xff] }
   0xa   :  { %318 = vperm.xlu2 %3686, %v228_v4   ;;  %v224_v20 = vld [vmem:[%s6101_s1 + $0xa8] sm:$0xff]  ;;  %v3823_v22 = vld [vmem:[%s6103_s3 + $0x78] sm:$0xff]  ;;  %v3828_v23 = vld [vmem:[%s6103_s3 + $0x70] sm:$0xff] }
   0xb   :  { %315 = vperm.xlu1 %3685, %v227_v5   ;;  %312 = vperm.xlu0 %3684, %v226_v6   ;;  %v234_v24 = vld [vmem:[%s6101_s1 + $0xf8] sm:$0xff]  ;;  %v225_v25 = vld [vmem:[%s6101_s1 + $0xb0] sm:$0xff]  ;;  %v3848_v27 = vld [vmem:[%s6103_s3 + $0x68] sm:$0xff]  ;;  %v6107_v5 = vlaneseq }
   0xc   :  { %3629 = vmatpush.msra.mxu2 %v3823_v22  ;;  %3630 = vmatpush.msra.mxu3 %v3823_v22  ;;  %v206_v26 = vld [vmem:[%s6101_s1 + $0x18] sm:$0xff]  ;;  %v3854_v28 = vld [vmem:[%s6103_s3 + $0x60] sm:$0xff]  ;;  %v209_v30 = vld [vmem:[%s6101_s1 + $0x30] sm:$0xff] }
   0xd   :  { %3628 = vmatpush.msra.mxu1 %v3823_v22  ;;  %v3860_v29 = vld [vmem:[%s6103_s3 + $0x58] sm:$0xff]  ;;  %v3871_v31 = vld [vmem:[%s6103_s3 + $0x50] sm:$0xff]  ;;  %v207_v32 = vld [vmem:[%s6101_s1 + $0x20] sm:$0xff] }
   0xe   :  { %3632 = vmatpush.msra.mxu2 %v3828_v23  ;;  %3633 = vmatpush.msra.mxu3 %v3828_v23  ;;  %v208_v33 = vld [vmem:[%s6101_s1 + $0x28] sm:$0xff]  ;;  %v3893_v35 = vld [vmem:[%s6103_s3 + $0x40] sm:$0xff]  ;;  %v31_v36 = vld [vmem:[%s6102_s2 + $0x38] sm:$0xff] }
   0xf   :  { %3631 = vmatpush.msra.mxu1 %v3828_v23  ;;  %v3885_v34 = vld [vmem:[%s6103_s3 + $0x48] sm:$0xff]  ;;  %v3902_v37 = vld [vmem:[%s6103_s3 + $0x38] sm:$0xff]  ;;  %63 = vmatpush.msra.mxu0 %v31_v36  ;;  %v30_v38 = vld [vmem:[%s6102_s2 + $0x30] sm:$0xff] }
  0x10   :  { %3635 = vmatpush.msra.mxu2 %v3848_v27  ;;  %3636 = vmatpush.msra.mxu3 %v3848_v27  ;;  %v212_v39 = vld [vmem:[%s6101_s1 + $0x48] sm:$0xff]  ;;  %v3916_v40 = vld [vmem:[%s6103_s3 + $0x30] sm:$0xff]  ;;  %v210_v41 = vld [vmem:[%s6101_s1 + $0x38] sm:$0xff] }
  0x11   :  { %3634 = vmatpush.msra.mxu1 %v3848_v27  ;;  %64 = vmatpush.msra.mxu0 %v30_v38  ;;  %v211_v42 = vld [vmem:[%s6101_s1 + $0x40] sm:$0xff]  ;;  %v3930_v43 = vld [vmem:[%s6103_s3 + $0x28] sm:$0xff]  ;;  %v3950_v47 = vld [vmem:[%s6103_s3 + $0x18] sm:$0xff] }
  0x12   :  { %321 = vperm.xlu2 %3686, %v229_v7   ;;  %3638 = vmatpush.msra.mxu2 %v3854_v28  ;;  %v29_v44 = vld [vmem:[%s6102_s2 + $0x28] sm:$0xff]  ;;  %v3941_v45 = vld [vmem:[%s6103_s3 + $0x20] sm:$0xff]  ;;  %v27_v48 = vld [vmem:[%s6102_s2 + $0x18] sm:$0xff] }
  0x13   :  { %294 = vperm.xlu0 %3684, %v220_v8   ;;  %37 = vperm.xlu1 %3685, %v32_v9   ;;  %v28_v46 = vld [vmem:[%s6102_s2 + $0x20] sm:$0xff]  ;;  %v3964_v50 = vld [vmem:[%s6103_s3 + $0x10] sm:$0xff]  ;;  %v214_v52 = vld [vmem:[%s6101_s1 + $0x58] sm:$0xff]  ;;  %v4063_v9 = vand.u32 127, %v6107_v5 }
  0x14   :  { %3639 = vmatpush.msra.mxu3 %v3854_v28  ;;  %3637 = vmatpush.msra.mxu1 %v3854_v28  ;;  %v215_v49 = vld [vmem:[%s6101_s1 + $0x60] sm:$0xff]  ;;  %v213_v51 = vld [vmem:[%s6101_s1 + $0x50] sm:$0xff]  ;;  %v3981_v54 = vld [vmem:[%s6103_s3 + $0x8] sm:$0xff] }
  0x15   :  { %3641 = vmatpush.msra.mxu2 %v3860_v29  ;;  %65 = vmatpush.msra.mxu0 %v29_v44  ;;  %v26_v53 = vld [vmem:[%s6102_s2 + $0x10] sm:$0xff]  ;;  %v25_v55 = vld [vmem:[%s6102_s2 + $0x8] sm:$0xff]  ;;  %v3993_v56 = vld [vmem:[%s6103_s3] sm:$0xff] }
  0x16   :  { %3642 = vmatpush.msra.mxu3 %v3860_v29  ;;  %3640 = vmatpush.msra.mxu1 %v3860_v29  ;;  %v24_v57 = vld [vmem:[%s6102_s2] sm:$0xff]  ;;  %v109_v58 = vld [vmem:[%s6103_s3 + $0xf8] sm:$0xff]  ;;  %v216_v59 = vld [vmem:[%s6101_s1 + $0x68] sm:$0xff]  ;;  %s3068_s2 = sshll.u32 %s6106_s6, 4  ;;  %s3069_s2 = int_to_ptr.hbm [resolvable:$true] %s3068_s2 }
  0x17   :  { %3644 = vmatpush.msra.mxu2 %v3871_v31  ;;  %66 = vmatpush.msra.mxu0 %v28_v46  ;;  %v125_v60 = vld [vmem:[%s6103_s3 + $0x178] sm:$0xff]  ;;  %v108_v61 = vld [vmem:[%s6103_s3 + $0xf0] sm:$0xff]  ;;  %v107_v63 = vld [vmem:[%s6103_s3 + $0xe8] sm:$0xff] }
  0x18   :  { %3645 = vmatpush.msra.mxu3 %v3871_v31  ;;  %3643 = vmatpush.msra.mxu1 %v3871_v31  ;;  %v124_v62 = vld [vmem:[%s6103_s3 + $0x170] sm:$0xff]  ;;  %v123_v0 = vld [vmem:[%s6103_s3 + $0x168] sm:$0xff]  ;;  %v106_v1 = vld [vmem:[%s6103_s3 + $0xe0] sm:$0xff] }
  0x19   :  { %3647 = vmatpush.msra.mxu2 %v3885_v34  ;;  %67 = vmatpush.msra.mxu0 %v27_v48  ;;  %v122_v2 = vld [vmem:[%s6103_s3 + $0x160] sm:$0xff]  ;;  %v105_v4 = vld [vmem:[%s6103_s3 + $0xd8] sm:$0xff]  ;;  %v104_v7 = vld [vmem:[%s6103_s3 + $0xd0] sm:$0xff] }
  0x1a   :  { %324 = vperm.xlu2 %3686, %v230_v10   ;;  %3648 = vmatpush.msra.mxu3 %v3885_v34  ;;  %v121_v6 = vld [vmem:[%s6103_s3 + $0x158] sm:$0xff]  ;;  %v135_v48 = vld [vmem:[%s6103_s3 + $0x1c8] sm:$0xff] }
  0x1b   :  { %297 = vperm.xlu0 %3684, %v221_v11   ;;  %40 = vperm.xlu1 %3685, %v33_v12   ;;  %v120_v12 = vld [vmem:[%s6103_s3 + $0x150] sm:$0xff] }
  0x1c   :  { %3650 = vmatpush.msra.mxu2 %v3893_v35  ;;  %3646 = vmatpush.msra.mxu1 %v3885_v34 }
  0x1d   :  { %3651 = vmatpush.msra.mxu3 %v3893_v35  ;;  %68 = vmatpush.msra.mxu0 %v26_v53  ;;  %v133_v53 = vld [vmem:[%s6103_s3 + $0x1b8] sm:$0xff] }
  0x1e   :  { %3653 = vmatpush.msra.mxu2 %v3902_v37  ;;  %3649 = vmatpush.msra.mxu1 %v3893_v35 }
  0x1f   :  { %3654 = vmatpush.msra.mxu3 %v3902_v37  ;;  %69 = vmatpush.msra.mxu0 %v25_v55 }
  0x20   :  { %3656 = vmatpush.msra.mxu2 %v3916_v40  ;;  %3652 = vmatpush.msra.mxu1 %v3902_v37 }
  0x21   :  { %3657 = vmatpush.msra.mxu3 %v3916_v40  ;;  %70 = vmatpush.msra.mxu0 %v24_v57  ;;  %v94_v57 = vld [vmem:[%s6103_s3 + $0x80] sm:$0xff] }
  0x22   :  { %327 = vperm.xlu2 %3686, %v231_v13   ;;  %3659 = vmatpush.msra.mxu2 %v3930_v43  ;;  %v6110_v13 = vmov 1.0  }
  0x23   :  { %300 = vperm.xlu0 %3684, %v222_v14   ;;  %243 = vperm.xlu1 %3685, %v203_v15   ;;  %v103_v14 = vld [vmem:[%s6103_s3 + $0xc8] sm:$0xff] }
  0x24   :  { %3662 = vmatpush.msra.mxu2 %v3941_v45  ;;  %3655 = vmatpush.msra.mxu1 %v3916_v40  ;;  %v119_v15 = vld [vmem:[%s6103_s3 + $0x148] sm:$0xff] }
  0x25   :  { %3660 = vmatpush.msra.mxu3 %v3930_v43  ;;  %1203 = vmatpush.msrb.mxu0 %v3823_v22  ;;  %v117_v22 = vld [vmem:[%s6103_s3 + $0x138] sm:$0xff] }
  0x26   :  { %3665 = vmatpush.msra.mxu2 %v3950_v47  ;;  %3658 = vmatpush.msra.mxu1 %v3930_v43 }
  0x27   :  { %3663 = vmatpush.msra.mxu3 %v3941_v45  ;;  %1204 = vmatpush.msrb.mxu0 %v3828_v23 }
  0x28   :  { %3668 = vmatpush.msra.mxu2 %v3964_v50  ;;  %3661 = vmatpush.msra.mxu1 %v3941_v45 }
  0x29   :  { %3666 = vmatpush.msra.mxu3 %v3950_v47  ;;  %1205 = vmatpush.msrb.mxu0 %v3848_v27  ;;  %v6108_v27 = vmov 0.0  }
  0x2a   :  { %330 = vperm.xlu2 %3686, %v232_v16   ;;  %3671 = vmatpush.msra.mxu2 %v3981_v54  ;;  %v102_v16 = vld [vmem:[%s6103_s3 + $0xc0] sm:$0xff] }
  0x2b   :  { %303 = vperm.xlu0 %3684, %v223_v17   ;;  %246 = vperm.xlu1 %3685, %v204_v18  }
  0x2c   :  { %3674 = vmatpush.msra.mxu2 %v3993_v56  ;;  %3664 = vmatpush.msra.mxu1 %v3950_v47 }
  0x2d   :  { %3669 = vmatpush.msra.mxu3 %v3964_v50  ;;  %1206 = vmatpush.msrb.mxu0 %v3854_v28 }
  0x2e   :  { %1316 = vmatpush.msrb.mxu2 %v109_v58  ;;  %3667 = vmatpush.msra.mxu1 %v3964_v50  ;;  %v111_v58 = vld [vmem:[%s6103_s3 + $0x108] sm:$0xff] }
  0x2f   :  { %3672 = vmatpush.msra.mxu3 %v3981_v54  ;;  %1207 = vmatpush.msrb.mxu0 %v3860_v29 }
  0x30   :  { %3670 = vmatpush.msra.mxu1 %v3981_v54  ;;  %1317 = vmatpush.msrb.mxu2 %v108_v61  ;;  %v110_v61 = vld [vmem:[%s6103_s3 + $0x100] sm:$0xff] }
  0x31   :  { %3675 = vmatpush.msra.mxu3 %v3993_v56  ;;  %1208 = vmatpush.msrb.mxu0 %v3871_v31  ;;  %v116_v31 = vld [vmem:[%s6103_s3 + $0x130] sm:$0xff] }
  0x32   :  { %333 = vperm.xlu2 %3686, %v233_v19   ;;  %3673 = vmatpush.msra.mxu1 %v3993_v56 }
  0x33   :  { %306 = vperm.xlu0 %3684, %v224_v20   ;;  %249 = vperm.xlu1 %3685, %v205_v21   ;;  %v118_v20 = vld [vmem:[%s6103_s3 + $0x140] sm:$0xff]  ;;  %v101_v21 = vld [vmem:[%s6103_s3 + $0xb8] sm:$0xff] }
  0x34   :  { %1429 = vmatpush.msrb.mxu3 %v125_v60  ;;  %1209 = vmatpush.msrb.mxu0 %v3885_v34  ;;  %v139_v34 = vld [vmem:[%s6103_s3 + $0x1e8] sm:$0xff] }
  0x35   :  { %1318 = vmatpush.msrb.mxu2 %v107_v63  ;;  %v131_v60 = vld [vmem:[%s6103_s3 + $0x1a8] sm:$0xff] }
  0x36   :  { %1430 = vmatpush.msrb.mxu3 %v124_v62  ;;  %1210 = vmatpush.msrb.mxu0 %v3893_v35  ;;  %v130_v62 = vld [vmem:[%s6103_s3 + $0x1a0] sm:$0xff] }
  0x37   :  { %1319 = vmatpush.msrb.mxu2 %v106_v1  ;;  %v173_v1 = vld [vmem:[%s6103_s3 + $0x2f8] sm:$0xff] }
  0x38   :  { %1431 = vmatpush.msrb.mxu3 %v123_v0  ;;  %1211 = vmatpush.msrb.mxu0 %v3902_v37  ;;  %v138_v37 = vld [vmem:[%s6103_s3 + $0x1e0] sm:$0xff] }
  0x39   :  { %1320 = vmatpush.msrb.mxu2 %v105_v4 }
  0x3a   :  { %336 = vperm.xlu2 %3686, %v234_v24   ;;  %1212 = vmatpush.msrb.mxu0 %v3916_v40  ;;  %v137_v40 = vld [vmem:[%s6103_s3 + $0x1d8] sm:$0xff] }
  0x3b   :  { %309 = vperm.xlu0 %3684, %v225_v25   ;;  %252 = vperm.xlu1 %3685, %v206_v26   ;;  %v100_v25 = vld [vmem:[%s6103_s3 + $0xb0] sm:$0xff]  ;;  %v141_v26 = vld [vmem:[%s6103_s3 + $0x1f8] sm:$0xff] }
  0x3c   :  { %1432 = vmatpush.msrb.mxu3 %v122_v2  ;;  %1213 = vmatpush.msrb.mxu0 %v3930_v43  ;;  %v113_v43 = vld [vmem:[%s6103_s3 + $0x118] sm:$0xff] }
  0x3d   :  { %1321 = vmatpush.msrb.mxu2 %v104_v7  ;;  %v129_v2 = vld [vmem:[%s6103_s3 + $0x198] sm:$0xff] }
  0x3e   :  { %1214 = vmatpush.msrb.mxu0 %v3941_v45  ;;  %1433 = vmatpush.msrb.mxu3 %v121_v6  ;;  %v136_v45 = vld [vmem:[%s6103_s3 + $0x1d0] sm:$0xff]  ;;  %v189_v7 = vld [vmem:[%s6103_s3 + $0x378] sm:$0xff] }
  0x3f   :  { %1322 = vmatpush.msrb.mxu2 %v103_v14  ;;  %v128_v6 = vld [vmem:[%s6103_s3 + $0x190] sm:$0xff] }
  0x40   :  { %1215 = vmatpush.msrb.mxu0 %v3950_v47  ;;  %1434 = vmatpush.msrb.mxu3 %v120_v12  ;;  %v127_v12 = vld [vmem:[%s6103_s3 + $0x188] sm:$0xff] }
  0x41   :  { %1323 = vmatpush.msrb.mxu2 %v102_v16  ;;  %v126_v16 = vld [vmem:[%s6103_s3 + $0x180] sm:$0xff] }
  0x42   :  { %261 = vperm.xlu2 %3686, %v209_v30   ;;  %1216 = vmatpush.msrb.mxu0 %v3964_v50  ;;  %v140_v30 = vld [vmem:[%s6103_s3 + $0x1f0] sm:$0xff] }
  0x43   :  { %255 = vperm.xlu0 %3684, %v207_v32   ;;  %258 = vperm.xlu1 %3685, %v208_v33   ;;  %v99_v32 = vld [vmem:[%s6103_s3 + $0xa8] sm:$0xff]  ;;  %v96_v50 = vld [vmem:[%s6103_s3 + $0x90] sm:$0xff] }
  0x44   :  { %1217 = vmatpush.msrb.mxu0 %v3981_v54  ;;  %1435 = vmatpush.msrb.mxu3 %v119_v15  ;;  %v115_v33 = vld [vmem:[%s6103_s3 + $0x128] sm:$0xff] }
  0x45   :  { %1324 = vmatpush.msrb.mxu2 %v101_v21  ;;  %v172_v21 = vld [vmem:[%s6103_s3 + $0x2f0] sm:$0xff] }
  0x46   :  { %1218 = vmatpush.msrb.mxu0 %v3993_v56  ;;  %1436 = vmatpush.msrb.mxu3 %v118_v20  ;;  %v202_v20 = vld [vmem:[%s6103_s3 + $0x3e0] sm:$0xff] }
  0x47   :  { %1325 = vmatpush.msrb.mxu2 %v100_v25 }
  0x48   :  { %1437 = vmatpush.msrb.mxu3 %v117_v22 }
  0x49   :  { %1326 = vmatpush.msrb.mxu2 %v99_v32  ;;  %v157_v32 = vld [vmem:[%s6103_s3 + $0x278] sm:$0xff] }
  0x4a   :  { %270 = vperm.xlu2 %3686, %v212_v39   ;;  %1438 = vmatpush.msrb.mxu3 %v116_v31  ;;  %v98_v39 = vld [vmem:[%s6103_s3 + $0xa0] sm:$0xff]  ;;  %v4318_v31 = vadd.s32 384, %v4063_v9 }
  0x4b   :  { %264 = vperm.xlu0 %3684, %v210_v41   ;;  %267 = vperm.xlu1 %3685, %v211_v42   ;;  %v114_v41 = vld [vmem:[%s6103_s3 + $0x120] sm:$0xff]  ;;  %v97_v42 = vld [vmem:[%s6103_s3 + $0x98] sm:$0xff] }
  0x4c   :  { %1439 = vmatpush.msrb.mxu3 %v115_v33  ;;  %1327 = vmatpush.msrb.mxu2 %v98_v39  ;;  %v156_v33 = vld [vmem:[%s6103_s3 + $0x270] sm:$0xff]  ;;  %v4350_v39 = vadd.s32 256, %v4063_v9 }
  0x4d   :  { %1655 = vmatpush.msrb.mxu1 %v157_v32  ;;  %v168_v32 = vld [vmem:[%s6103_s3 + $0x2d0] sm:$0xff] }
  0x4e   :  { %1440 = vmatpush.msrb.mxu3 %v114_v41  ;;  %1328 = vmatpush.msrb.mxu2 %v97_v42  ;;  %v187_v41 = vld [vmem:[%s6103_s3 + $0x368] sm:$0xff]  ;;  %v153_v42 = vld [vmem:[%s6103_s3 + $0x258] sm:$0xff] }
  0x4f   :  { %1656 = vmatpush.msrb.mxu1 %v156_v33  ;;  %v184_v33 = vld [vmem:[%s6103_s3 + $0x350] sm:$0xff] }
  0x50   :  { %1441 = vmatpush.msrb.mxu3 %v113_v43  ;;  %1329 = vmatpush.msrb.mxu2 %v96_v50  ;;  %v152_v43 = vld [vmem:[%s6103_s3 + $0x250] sm:$0xff]  ;;  %v170_v50 = vld [vmem:[%s6103_s3 + $0x2e0] sm:$0xff] }
  0x52   :  { %279 = vperm.xlu2 %3686, %v215_v49   ;;  %v134_v49 = vld [vmem:[%s6103_s3 + $0x1c0] sm:$0xff] }
  0x53   :  { %273 = vperm.xlu0 %3684, %v213_v51   ;;  %276 = vperm.xlu1 %3685, %v214_v52   ;;  %v112_v51 = vld [vmem:[%s6103_s3 + $0x110] sm:$0xff]  ;;  %v95_v52 = vld [vmem:[%s6103_s3 + $0x88] sm:$0xff] }
  0x54   :  { %1442 = vmatpush.msrb.mxu3 %v112_v51  ;;  %1330 = vmatpush.msrb.mxu2 %v95_v52  ;;  %v149_v51 = vld [vmem:[%s6103_s3 + $0x238] sm:$0xff] }
  0x56   :  { %1331 = vmatpush.msrb.mxu2 %v94_v57  ;;  %1443 = vmatpush.msrb.mxu3 %v111_v58  ;;  %v147_v57 = vld [vmem:[%s6103_s3 + $0x228] sm:$0xff]  ;;  %v186_v58 = vld [vmem:[%s6103_s3 + $0x360] sm:$0xff] }
  0x58   :  { %1444 = vmatpush.msrb.mxu3 %v110_v61 }
  0x5b   :  { %282 = vperm.xlu0 %3684, %v216_v59   ;;  %v132_v59 = vld [vmem:[%s6103_s3 + $0x1b0] sm:$0xff] }
  0x5c   :  { %v4044_v3 = vpop.permute.xlu2 %291 }
  0x5d   :  { %vm466_vm3 = vcmp.eq.s32.totalorder %v4063_v9, %v4044_v3 }
  0x64   :  { %v4060_v8 = vpop.permute.xlu2 %318 }
  0x65   :  { %vm538_vm9 = vcmp.eq.s32.totalorder %v4063_v9, %v4060_v8 }
  0x6c   :  { %v4092_v19 = vpop.permute.xlu2 %321 }
  0x6d   :  { %vm546_vm11 = vcmp.eq.s32.totalorder %v4063_v9, %v4092_v19 }
  0x74   :  { %v4123_v29 = vpop.permute.xlu2 %324 }
  0x75   :  { %v4065_v10 = vpop.permute.xlu1 %288  ;;  %v4067_v11 = vpop.permute.xlu0 %285  ;;  %vm554_vm14 = vcmp.eq.s32.totalorder %v4063_v9, %v4123_v29 }
  0x76   :  { %vm450_vm0 = vcmp.eq.s32.totalorder %v4063_v9, %v4067_v11  ;;  %vm458_vm1 = vcmp.eq.s32.totalorder %v4063_v9, %v4065_v10 }
  0x77   :  { %3354 = vmatmul.msk.f32.vlgmr.msra.gmra.mxu2 %vm450_vm0, %v6110_v13 }
  0x78   :  { %1768 = vmatpush.msra.mxu2 %v173_v1  ;;  %v144_v1 = vld [vmem:[%s6103_s3 + $0x210] sm:$0xff] }
  0x7a   :  { %1769 = vmatpush.msra.mxu2 %v172_v21 }
  0x7c   :  { %v4170_v44 = vpop.permute.xlu2 %327 }
  0x7d   :  { %v4088_v17 = vpop.permute.xlu1 %315  ;;  %v4090_v18 = vpop.permute.xlu0 %312 }
  0x7e   :  { %vm522_vm2 = vcmp.eq.s32.totalorder %v4063_v9, %v4090_v18  ;;  %vm530_vm6 = vcmp.eq.s32.totalorder %v4063_v9, %v4088_v17 }
  0x7f   :  { %3355 = vmatmul.msk.f32.gmra.mxu2 %vm458_vm1, %v6110_v13  ;;  %3363 = vmatmul.msk.f32.vlgmr.msra.gmra.mxu3 %vm522_vm2, %v6110_v13  ;;  %vm562_vm1 = vcmp.eq.s32.totalorder %v4063_v9, %v4170_v44 }
  0x80   :  { %1881 = vmatpush.msra.mxu3 %v189_v7  ;;  %v169_v7 = vld [vmem:[%s6103_s3 + $0x2d8] sm:$0xff] }
  0x84   :  { %v4206_v54 = vpop.permute.xlu2 %330 }
  0x85   :  { %v4109_v23 = vpop.permute.xlu0 %294  ;;  %v38_v24 = vpop.permute.xlu1 %37 }
  0x86   :  { %vm42_vm5 = vcmp.eq.s32.totalorder %v4063_v9, %v38_v24  ;;  %vm474_vm8 = vcmp.eq.s32.totalorder %v4063_v9, %v4109_v23 }
  0x87   :  { %v3080_v28 = vsel %vm42_vm5, 1.0, %v6108_v27  ;;  %3356 = vmatmul.msk.f32.gmra.mxu2 %vm466_vm3, %v6110_v13  ;;  %3364 = vmatmul.msk.f32.gmra.mxu3 %vm530_vm6, %v6110_v13  ;;  %vm570_vm5 = vcmp.eq.s32.totalorder %v4063_v9, %v4206_v54 }
  0x88   :  { %3082 = vmatmul.msk.f32.vlgmr.msra.gmra.mxu0 %vm48_vm4, %v3080_v28 }
  0x89   :  { %1542 = vmatpush.msra.mxu0 %v141_v26  ;;  %v188_v26 = vld [vmem:[%s6103_s3 + $0x370] sm:$0xff] }
  0x8a   :  { %1882 = vmatpush.msra.mxu3 %v188_v26 }
  0x8b   :  { %1543 = vmatpush.msra.mxu0 %v140_v30  ;;  %v4315_v30 = vadd.s32 128, %v4063_v9 }
  0x8c   :  { %v4255_v4 = vpop.permute.xlu2 %333  ;;  %1883 = vmatpush.msra.mxu3 %v187_v41 }
  0x8d   :  { %v4141_v35 = vpop.permute.xlu0 %297  ;;  %v41_v36 = vpop.permute.xlu1 %40  ;;  %1544 = vmatpush.msra.mxu0 %v139_v34  ;;  %v201_v34 = vld [vmem:[%s6103_s3 + $0x3d8] sm:$0xff] }
  0x8e   :  { %vm43_vm7 = vcmp.eq.s32.totalorder %v4063_v9, %v41_v36  ;;  %vm482_vm10 = vcmp.eq.s32.totalorder %v4063_v9, %v4141_v35  ;;  %v171_v36 = vld [vmem:[%s6103_s3 + $0x2e8] sm:$0xff]  ;;  %1884 = vmatpush.msra.mxu3 %v186_v58  ;;  %v197_v58 = vld [vmem:[%s6103_s3 + $0x3b8] sm:$0xff] }
  0x8f   :  { %v3081_v38 = vsel %vm43_vm7, 1.0, %v6108_v27  ;;  %3357 = vmatmul.msk.f32.gmra.mxu2 %vm474_vm8, %v6110_v13  ;;  %3365 = vmatmul.msk.f32.gmra.mxu3 %vm538_vm9, %v6110_v13 }
  0x90   :  { %3083 = vmatmul.msk.f32.gmra.mxu0 %vm48_vm4, %v3081_v38  ;;  %1770 = vmatpush.msra.mxu2 %v171_v36  ;;  %v4517_v36 = vadd.s32 512, %v4063_v9 }
  0x91   :  { %1545 = vmatpush.msra.mxu0 %v138_v37  ;;  %v155_v37 = vld [vmem:[%s6103_s3 + $0x268] sm:$0xff] }
  0x92   :  { %1657 = vmatpush.msrb.mxu1 %v155_v37  ;;  %1771 = vmatpush.msra.mxu2 %v170_v50  ;;  %v198_v37 = vld [vmem:[%s6103_s3 + $0x3c0] sm:$0xff] }
  0x93   :  { %1546 = vmatpush.msra.mxu0 %v137_v40  ;;  %v154_v40 = vld [vmem:[%s6103_s3 + $0x260] sm:$0xff] }
  0x94   :  { %v4291_v22 = vpop.permute.xlu2 %336  ;;  %1658 = vmatpush.msrb.mxu1 %v154_v40  ;;  %1772 = vmatpush.msra.mxu2 %v169_v7 }
  0x95   :  { %v4175_v46 = vpop.permute.xlu0 %300  ;;  %v4177_v47 = vpop.permute.xlu1 %243  ;;  %1547 = vmatpush.msra.mxu0 %v136_v45 }
  0x96   :  { %vm338_vm12 = vcmp.eq.s32.totalorder %v4063_v9, %v4177_v47  ;;  %vm490_vm13 = vcmp.eq.s32.totalorder %v4063_v9, %v4175_v46  ;;  %1659 = vmatpush.msrb.mxu1 %v153_v42  ;;  %1773 = vmatpush.msra.mxu2 %v168_v32  ;;  %v165_v32 = vld [vmem:[%s6103_s3 + $0x2b8] sm:$0xff] }
  0x97   :  { %3358 = vmatmul.msk.f32.gmra.mxu2 %vm482_vm10, %v6110_v13  ;;  %3366 = vmatmul.msk.f32.gmra.mxu3 %vm546_vm11, %v6110_v13  ;;  %vm578_vm10 = vcmp.eq.s32.totalorder %v4063_v9, %v4255_v4 }
  0x98   :  { %3340 = vmatmul.msk.f32.vlgmr.msrb.gmra.mxu0 %vm338_vm12, %v6110_v13  ;;  %vm339_vm12 = vcmp.eq.s32.totalorder %v4315_v30, %v4177_v47  ;;  %1660 = vmatpush.msrb.mxu1 %v152_v43  ;;  %v167_v43 = vld [vmem:[%s6103_s3 + $0x2c8] sm:$0xff] }
  0x99   :  { %1548 = vmatpush.msra.mxu0 %v135_v48  ;;  %v151_v48 = vld [vmem:[%s6103_s3 + $0x248] sm:$0xff]  ;;  %1774 = vmatpush.msra.mxu2 %v167_v43 }
  0x9a   :  { %1661 = vmatpush.msrb.mxu1 %v151_v48  ;;  %v183_v48 = vld [vmem:[%s6103_s3 + $0x348] sm:$0xff] }
  0x9b   :  { %1549 = vmatpush.msra.mxu0 %v134_v49  ;;  %v150_v49 = vld [vmem:[%s6103_s3 + $0x240] sm:$0xff] }
  0x9c   :  { %v4312_v28 = vpop.permute.xlu2 %261  ;;  %1662 = vmatpush.msrb.mxu1 %v150_v49 }
  0x9d   :  { %v4208_v55 = vpop.permute.xlu0 %303  ;;  %v4210_v56 = vpop.permute.xlu1 %246  ;;  %1550 = vmatpush.msra.mxu0 %v133_v53  ;;  %vm386_vm11 = vcmp.eq.s32.totalorder %v4063_v9, %v4312_v28  ;;  %v148_v53 = vld [vmem:[%s6103_s3 + $0x230] sm:$0xff] }
  0x9e   :  { %vm346_vm15 = vcmp.eq.s32.totalorder %v4063_v9, %v4210_v56  ;;  %vm498_vm0 = vcmp.eq.s32.totalorder %v4063_v9, %v4208_v55  ;;  %1663 = vmatpush.msrb.mxu1 %v149_v51 }
  0x9f   :  { %3359 = vmatmul.msk.f32.gmra.mxu2 %vm490_vm13, %v6110_v13  ;;  %3367 = vmatmul.msk.f32.gmra.mxu3 %vm554_vm14, %v6110_v13  ;;  %vm586_vm13 = vcmp.eq.s32.totalorder %v4063_v9, %v4291_v22  ;;  %vm341_vm14 = vcmp.eq.s32.totalorder %v4318_v31, %v4177_v47 }
  0xa0   :  { %3341 = vmatmul.msk.f32.gmra.mxu0 %vm346_vm15, %v6110_v13  ;;  %1664 = vmatpush.msrb.mxu1 %v148_v53 }
  0xa1   :  { %1551 = vmatpush.msra.mxu0 %v132_v59  ;;  %v200_v59 = vld [vmem:[%s6103_s3 + $0x3d0] sm:$0xff] }
  0xa2   :  { %1665 = vmatpush.msrb.mxu1 %v147_v57 }
  0xa3   :  { %1552 = vmatpush.msra.mxu0 %v131_v60  ;;  %v146_v60 = vld [vmem:[%s6103_s3 + $0x220] sm:$0xff] }
  0xa4   :  { %v4402_v52 = vpop.permute.xlu2 %270  ;;  %1666 = vmatpush.msrb.mxu1 %v146_v60  ;;  %v166_v60 = vld [vmem:[%s6103_s3 + $0x2c0] sm:$0xff] }
  0xa5   :  { %v4239_v63 = vpop.permute.xlu0 %306  ;;  %v4241_v0 = vpop.permute.xlu1 %249  ;;  %1553 = vmatpush.msra.mxu0 %v130_v62  ;;  %v145_v62 = vld [vmem:[%s6103_s3 + $0x218] sm:$0xff]  ;;  %1775 = vmatpush.msra.mxu2 %v166_v60 }
  0xa6   :  { %vm354_vm2 = vcmp.eq.s32.totalorder %v4063_v9, %v4241_v0  ;;  %vm506_vm3 = vcmp.eq.s32.totalorder %v4063_v9, %v4239_v63  ;;  %1667 = vmatpush.msrb.mxu1 %v145_v62  ;;  %v182_v62 = vld [vmem:[%s6103_s3 + $0x340] sm:$0xff] }
  0xa7   :  { %3360 = vmatmul.msk.f32.gmra.mxu2 %vm498_vm0, %v6110_v13  ;;  %3368 = vmatmul.msk.f32.gmra.mxu3 %vm562_vm1, %v6110_v13  ;;  %vm347_vm0 = vcmp.eq.s32.totalorder %v4315_v30, %v4210_v56  ;;  %vm340_vm1 = vcmp.eq.s32.totalorder %v4350_v39, %v4177_v47 }
  0xa8   :  { %3342 = vmatmul.msk.f32.gmra.mxu0 %vm354_vm2, %v6110_v13  ;;  %vm349_vm2 = vcmp.eq.s32.totalorder %v4318_v31, %v4210_v56  ;;  %1668 = vmatpush.msrb.mxu1 %v144_v1 }
  0xa9   :  { %1554 = vmatpush.msra.mxu0 %v129_v2  ;;  %v143_v2 = vld [vmem:[%s6103_s3 + $0x208] sm:$0xff]  ;;  %1776 = vmatpush.msra.mxu2 %v165_v32 }
  0xaa   :  { %1669 = vmatpush.msrb.mxu1 %v143_v2 }
  0xab   :  { %1555 = vmatpush.msra.mxu0 %v128_v6 }
  0xac   :  { %v4480_v21 = vpop.permute.xlu2 %279 }
  0xad   :  { %v4269_v14 = vpop.permute.xlu0 %309  ;;  %v4271_v15 = vpop.permute.xlu1 %252  ;;  %1556 = vmatpush.msra.mxu0 %v127_v12  ;;  %v142_v12 = vld [vmem:[%s6103_s3 + $0x200] sm:$0xff] }
  0xae   :  { %vm362_vm6 = vcmp.eq.s32.totalorder %v4063_v9, %v4271_v15  ;;  %vm514_vm8 = vcmp.eq.s32.totalorder %v4063_v9, %v4269_v14  ;;  %1670 = vmatpush.msrb.mxu1 %v142_v12 }
  0xaf   :  { %3361 = vmatmul.msk.f32.gmra.mxu2 %vm506_vm3, %v6110_v13  ;;  %3369 = vmatmul.msk.f32.gmra.mxu3 %vm570_vm5, %v6110_v13  ;;  %vm355_vm5 = vcmp.eq.s32.totalorder %v4315_v30, %v4241_v0 }
  0xb0   :  { %3343 = vmatmul.msk.f32.gmra.mxu0 %vm362_vm6, %v6110_v13  ;;  %vm348_vm6 = vcmp.eq.s32.totalorder %v4350_v39, %v4210_v56 }
  0xb1   :  { %1557 = vmatpush.msra.mxu0 %v126_v16  ;;  %v185_v16 = vld [vmem:[%s6103_s3 + $0x358] sm:$0xff] }
  0xb2   :  { %1885 = vmatpush.msra.mxu3 %v185_v16 }
  0xb3   :  { %1997 = vmatpush.msrb.mxu0 %v202_v20  ;;  %v199_v20 = vld [vmem:[%s6103_s3 + $0x3c8] sm:$0xff] }
  0xb4   :  { %1886 = vmatpush.msra.mxu3 %v184_v33  ;;  %v196_v33 = vld [vmem:[%s6103_s3 + $0x3b0] sm:$0xff] }
  0xb5   :  { %v4293_v24 = vpop.permute.xlu0 %255  ;;  %v4295_v25 = vpop.permute.xlu1 %258  ;;  %1998 = vmatpush.msrb.mxu0 %v201_v34 }
  0xb6   :  { %vm378_vm7 = vcmp.eq.s32.totalorder %v4063_v9, %v4295_v25  ;;  %vm370_vm9 = vcmp.eq.s32.totalorder %v4063_v9, %v4293_v24  ;;  %1887 = vmatpush.msra.mxu3 %v183_v48 }
  0xb7   :  { %3345 = vmatmul.msk.f32.vlgmr.msra.gmra.mxu1 %vm378_vm7, %v6110_v13  ;;  %3362 = vmatmul.msk.f32.gmra.mxu2 %vm514_vm8, %v6110_v13  ;;  %vm357_vm7 = vcmp.eq.s32.totalorder %v4318_v31, %v4241_v0  ;;  %vm410_vm8 = vcmp.eq.s32.totalorder %v4063_v9, %v4402_v52 }
  0xb8   :  { %3370 = vmatmul.msk.f32.gmra.mxu3 %vm578_vm10, %v6110_v13  ;;  %3344 = vmatmul.msk.f32.gmra.mxu0 %vm370_vm9, %v6110_v13  ;;  %vm363_vm9 = vcmp.eq.s32.totalorder %v4315_v30, %v4271_v15  ;;  %vm356_vm10 = vcmp.eq.s32.totalorder %v4350_v39, %v4241_v0 }
  0xb9   :  { %1999 = vmatpush.msrb.mxu0 %v200_v59  ;;  %1888 = vmatpush.msra.mxu3 %v182_v62 }
  0xbb   :  { %2000 = vmatpush.msrb.mxu0 %v199_v20 }
  0xbd   :  { %v4347_v38 = vpop.permute.xlu0 %264  ;;  %v4376_v45 = vpop.permute.xlu1 %267  ;;  %2001 = vmatpush.msrb.mxu0 %v198_v37  ;;  %v181_v37 = vld [vmem:[%s6103_s3 + $0x338] sm:$0xff] }
  0xbe   :  { %vm394_vm15 = vcmp.eq.s32.totalorder %v4063_v9, %v4347_v38  ;;  %vm402_vm3 = vcmp.eq.s32.totalorder %v4063_v9, %v4376_v45  ;;  %1889 = vmatpush.msra.mxu3 %v181_v37  ;;  %v180_v37 = vld [vmem:[%s6103_s3 + $0x330] sm:$0xff] }
  0xbf   :  { %3346 = vmatmul.msk.f32.gmra.mxu1 %vm386_vm11, %v6110_v13  ;;  %3372 = vmatmul.msk.f32.vlgmr.msrb.gmra.mxu2 %vm339_vm12, %v6110_v13  ;;  %vm365_vm11 = vcmp.eq.s32.totalorder %v4318_v31, %v4271_v15 }
  0xc0   :  { %3371 = vmatmul.msk.f32.gmra.mxu3 %vm586_vm13, %v6110_v13  ;;  %3436 = vmatmul.msk.f32.vlgmr.msra.gmra.mxu0 %vm341_vm14, %v6110_v13  ;;  %vm371_vm13 = vcmp.eq.s32.totalorder %v4315_v30, %v4293_v24  ;;  %vm364_vm14 = vcmp.eq.s32.totalorder %v4350_v39, %v4271_v15 }
  0xc1   :  { %2002 = vmatpush.msrb.mxu0 %v197_v58  ;;  %1890 = vmatpush.msra.mxu3 %v180_v37 }
  0xc3   :  { %2003 = vmatpush.msrb.mxu0 %v196_v33  ;;  %v164_v33 = vld [vmem:[%s6103_s3 + $0x2b0] sm:$0xff] }
  0xc4   :  { %1777 = vmatpush.msra.mxu2 %v164_v33  ;;  %v195_v33 = vld [vmem:[%s6103_s3 + $0x3a8] sm:$0xff] }
  0xc5   :  { %v4431_v61 = vpop.permute.xlu0 %273  ;;  %v4454_v6 = vpop.permute.xlu1 %276  ;;  %2004 = vmatpush.msrb.mxu0 %v195_v33 }
  0xc6   :  { %vm418_vm12 = vcmp.eq.s32.totalorder %v4063_v9, %v4431_v61 }
  0xc7   :  { %3347 = vmatmul.msk.f32.gmra.mxu1 %vm394_vm15, %v6110_v13  ;;  %3373 = vmatmul.msk.f32.gmra.mxu2 %vm347_vm0, %v6110_v13  ;;  %vm373_vm15 = vcmp.eq.s32.totalorder %v4318_v31, %v4293_v24  ;;  %vm426_vm0 = vcmp.eq.s32.totalorder %v4063_v9, %v4454_v6 }
  0xc8   :  { %3404 = vmatmul.msk.f32.vlgmr.msrb.gmra.mxu3 %vm340_vm1, %v6110_v13  ;;  %3437 = vmatmul.msk.f32.gmra.mxu0 %vm349_vm2, %v6110_v13  ;;  %vm379_vm1 = vcmp.eq.s32.totalorder %v4315_v30, %v4295_v25  ;;  %vm372_vm2 = vcmp.eq.s32.totalorder %v4350_v39, %v4293_v24 }
  0xcd   :  { %v4494_v26 = vpop.permute.xlu0 %282 }
  0xcf   :  { %3348 = vmatmul.msk.f32.gmra.mxu1 %vm402_vm3, %v6110_v13  ;;  %3374 = vmatmul.msk.f32.gmra.mxu2 %vm355_vm5, %v6110_v13  ;;  %vm381_vm3 = vcmp.eq.s32.totalorder %v4318_v31, %v4295_v25  ;;  %vm434_vm5 = vcmp.eq.s32.totalorder %v4063_v9, %v4480_v21 }
  0xd0   :  { %3405 = vmatmul.msk.f32.gmra.mxu3 %vm348_vm6, %v6110_v13  ;;  %3438 = vmatmul.msk.f32.gmra.mxu0 %vm357_vm7, %v6110_v13  ;;  %vm387_vm6 = vcmp.eq.s32.totalorder %v4315_v30, %v4312_v28  ;;  %vm380_vm7 = vcmp.eq.s32.totalorder %v4350_v39, %v4295_v25 }
  0xd7   :  { %3349 = vmatmul.msk.f32.gmra.mxu1 %vm410_vm8, %v6110_v13  ;;  %3375 = vmatmul.msk.f32.gmra.mxu2 %vm363_vm9, %v6110_v13  ;;  %vm389_vm8 = vcmp.eq.s32.totalorder %v4318_v31, %v4312_v28  ;;  %vm442_vm9 = vcmp.eq.s32.totalorder %v4063_v9, %v4494_v26 }
  0xd8   :  { %3406 = vmatmul.msk.f32.gmra.mxu3 %vm356_vm10, %v6110_v13  ;;  %3439 = vmatmul.msk.f32.gmra.mxu0 %vm365_vm11, %v6110_v13  ;;  %vm395_vm10 = vcmp.eq.s32.totalorder %v4315_v30, %v4347_v38  ;;  %vm388_vm11 = vcmp.eq.s32.totalorder %v4350_v39, %v4312_v28 }
  0xdf   :  { %3350 = vmatmul.msk.f32.gmra.mxu1 %vm418_vm12, %v6110_v13  ;;  %3376 = vmatmul.msk.f32.gmra.mxu2 %vm371_vm13, %v6110_v13  ;;  %vm397_vm12 = vcmp.eq.s32.totalorder %v4318_v31, %v4347_v38  ;;  %vm403_vm13 = vcmp.eq.s32.totalorder %v4315_v30, %v4376_v45 }
  0xe0   :  { %3407 = vmatmul.msk.f32.gmra.mxu3 %vm364_vm14, %v6110_v13  ;;  %3440 = vmatmul.msk.f32.gmra.mxu0 %vm373_vm15, %v6110_v13  ;;  %vm342_vm14 = vcmp.eq.s32.totalorder %v4517_v36, %v4177_v47  ;;  %vm396_vm15 = vcmp.eq.s32.totalorder %v4350_v39, %v4347_v38 }
  0xe7   :  { %3351 = vmatmul.msk.f32.gmra.mxu1 %vm426_vm0, %v6110_v13  ;;  %3377 = vmatmul.msk.f32.gmra.mxu2 %vm379_vm1, %v6110_v13  ;;  %vm405_vm0 = vcmp.eq.s32.totalorder %v4318_v31, %v4376_v45  ;;  %vm411_vm1 = vcmp.eq.s32.totalorder %v4315_v30, %v4402_v52 }
  0xe8   :  { %3408 = vmatmul.msk.f32.gmra.mxu3 %vm372_vm2, %v6110_v13  ;;  %3441 = vmatmul.msk.f32.gmra.mxu0 %vm381_vm3, %v6110_v13  ;;  %vm350_vm2 = vcmp.eq.s32.totalorder %v4517_v36, %v4210_v56  ;;  %vm404_vm3 = vcmp.eq.s32.totalorder %v4350_v39, %v4376_v45 }
  0xef   :  { %3352 = vmatmul.msk.f32.gmra.mxu1 %vm434_vm5, %v6110_v13  ;;  %3378 = vmatmul.msk.f32.gmra.mxu2 %vm387_vm6, %v6110_v13  ;;  %vm413_vm5 = vcmp.eq.s32.totalorder %v4318_v31, %v4402_v52  ;;  %vm419_vm6 = vcmp.eq.s32.totalorder %v4315_v30, %v4431_v61 }
  0xf0   :  { %3409 = vmatmul.msk.f32.gmra.mxu3 %vm380_vm7, %v6110_v13  ;;  %3442 = vmatmul.msk.f32.gmra.mxu0 %vm389_vm8, %v6110_v13  ;;  %vm358_vm7 = vcmp.eq.s32.totalorder %v4517_v36, %v4241_v0  ;;  %vm412_vm8 = vcmp.eq.s32.totalorder %v4350_v39, %v4402_v52 }
  0xf7   :  { %3353 = vmatmul.msk.f32.gmra.mxu1 %vm442_vm9, %v6110_v13  ;;  %3379 = vmatmul.msk.f32.gmra.mxu2 %vm395_vm10, %v6110_v13  ;;  %vm421_vm9 = vcmp.eq.s32.totalorder %v4318_v31, %v4431_v61  ;;  %vm427_vm10 = vcmp.eq.s32.totalorder %v4315_v30, %v4454_v6 }
  0xf8   :  { %3410 = vmatmul.msk.f32.gmra.mxu3 %vm388_vm11, %v6110_v13  ;;  %3443 = vmatmul.msk.f32.gmra.mxu0 %vm397_vm12, %v6110_v13  ;;  %vm366_vm11 = vcmp.eq.s32.totalorder %v4517_v36, %v4271_v15  ;;  %vm420_vm12 = vcmp.eq.s32.totalorder %v4350_v39, %v4431_v61 }
  0xfa   :  { %v4514_v34 = vpop.f32.mrf.mxu2 }
  0xff   :  { %3380 = vmatmul.msk.f32.gmra.mxu2 %vm403_vm13, %v6110_v13  ;;  %3468 = vmatmul.msk.f32.vlgmr.msrb.gmra.mxu1 %vm342_vm14, %v6110_v13  ;;  %vm429_vm13 = vcmp.eq.s32.totalorder %v4318_v31, %v4454_v6  ;;  %vm435_vm14 = vcmp.eq.s32.totalorder %v4315_v30, %v4480_v21 }
 0x100   :  { %3411 = vmatmul.msk.f32.gmra.mxu3 %vm396_vm15, %v6110_v13  ;;  %3444 = vmatmul.msk.f32.gmra.mxu0 %vm405_vm0, %v6110_v13  ;;  %vm374_vm15 = vcmp.eq.s32.totalorder %v4517_v36, %v4293_v24  ;;  %vm428_vm0 = vcmp.eq.s32.totalorder %v4350_v39, %v4454_v6 }
 0x102   :  { %v4534_v40 = vpop.f32.mrf.mxu2  ;;  %v4536_v41 = vpop.f32.mrf.mxu3 }
 0x105   :  { %v4538_v42 = vpop.f32.mrf.mxu0 }
 0x106   :  { %6112 = vst [vmem:[#allocation5_spill] sm:$0xff] %v4538_v42 }
 0x107   :  { %3381 = vmatmul.msk.f32.gmra.mxu2 %vm411_vm1, %v6110_v13  ;;  %3469 = vmatmul.msk.f32.gmra.mxu1 %vm350_vm2, %v6110_v13  ;;  %vm437_vm1 = vcmp.eq.s32.totalorder %v4318_v31, %v4480_v21  ;;  %vm443_vm2 = vcmp.eq.s32.totalorder %v4315_v30, %v4494_v26 }
 0x108   :  { %3412 = vmatmul.msk.f32.gmra.mxu3 %vm404_vm3, %v6110_v13  ;;  %3445 = vmatmul.msk.f32.gmra.mxu0 %vm413_vm5, %v6110_v13  ;;  %vm382_vm3 = vcmp.eq.s32.totalorder %v4517_v36, %v4295_v25  ;;  %vm436_vm5 = vcmp.eq.s32.totalorder %v4350_v39, %v4480_v21 }
 0x10a   :  { %v4558_v49 = vpop.f32.mrf.mxu2  ;;  %v4560_v50 = vpop.f32.mrf.mxu3 }
 0x10d   :  { %v4562_v51 = vpop.f32.mrf.mxu0 }
 0x10e   :  { %6113 = vst [vmem:[#allocation6_spill] sm:$0xff] %v4562_v51 }
 0x10f   :  { %3382 = vmatmul.msk.f32.gmra.mxu2 %vm419_vm6, %v6110_v13  ;;  %3470 = vmatmul.msk.f32.gmra.mxu1 %vm358_vm7, %v6110_v13  ;;  %vm445_vm6 = vcmp.eq.s32.totalorder %v4318_v31, %v4494_v26  ;;  %vm451_vm7 = vcmp.eq.s32.totalorder %v4315_v30, %v4067_v11 }
 0x110   :  { %3413 = vmatmul.msk.f32.gmra.mxu3 %vm412_vm8, %v6110_v13  ;;  %3446 = vmatmul.msk.f32.gmra.mxu0 %vm421_vm9, %v6110_v13  ;;  %vm390_vm8 = vcmp.eq.s32.totalorder %v4517_v36, %v4312_v28  ;;  %vm444_vm9 = vcmp.eq.s32.totalorder %v4350_v39, %v4494_v26 }
 0x112   :  { %v4576_v53 = vpop.f32.mrf.mxu2  ;;  %v4578_v57 = vpop.f32.mrf.mxu3 }
 0x115   :  { %v4583_v59 = vpop.f32.mrf.mxu0 }
 0x117   :  { %3383 = vmatmul.msk.f32.gmra.mxu2 %vm427_vm10, %v6110_v13  ;;  %3471 = vmatmul.msk.f32.gmra.mxu1 %vm366_vm11, %v6110_v13  ;;  %vm453_vm10 = vcmp.eq.s32.totalorder %v4318_v31, %v4067_v11  ;;  %vm459_vm11 = vcmp.eq.s32.totalorder %v4315_v30, %v4065_v10 }
 0x118   :  { %3414 = vmatmul.msk.f32.gmra.mxu3 %vm420_vm12, %v6110_v13  ;;  %3447 = vmatmul.msk.f32.gmra.mxu0 %vm429_vm13, %v6110_v13  ;;  %vm398_vm12 = vcmp.eq.s32.totalorder %v4517_v36, %v4347_v38  ;;  %vm452_vm13 = vcmp.eq.s32.totalorder %v4350_v39, %v4067_v11 }
 0x11a   :  { %v4603_v1 = vpop.f32.mrf.mxu2  ;;  %v4605_v2 = vpop.f32.mrf.mxu3 }
 0x11b   :  { %6114 = vst [vmem:[#allocation7_spill] sm:$0xff] %v4605_v2  ;;  %v194_v2 = vld [vmem:[%s6103_s3 + $0x3a0] sm:$0xff] }
 0x11c   :  { %2005 = vmatpush.msrb.mxu0 %v194_v2 }
 0x11d   :  { %v4607_v7 = vpop.f32.mrf.mxu0 }
 0x11f   :  { %3384 = vmatmul.msk.f32.gmra.mxu2 %vm435_vm14, %v6110_v13  ;;  %3472 = vmatmul.msk.f32.gmra.mxu1 %vm374_vm15, %v6110_v13  ;;  %vm461_vm14 = vcmp.eq.s32.totalorder %v4318_v31, %v4065_v10  ;;  %vm467_vm15 = vcmp.eq.s32.totalorder %v4315_v30, %v4044_v3 }
 0x120   :  { %3415 = vmatmul.msk.f32.gmra.mxu3 %vm428_vm0, %v6110_v13  ;;  %3448 = vmatmul.msk.f32.gmra.mxu0 %vm437_vm1, %v6110_v13  ;;  %vm406_vm0 = vcmp.eq.s32.totalorder %v4517_v36, %v4376_v45  ;;  %vm460_vm1 = vcmp.eq.s32.totalorder %v4350_v39, %v4065_v10 }
 0x122   :  { %v4621_v12 = vpop.f32.mrf.mxu2  ;;  %v4623_v16 = vpop.f32.mrf.mxu3 }
 0x123   :  { %6115 = vst [vmem:[#allocation8_spill] sm:$0xff] %v4623_v16 }
 0x125   :  { %v4625_v20 = vpop.f32.mrf.mxu0 }
 0x127   :  { %3385 = vmatmul.msk.f32.gmra.mxu2 %vm443_vm2, %v6110_v13  ;;  %3473 = vmatmul.msk.f32.gmra.mxu1 %vm382_vm3, %v6110_v13  ;;  %vm469_vm2 = vcmp.eq.s32.totalorder %v4318_v31, %v4044_v3  ;;  %vm475_vm3 = vcmp.eq.s32.totalorder %v4315_v30, %v4109_v23 }
 0x128   :  { %3416 = vmatmul.msk.f32.gmra.mxu3 %vm436_vm5, %v6110_v13  ;;  %3449 = vmatmul.msk.f32.gmra.mxu0 %vm445_vm6, %v6110_v13  ;;  %vm414_vm5 = vcmp.eq.s32.totalorder %v4517_v36, %v4402_v52  ;;  %vm468_vm6 = vcmp.eq.s32.totalorder %v4350_v39, %v4044_v3 }
 0x12a   :  { %v4648_v43 = vpop.f32.mrf.mxu2  ;;  %v4650_v48 = vpop.f32.mrf.mxu3 }
 0x12b   :  { %6116 = vst [vmem:[#allocation9_spill] sm:$0xff] %v4650_v48 }
 0x12d   :  { %v4652_v58 = vpop.f32.mrf.mxu0 }
 0x12f   :  { %3386 = vmatmul.msk.f32.gmra.mxu2 %vm451_vm7, %v6110_v13  ;;  %3474 = vmatmul.msk.f32.gmra.mxu1 %vm390_vm8, %v6110_v13  ;;  %vm477_vm7 = vcmp.eq.s32.totalorder %v4318_v31, %v4109_v23  ;;  %vm483_vm8 = vcmp.eq.s32.totalorder %v4315_v30, %v4141_v35 }
 0x130   :  { %3417 = vmatmul.msk.f32.gmra.mxu3 %vm444_vm9, %v6110_v13  ;;  %3450 = vmatmul.msk.f32.gmra.mxu0 %vm453_vm10, %v6110_v13  ;;  %vm422_vm9 = vcmp.eq.s32.totalorder %v4517_v36, %v4431_v61  ;;  %vm476_vm10 = vcmp.eq.s32.totalorder %v4350_v39, %v4109_v23 }
 0x132   :  { %v4666_v60 = vpop.f32.mrf.mxu2  ;;  %v4668_v62 = vpop.f32.mrf.mxu3 }
 0x133   :  { %6117 = vst [vmem:[#allocation10_spill] sm:$0xff] %v4668_v62  ;;  %v163_v62 = vld [vmem:[%s6103_s3 + $0x2a8] sm:$0xff] }
 0x134   :  { %1778 = vmatpush.msra.mxu2 %v163_v62 }
 0x135   :  { %v4670_v32 = vpop.f32.mrf.mxu0 }
 0x137   :  { %3387 = vmatmul.msk.f32.gmra.mxu2 %vm459_vm11, %v6110_v13  ;;  %3475 = vmatmul.msk.f32.gmra.mxu1 %vm398_vm12, %v6110_v13  ;;  %vm485_vm11 = vcmp.eq.s32.totalorder %v4318_v31, %v4141_v35  ;;  %vm491_vm12 = vcmp.eq.s32.totalorder %v4315_v30, %v4175_v46 }
 0x138   :  { %3418 = vmatmul.msk.f32.gmra.mxu3 %vm452_vm13, %v6110_v13  ;;  %3451 = vmatmul.msk.f32.gmra.mxu0 %vm461_vm14, %v6110_v13  ;;  %vm430_vm13 = vcmp.eq.s32.totalorder %v4517_v36, %v4454_v6  ;;  %vm484_vm14 = vcmp.eq.s32.totalorder %v4350_v39, %v4141_v35 }
 0x13a   :  { %v4693_v5 = vpop.f32.mrf.mxu2 }
 0x13b   :  { %v4695_v27 = vpop.f32.mrf.mxu3 }
 0x13c   :  { %6118 = vst [vmem:[#allocation11_spill] sm:$0xff] %v4695_v27 }
 0x13d   :  { %v1559_v51 = vpop.f32.mrf.mxu0 }
 0x13f   :  { %3388 = vmatmul.msk.f32.gmra.mxu2 %vm467_vm15, %v6110_v13  ;;  %3476 = vmatmul.msk.f32.gmra.mxu1 %vm406_vm0, %v6110_v13  ;;  %vm493_vm15 = vcmp.eq.s32.totalorder %v4318_v31, %v4175_v46  ;;  %vm499_vm0 = vcmp.eq.s32.totalorder %v4315_v30, %v4208_v55 }
 0x140   :  { %3419 = vmatmul.msk.f32.gmra.mxu3 %vm460_vm1, %v6110_v13  ;;  %3452 = vmatmul.msk.f32.gmra.mxu0 %vm469_vm2, %v6110_v13  ;;  %vm438_vm1 = vcmp.eq.s32.totalorder %v4517_v36, %v4480_v21  ;;  %vm492_vm2 = vcmp.eq.s32.totalorder %v4350_v39, %v4175_v46 }
 0x142   :  { %v1333_v37 = vpop.f32.mrf.mxu2 }
 0x143   :  { %v4709_v33 = vpop.f32.mrf.mxu3  ;;  %v1334_v42 = vadd.f32 %v1333_v37, %v4583_v59  ;;  %v179_v59 = vld [vmem:[%s6103_s3 + $0x328] sm:$0xff] }
 0x144   :  { %6119 = vst [vmem:[#allocation12_spill] sm:$0xff] %v4709_v33  ;;  %1891 = vmatpush.msra.mxu3 %v179_v59  ;;  %v6121_v59 = vmov 1.0  }
 0x145   :  { %v1562_v27 = vpop.f32.mrf.mxu0 }
 0x147   :  { %3389 = vmatmul.msk.f32.gmra.mxu2 %vm475_vm3, %v6110_v13  ;;  %3477 = vmatmul.msk.f32.gmra.mxu1 %vm414_vm5, %v6110_v13  ;;  %vm501_vm3 = vcmp.eq.s32.totalorder %v4318_v31, %v4208_v55  ;;  %vm507_vm5 = vcmp.eq.s32.totalorder %v4315_v30, %v4239_v63 }
 0x148   :  { %3420 = vmatmul.msk.f32.gmra.mxu3 %vm468_vm6, %v6110_v13  ;;  %3453 = vmatmul.msk.f32.gmra.mxu0 %vm477_vm7, %v6110_v13  ;;  %vm446_vm6 = vcmp.eq.s32.totalorder %v4517_v36, %v4494_v26  ;;  %vm500_vm7 = vcmp.eq.s32.totalorder %v4350_v39, %v4208_v55 }
 0x14a   :  { %v1336_v62 = vpop.f32.mrf.mxu2 }
 0x14b   :  { %v1337_v37 = vadd.f32 %v1336_v62, %v4607_v7  ;;  %v1446_v33 = vpop.f32.mrf.mxu3 }
 0x14c   :  { %v1447_v48 = vadd.f32 %v1446_v33, %v1334_v42  ;;  %v162_v33 = vld [vmem:[%s6103_s3 + $0x2a0] sm:$0xff] }
 0x14d   :  { %v1565_v16 = vpop.f32.mrf.mxu0  ;;  %1779 = vmatpush.msra.mxu2 %v162_v33 }
 0x14e   :  { %v4738_v13 = vadd.f32 %v1559_v51, %v1447_v48 }
 0x14f   :  { %3390 = vmatmul.msk.f32.gmra.mxu2 %vm483_vm8, %v6121_v59  ;;  %3478 = vmatmul.msk.f32.gmra.mxu1 %vm422_vm9, %v6121_v59  ;;  %vm509_vm8 = vcmp.eq.s32.totalorder %v4318_v31, %v4239_v63  ;;  %vm515_vm9 = vcmp.eq.s32.totalorder %v4315_v30, %v4269_v14 }
 0x150   :  { %6120 = vst [vmem:[#allocation13_spill] sm:$0xff] %v4738_v13  ;;  %3421 = vmatmul.msk.f32.gmra.mxu3 %vm476_vm10, %v6121_v59  ;;  %3454 = vmatmul.msk.f32.gmra.mxu0 %vm485_vm11, %v6121_v59  ;;  %v1235_v13 = vpop.f32.mrf.mxu1  ;;  %vm454_vm10 = vcmp.eq.s32.totalorder %v4517_v36, %v4067_v11  ;;  %vm508_vm11 = vcmp.eq.s32.totalorder %v4350_v39, %v4239_v63 }
 0x152   :  { %v1339_v42 = vpop.f32.mrf.mxu2 }
 0x153   :  { %v1340_v7 = vadd.f32 %v1339_v42, %v4625_v20  ;;  %v1449_v2 = vpop.f32.mrf.mxu3 }
 0x154   :  { %v1450_v51 = vadd.f32 %v1449_v2, %v1337_v37 }
 0x155   :  { %v1568_v48 = vpop.f32.mrf.mxu0 }
 0x156   :  { %v4756_v62 = vadd.f32 %v1562_v27, %v1450_v51  ;;  %v178_v27 = vld [vmem:[%s6103_s3 + $0x320] sm:$0xff] }
 0x157   :  { %3391 = vmatmul.msk.f32.gmra.mxu2 %vm491_vm12, %v6121_v59  ;;  %3479 = vmatmul.msk.f32.gmra.mxu1 %vm430_vm13, %v6121_v59  ;;  %vm517_vm12 = vcmp.eq.s32.totalorder %v4318_v31, %v4269_v14  ;;  %vm523_vm13 = vcmp.eq.s32.totalorder %v4315_v30, %v4090_v18 }
 0x158   :  { %6122 = vst [vmem:[#allocation14_spill] sm:$0xff] %v4756_v62  ;;  %3422 = vmatmul.msk.f32.gmra.mxu3 %vm484_vm14, %v6121_v59  ;;  %3455 = vmatmul.msk.f32.gmra.mxu0 %vm493_vm15, %v6121_v59  ;;  %vm462_vm14 = vcmp.eq.s32.totalorder %v4517_v36, %v4065_v10  ;;  %vm516_vm15 = vcmp.eq.s32.totalorder %v4350_v39, %v4269_v14 }
 0x159   :  { %1892 = vmatpush.msra.mxu3 %v178_v27 }
 0x15a   :  { %v1342_v20 = vpop.f32.mrf.mxu2 }
 0x15b   :  { %v1343_v37 = vadd.f32 %v1342_v20, %v4652_v58  ;;  %v1452_v42 = vpop.f32.mrf.mxu3  ;;  %v193_v58 = vld [vmem:[%s6103_s3 + $0x398] sm:$0xff] }
 0x15c   :  { %v1453_v2 = vadd.f32 %v1452_v42, %v1340_v7  ;;  %2006 = vmatpush.msrb.mxu0 %v193_v58 }
 0x15d   :  { %v1571_v51 = vpop.f32.mrf.mxu0 }
 0x15e   :  { %v4774_v33 = vadd.f32 %v1565_v16, %v1453_v2  ;;  %v1238_v16 = vpop.f32.mrf.mxu1 }
 0x15f   :  { %3392 = vmatmul.msk.f32.gmra.mxu2 %vm499_vm0, %v6121_v59  ;;  %3480 = vmatmul.msk.f32.gmra.mxu1 %vm438_vm1, %v6121_v59  ;;  %vm525_vm0 = vcmp.eq.s32.totalorder %v4318_v31, %v4090_v18  ;;  %vm531_vm1 = vcmp.eq.s32.totalorder %v4315_v30, %v4088_v17 }
 0x160   :  { %6123 = vst [vmem:[#allocation15_spill] sm:$0xff] %v4774_v33  ;;  %3423 = vmatmul.msk.f32.gmra.mxu3 %vm492_vm2, %v6121_v59  ;;  %3456 = vmatmul.msk.f32.gmra.mxu0 %vm501_vm3, %v6121_v59  ;;  %v161_v33 = vld [vmem:[%s6103_s3 + $0x298] sm:$0xff]  ;;  %vm470_vm2 = vcmp.eq.s32.totalorder %v4517_v36, %v4044_v3  ;;  %vm524_vm3 = vcmp.eq.s32.totalorder %v4350_v39, %v4090_v18 }
 0x161   :  { %1780 = vmatpush.msra.mxu2 %v161_v33 }
 0x162   :  { %v1345_v7 = vpop.f32.mrf.mxu2 }
 0x163   :  { %v1346_v27 = vadd.f32 %v1345_v7, %v4670_v32  ;;  %v1455_v20 = vpop.f32.mrf.mxu3  ;;  %v177_v32 = vld [vmem:[%s6103_s3 + $0x318] sm:$0xff] }
 0x164   :  { %v1456_v42 = vadd.f32 %v1455_v20, %v1343_v37  ;;  %1893 = vmatpush.msra.mxu3 %v177_v32 }
 0x165   :  { %v1574_v2 = vpop.f32.mrf.mxu0 }
 0x166   :  { %v4795_v62 = vadd.f32 %v1568_v48, %v1456_v42  ;;  %v1241_v37 = vpop.f32.mrf.mxu1 }
 0x167   :  { %3393 = vmatmul.msk.f32.gmra.mxu2 %vm507_vm5, %v6121_v59  ;;  %3481 = vmatmul.msk.f32.gmra.mxu1 %vm446_vm6, %v6121_v59  ;;  %vm533_vm5 = vcmp.eq.s32.totalorder %v4318_v31, %v4088_v17  ;;  %vm539_vm6 = vcmp.eq.s32.totalorder %v4315_v30, %v4060_v8 }
 0x168   :  { %3424 = vmatmul.msk.f32.gmra.mxu3 %vm500_vm7, %v6121_v59  ;;  %3457 = vmatmul.msk.f32.gmra.mxu0 %vm509_vm8, %v6121_v59  ;;  %vm478_vm7 = vcmp.eq.s32.totalorder %v4517_v36, %v4109_v23  ;;  %vm532_vm8 = vcmp.eq.s32.totalorder %v4350_v39, %v4088_v17 }
 0x16a   :  { %v1348_v48 = vpop.f32.mrf.mxu2 }
 0x16b   :  { %v1349_v33 = vadd.f32 %v1348_v48, %v1235_v13  ;;  %v1458_v58 = vpop.f32.mrf.mxu3 }
 0x16c   :  { %v1459_v7 = vadd.f32 %v1458_v58, %v1346_v27 }
 0x16d   :  { %v1577_v20 = vpop.f32.mrf.mxu0 }
 0x16e   :  { %v4812_v42 = vadd.f32 %v1571_v51, %v1459_v7  ;;  %v1244_v51 = vpop.f32.mrf.mxu1  ;;  %v192_v7 = vld [vmem:[%s6103_s3 + $0x390] sm:$0xff] }
 0x16f   :  { %3394 = vmatmul.msk.f32.gmra.mxu2 %vm515_vm9, %v6121_v59  ;;  %3482 = vmatmul.msk.f32.gmra.mxu1 %vm454_vm10, %v6121_v59  ;;  %vm541_vm9 = vcmp.eq.s32.totalorder %v4318_v31, %v4060_v8  ;;  %vm547_vm10 = vcmp.eq.s32.totalorder %v4315_v30, %v4092_v19 }
 0x170   :  { %6124 = vst [vmem:[#allocation16_spill] sm:$0xff] %v4812_v42  ;;  %3425 = vmatmul.msk.f32.gmra.mxu3 %vm508_vm11, %v6121_v59  ;;  %3458 = vmatmul.msk.f32.gmra.mxu0 %vm517_vm12, %v6121_v59  ;;  %v160_v42 = vld [vmem:[%s6103_s3 + $0x290] sm:$0xff]  ;;  %vm486_vm11 = vcmp.eq.s32.totalorder %v4517_v36, %v4141_v35  ;;  %vm540_vm12 = vcmp.eq.s32.totalorder %v4350_v39, %v4060_v8 }
 0x171   :  { %2007 = vmatpush.msrb.mxu0 %v192_v7  ;;  %1781 = vmatpush.msra.mxu2 %v160_v42 }
 0x172   :  { %v1351_v13 = vpop.f32.mrf.mxu2 }
 0x173   :  { %v1352_v27 = vadd.f32 %v1351_v13, %v1238_v16  ;;  %v1461_v32 = vpop.f32.mrf.mxu3 }
 0x174   :  { %v1462_v48 = vadd.f32 %v1461_v32, %v1349_v33  ;;  %v176_v33 = vld [vmem:[%s6103_s3 + $0x310] sm:$0xff] }
 0x175   :  { %v1580_v58 = vpop.f32.mrf.mxu0  ;;  %1894 = vmatpush.msra.mxu3 %v176_v33 }
 0x176   :  { %v4832_v16 = vadd.f32 %v1574_v2, %v1462_v48 }
 0x177   :  { %3395 = vmatmul.msk.f32.gmra.mxu2 %vm523_vm13, %v6121_v59  ;;  %3483 = vmatmul.msk.f32.gmra.mxu1 %vm462_vm14, %v6121_v59  ;;  %vm549_vm13 = vcmp.eq.s32.totalorder %v4318_v31, %v4092_v19  ;;  %vm555_vm14 = vcmp.eq.s32.totalorder %v4315_v30, %v4123_v29 }
 0x178   :  { %6125 = vst [vmem:[#allocation17_spill] sm:$0xff] %v4832_v16  ;;  %3426 = vmatmul.msk.f32.gmra.mxu3 %vm516_vm15, %v6121_v59  ;;  %3459 = vmatmul.msk.f32.gmra.mxu0 %vm525_vm0, %v6121_v59  ;;  %v1247_v16 = vpop.f32.mrf.mxu1  ;;  %vm494_vm15 = vcmp.eq.s32.totalorder %v4517_v36, %v4175_v46  ;;  %vm548_vm0 = vcmp.eq.s32.totalorder %v4350_v39, %v4092_v19 }
 0x17a   :  { %v1354_v2 = vpop.f32.mrf.mxu2 }
 0x17b   :  { %v1355_v42 = vadd.f32 %v1354_v2, %v1241_v37  ;;  %v1464_v13 = vpop.f32.mrf.mxu3 }
 0x17c   :  { %v1465_v32 = vadd.f32 %v1464_v13, %v1352_v27  ;;  %v159_v13 = vld [vmem:[%s6103_s3 + $0x288] sm:$0xff] }
 0x17d   :  { %v1583_v48 = vpop.f32.mrf.mxu0  ;;  %1782 = vmatpush.msra.mxu2 %v159_v13 }
 0x17e   :  { %v4849_v7 = vadd.f32 %v1577_v20, %v1465_v32 }
 0x17f   :  { %3396 = vmatmul.msk.f32.gmra.mxu2 %vm531_vm1, %v6121_v59  ;;  %3484 = vmatmul.msk.f32.gmra.mxu1 %vm470_vm2, %v6121_v59  ;;  %vm557_vm1 = vcmp.eq.s32.totalorder %v4318_v31, %v4123_v29  ;;  %vm563_vm2 = vcmp.eq.s32.totalorder %v4315_v30, %v4170_v44 }
 0x180   :  { %6126 = vst [vmem:[#allocation18_spill] sm:$0xff] %v4849_v7  ;;  %3427 = vmatmul.msk.f32.gmra.mxu3 %vm524_vm3, %v6121_v59  ;;  %3460 = vmatmul.msk.f32.gmra.mxu0 %vm533_vm5, %v6121_v59  ;;  %vm502_vm3 = vcmp.eq.s32.totalorder %v4517_v36, %v4208_v55  ;;  %vm556_vm5 = vcmp.eq.s32.totalorder %v4350_v39, %v4123_v29 }
 0x182   :  { %v1357_v37 = vpop.f32.mrf.mxu2 }
 0x183   :  { %v1358_v27 = vadd.f32 %v1357_v37, %v1244_v51  ;;  %v1467_v33 = vpop.f32.mrf.mxu3  ;;  %v175_v51 = vld [vmem:[%s6103_s3 + $0x308] sm:$0xff] }
 0x184   :  { %v1468_v20 = vadd.f32 %v1467_v33, %v1355_v42  ;;  %v1250_v42 = vpop.f32.mrf.mxu1  ;;  %1895 = vmatpush.msra.mxu3 %v175_v51 }
 0x185   :  { %v1586_v2 = vpop.f32.mrf.mxu0 }
 0x186   :  { %v4866_v32 = vadd.f32 %v1580_v58, %v1468_v20  ;;  %v191_v58 = vld [vmem:[%s6103_s3 + $0x388] sm:$0xff] }
 0x187   :  { %3397 = vmatmul.msk.f32.gmra.mxu2 %vm539_vm6, %v6121_v59  ;;  %3485 = vmatmul.msk.f32.gmra.mxu1 %vm478_vm7, %v6121_v59  ;;  %vm565_vm6 = vcmp.eq.s32.totalorder %v4318_v31, %v4170_v44  ;;  %vm571_vm7 = vcmp.eq.s32.totalorder %v4315_v30, %v4206_v54 }
 0x188   :  { %6127 = vst [vmem:[#allocation19_spill] sm:$0xff] %v4866_v32  ;;  %3428 = vmatmul.msk.f32.gmra.mxu3 %vm532_vm8, %v6121_v59  ;;  %3461 = vmatmul.msk.f32.gmra.mxu0 %vm541_vm9, %v6121_v59  ;;  %vm510_vm8 = vcmp.eq.s32.totalorder %v4517_v36, %v4239_v63  ;;  %vm564_vm9 = vcmp.eq.s32.totalorder %v4350_v39, %v4170_v44 }
 0x189   :  { %2008 = vmatpush.msrb.mxu0 %v191_v58 }
 0x18a   :  { %v1360_v37 = vpop.f32.mrf.mxu2 }
 0x18b   :  { %v1361_v33 = vadd.f32 %v1360_v37, %v1247_v16  ;;  %v1470_v20 = vpop.f32.mrf.mxu3 }
 0x18c   :  { %v1471_v13 = vadd.f32 %v1470_v20, %v1358_v27  ;;  %v1253_v27 = vpop.f32.mrf.mxu1  ;;  %v158_v20 = vld [vmem:[%s6103_s3 + $0x280] sm:$0xff] }
 0x18d   :  { %v1589_v32 = vpop.f32.mrf.mxu0  ;;  %1783 = vmatpush.msra.mxu2 %v158_v20 }
 0x18e   :  { %v4886_v7 = vadd.f32 %v1583_v48, %v1471_v13 }
 0x18f   :  { %3398 = vmatmul.msk.f32.gmra.mxu2 %vm547_vm10, %v6121_v59  ;;  %3486 = vmatmul.msk.f32.gmra.mxu1 %vm486_vm11, %v6121_v59  ;;  %vm573_vm10 = vcmp.eq.s32.totalorder %v4318_v31, %v4206_v54  ;;  %vm579_vm11 = vcmp.eq.s32.totalorder %v4315_v30, %v4255_v4 }
 0x190   :  { %6128 = vst [vmem:[#allocation20_spill] sm:$0xff] %v4886_v7  ;;  %3429 = vmatmul.msk.f32.gmra.mxu3 %vm540_vm12, %v6121_v59  ;;  %3462 = vmatmul.msk.f32.gmra.mxu0 %vm549_vm13, %v6121_v59  ;;  %vm518_vm12 = vcmp.eq.s32.totalorder %v4517_v36, %v4269_v14  ;;  %vm572_vm13 = vcmp.eq.s32.totalorder %v4350_v39, %v4206_v54 }
 0x192   :  { %v1363_v16 = vpop.f32.mrf.mxu2 }
 0x193   :  { %v1364_v51 = vadd.f32 %v1363_v16, %v1250_v42  ;;  %v1473_v58 = vpop.f32.mrf.mxu3  ;;  %v174_v42 = vld [vmem:[%s6103_s3 + $0x300] sm:$0xff] }
 0x194   :  { %v1474_v48 = vadd.f32 %v1473_v58, %v1361_v33  ;;  %1896 = vmatpush.msra.mxu3 %v174_v42 }
 0x195   :  { %v1592_v37 = vpop.f32.mrf.mxu0 }
 0x196   :  { %v4903_v13 = vadd.f32 %v1586_v2, %v1474_v48  ;;  %v1256_v48 = vpop.f32.mrf.mxu1 }
 0x197   :  { %3399 = vmatmul.msk.f32.gmra.mxu2 %vm555_vm14, %v6121_v59  ;;  %3487 = vmatmul.msk.f32.gmra.mxu1 %vm494_vm15, %v6121_v59  ;;  %vm581_vm14 = vcmp.eq.s32.totalorder %v4318_v31, %v4255_v4  ;;  %vm587_vm15 = vcmp.eq.s32.totalorder %v4315_v30, %v4291_v22 }
 0x198   :  { %6129 = vst [vmem:[#allocation21_spill] sm:$0xff] %v4903_v13  ;;  %3430 = vmatmul.msk.f32.gmra.mxu3 %vm548_vm0, %v6121_v59  ;;  %3463 = vmatmul.msk.f32.gmra.mxu0 %vm557_vm1, %v6121_v59  ;;  %v190_v13 = vld [vmem:[%s6103_s3 + $0x380] sm:$0xff]  ;;  %vm526_vm0 = vcmp.eq.s32.totalorder %v4517_v36, %v4090_v18  ;;  %vm580_vm1 = vcmp.eq.s32.totalorder %v4350_v39, %v4255_v4 }
 0x199   :  { %2009 = vmatpush.msrb.mxu0 %v190_v13 }
 0x19a   :  { %v1366_v2 = vpop.f32.mrf.mxu2 }
 0x19b   :  { %v1367_v33 = vadd.f32 %v1366_v2, %v1253_v27  ;;  %v1476_v16 = vpop.f32.mrf.mxu3 }
 0x19c   :  { %v1477_v58 = vadd.f32 %v1476_v16, %v1364_v51 }
 0x19d   :  { %v1595_v20 = vpop.f32.mrf.mxu0 }
 0x19e   :  { %v4923_v7 = vadd.f32 %v1589_v32, %v1477_v58  ;;  %v1259_v16 = vpop.f32.mrf.mxu1 }
 0x19f   :  { %3400 = vmatmul.msk.f32.gmra.mxu2 %vm563_vm2, %v6121_v59  ;;  %3488 = vmatmul.msk.f32.gmra.mxu1 %vm502_vm3, %v6121_v59  ;;  %vm589_vm2 = vcmp.eq.s32.totalorder %v4318_v31, %v4291_v22 }
 0x1a0   :  { %6130 = vst [vmem:[#allocation22_spill] sm:$0xff] %v4923_v7  ;;  %3431 = vmatmul.msk.f32.gmra.mxu3 %vm556_vm5, %v6121_v59  ;;  %3464 = vmatmul.msk.f32.gmra.mxu0 %vm565_vm6, %v6121_v59  ;;  %vm1106_vm5 = vcmask 850944   ;;  %vm534_vm6 = vcmp.eq.s32.totalorder %v4517_v36, %v4088_v17 }
 0x1a2   :  { %v1369_v27 = vpop.f32.mrf.mxu2 }
 0x1a3   :  { %v1370_v51 = vadd.f32 %v1369_v27, %v1256_v48  ;;  %v1479_v42 = vpop.f32.mrf.mxu3 }
 0x1a4   :  { %v1480_v13 = vadd.f32 %v1479_v42, %v1367_v33 }
 0x1a5   :  { %v1598_v32 = vpop.f32.mrf.mxu0 }
 0x1a6   :  { %v4937_v2 = vadd.f32 %v1592_v37, %v1480_v13 }
 0x1a7   :  { %3401 = vmatmul.msk.f32.gmra.mxu2 %vm571_vm7, %v6121_v59  ;;  %3489 = vmatmul.msk.f32.gmra.mxu1 %vm510_vm8, %v6121_v59  ;;  %vm588_vm8 = vcmp.eq.s32.totalorder %v4350_v39, %v4291_v22 }
 0x1a8   :  { %6131 = vst [vmem:[#allocation23_spill] sm:$0xff] %v4937_v2  ;;  %3432 = vmatmul.msk.f32.gmra.mxu3 %vm564_vm9, %v6121_v59  ;;  %3465 = vmatmul.msk.f32.gmra.mxu0 %vm573_vm10, %v6121_v59  ;;  %vm542_vm10 = vcmp.eq.s32.totalorder %v4517_v36, %v4060_v8 }
 0x1aa   :  { %v1372_v33 = vpop.f32.mrf.mxu2 }
 0x1ab   :  { %v1373_v58 = vadd.f32 %v1372_v33, %v1259_v16  ;;  %v1482_v48 = vpop.f32.mrf.mxu3 }
 0x1ac   :  { %v1483_v37 = vadd.f32 %v1482_v48, %v1370_v51  ;;  %v2571_v51 = vld [vmem:[%s6104_s4 + $0x58] sm:$0xff] }
 0x1ad   :  { %v1601_v27 = vpop.f32.mrf.mxu0  ;;  %2673 = vmatpush.msra.mxu1 %v2571_v51 }
 0x1ae   :  { %v4951_v42 = vadd.f32 %v1595_v20, %v1483_v37  ;;  %v4964_v20 = vpop.f32.mrf.mxu1 }
 0x1af   :  { %3402 = vmatmul.msk.f32.gmra.mxu2 %vm579_vm11, %v6121_v59  ;;  %3490 = vmatmul.msk.f32.gmra.mxu1 %vm518_vm12, %v6121_v59 }
 0x1b0   :  { %6132 = vst [vmem:[#allocation24_spill] sm:$0xff] %v4951_v42  ;;  %3433 = vmatmul.msk.f32.gmra.mxu3 %vm572_vm13, %v6121_v59  ;;  %3466 = vmatmul.msk.f32.gmra.mxu0 %vm581_vm14, %v6121_v59  ;;  %vm550_vm14 = vcmp.eq.s32.totalorder %v4517_v36, %v4092_v19 }
 0x1b2   :  { %v1375_v13 = vpop.f32.mrf.mxu2 }
 0x1b3   :  { %v1485_v16 = vpop.f32.mrf.mxu3  ;;  %v1376_v30 = vadd.f32 %v1375_v13, %v4514_v34  ;;  %v6135_v13 = vmov 0.0  }
 0x1b4   :  { %v1486_v33 = vadd.f32 %v1485_v16, %v1373_v58 }
 0x1b5   :  { %v1604_v48 = vpop.f32.mrf.mxu0 }
 0x1b6   :  { %v4970_v37 = vadd.f32 %v1598_v32, %v1486_v33  ;;  %v4982_v32 = vadd.s32 896, %v4063_v9  ;;  %v4984_v51 = vpop.f32.mrf.mxu1 }
 0x1b7   :  { %3403 = vmatmul.msk.f32.gmra.mxu2 %vm587_vm15, %v6121_v59  ;;  %3491 = vmatmul.msk.f32.gmra.mxu1 %vm526_vm0, %v6121_v59 }
 0x1b8   :  { %6133 = vst [vmem:[#allocation25_spill] sm:$0xff] %v4970_v37  ;;  %3434 = vmatmul.msk.f32.gmra.mxu3 %vm580_vm1, %v6121_v59  ;;  %3467 = vmatmul.msk.f32.gmra.mxu0 %vm589_vm2, %v6121_v59  ;;  %v4987_v37 = vadd.s32 640, %v4063_v9  ;;  %vm345_vm3 = vcmp.eq.s32.totalorder %v4982_v32, %v4177_v47  ;;  %vm353_vm9 = vcmp.eq.s32.totalorder %v4982_v32, %v4210_v56 }
 0x1b9   :  { %vm361_vm13 = vcmp.eq.s32.totalorder %v4982_v32, %v4241_v0  ;;  %vm369_vm1 = vcmp.eq.s32.totalorder %v4982_v32, %v4271_v15  ;;  %vm558_vm2 = vcmp.eq.s32.totalorder %v4517_v36, %v4123_v29 }
 0x1ba   :  { %v1378_v58 = vpop.f32.mrf.mxu2  ;;  %vm343_vm7 = vcmp.eq.s32.totalorder %v4987_v37, %v4177_v47  ;;  %vm351_vm11 = vcmp.eq.s32.totalorder %v4987_v37, %v4210_v56  ;;  %vm359_vm15 = vcmp.eq.s32.totalorder %v4987_v37, %v4241_v0 }
 0x1bb   :  { %v1488_v16 = vpop.f32.mrf.mxu3 }
 0x1bc   :  { %v1489_v33 = vadd.f32 %v1488_v16, %v1376_v30  ;;  %v3091_v30 = vsel %vm345_vm3, 1.0, %v6135_v13  ;;  %v1379_v16 = vadd.f32 %v1378_v58, %v4534_v40  ;;  %vm367_vm3 = vcmp.eq.s32.totalorder %v4987_v37, %v4271_v15 }
 0x1bd   :  { %v1607_v31 = vpop.f32.mrf.mxu0 }
 0x1be   :  { %v4995_v34 = vadd.f32 %v1601_v27, %v1489_v33  ;;  %v5007_v27 = vpop.f32.mrf.mxu1  ;;  %v5010_v33 = vadd.s32 768, %v4063_v9  ;;  %v3099_v9 = vsel %vm353_vm9, 1.0, %v6135_v13  ;;  %vm375_vm9 = vcmp.eq.s32.totalorder %v4987_v37, %v4293_v24 }
 0x1bf   :  { %3492 = vmatmul.msk.f32.gmra.mxu1 %vm534_vm6, %v6121_v59  ;;  %3500 = vmatmul.msk.f32.vlgmr.msra.gmra.mxu2 %vm343_vm7, %v6121_v59  ;;  %vm377_vm7 = vcmp.eq.s32.totalorder %v4982_v32, %v4293_v24 }
 0x1c0   :  { %6134 = vst [vmem:[#allocation26_spill] sm:$0xff] %v4995_v34  ;;  %3435 = vmatmul.msk.f32.gmra.mxu3 %vm588_vm8, %v6121_v59  ;;  %3564 = vmatmul.msk.f32.vlgmr.msrb.gmra.mxu0 %vm1106_vm5, %v3091_v30  ;;  %v2570_v34 = vld [vmem:[%s6104_s4 + $0x50] sm:$0xff]  ;;  %vm344_vm12 = vcmp.eq.s32.totalorder %v5010_v33, %v4177_v47  ;;  %vm352_vm0 = vcmp.eq.s32.totalorder %v5010_v33, %v4210_v56 }
 0x1c1   :  { %2674 = vmatpush.msra.mxu1 %v2570_v34  ;;  %vm360_vm6 = vcmp.eq.s32.totalorder %v5010_v33, %v4241_v0  ;;  %v2569_v0 = vld [vmem:[%s6104_s4 + $0x48] sm:$0xff]  ;;  %vm566_vm8 = vcmp.eq.s32.totalorder %v4517_v36, %v4170_v44 }
 0x1c2   :  { %v1381_v42 = vpop.f32.mrf.mxu2 }
 0x1c3   :  { %v1491_v2 = vpop.f32.mrf.mxu3  ;;  %2675 = vmatpush.msra.mxu1 %v2569_v0 }
 0x1c4   :  { %v1492_v7 = vadd.f32 %v1491_v2, %v1379_v16  ;;  %v1382_v2 = vadd.f32 %v1381_v42, %v4558_v49  ;;  %v3107_v49 = vsel %vm361_vm13, 1.0, %v6135_v13  ;;  %vm383_vm13 = vcmp.eq.s32.totalorder %v4987_v37, %v4295_v25 }
 0x1c5   :  { %v1610_v39 = vpop.f32.mrf.mxu0 }
 0x1c6   :  { %v5019_v40 = vadd.f32 %v1604_v48, %v1492_v7  ;;  %v5037_v48 = vpop.f32.mrf.mxu1 }
 0x1c7   :  { %3493 = vmatmul.msk.f32.gmra.mxu1 %vm542_vm10, %v6121_v59  ;;  %3501 = vmatmul.msk.f32.gmra.mxu2 %vm351_vm11, %v6121_v59  ;;  %vm368_vm10 = vcmp.eq.s32.totalorder %v5010_v33, %v4271_v15  ;;  %vm385_vm11 = vcmp.eq.s32.totalorder %v4982_v32, %v4295_v25 }
 0x1c8   :  { %3532 = vmatmul.msk.f32.vlgmr.msra.gmra.mxu3 %vm344_vm12, %v6121_v59  ;;  %3565 = vmatmul.msk.f32.gmra.mxu0 %vm1106_vm5, %v3099_v9  ;;  %vm574_vm12 = vcmp.eq.s32.totalorder %v4517_v36, %v4206_v54 }
 0x1ca   :  { %v1384_v58 = vpop.f32.mrf.mxu2 }
 0x1cb   :  { %v1494_v30 = vpop.f32.mrf.mxu3  ;;  %v1385_v42 = vadd.f32 %v1384_v58, %v4576_v53  ;;  %v3115_v53 = vsel %vm369_vm1, 1.0, %v6135_v13  ;;  %vm391_vm1 = vcmp.eq.s32.totalorder %v4987_v37, %v4312_v28 }
 0x1cc   :  { %v1495_v34 = vadd.f32 %v1494_v30, %v1382_v2 }
 0x1cd   :  { %v1613_v7 = vpop.f32.mrf.mxu0 }
 0x1ce   :  { %v5035_v47 = vadd.f32 %v1607_v31, %v1495_v34  ;;  %v5062_v58 = vpop.f32.mrf.mxu1 }
 0x1cf   :  { %3494 = vmatmul.msk.f32.gmra.mxu1 %vm550_vm14, %v6121_v59  ;;  %3502 = vmatmul.msk.f32.gmra.mxu2 %vm359_vm15, %v6121_v59  ;;  %vm376_vm14 = vcmp.eq.s32.totalorder %v5010_v33, %v4293_v24  ;;  %vm393_vm15 = vcmp.eq.s32.totalorder %v4982_v32, %v4312_v28 }
 0x1d0   :  { %3533 = vmatmul.msk.f32.gmra.mxu3 %vm352_vm0, %v6121_v59  ;;  %3566 = vmatmul.msk.f32.gmra.mxu0 %vm1106_vm5, %v3107_v49  ;;  %vm582_vm0 = vcmp.eq.s32.totalorder %v4517_v36, %v4255_v4 }
 0x1d2   :  { %v1387_v16 = vpop.f32.mrf.mxu2 }
 0x1d3   :  { %v1497_v31 = vpop.f32.mrf.mxu3  ;;  %v1388_v30 = vadd.f32 %v1387_v16, %v4603_v1  ;;  %v3123_v1 = vsel %vm377_vm7, 1.0, %v6135_v13  ;;  %vm399_vm7 = vcmp.eq.s32.totalorder %v4987_v37, %v4347_v38 }
 0x1d4   :  { %v1498_v9 = vadd.f32 %v1497_v31, %v1385_v42 }
 0x1d5   :  { %v1616_v2 = vpop.f32.mrf.mxu0 }
 0x1d6   :  { %v5053_v56 = vadd.f32 %v1610_v39, %v1498_v9 }
 0x1d7   :  { %3495 = vmatmul.msk.f32.gmra.mxu1 %vm558_vm2, %v6121_v59  ;;  %3503 = vmatmul.msk.f32.gmra.mxu2 %vm367_vm3, %v6121_v59  ;;  %vm384_vm2 = vcmp.eq.s32.totalorder %v5010_v33, %v4295_v25  ;;  %vm401_vm3 = vcmp.eq.s32.totalorder %v4982_v32, %v4347_v38 }
 0x1d8   :  { %3534 = vmatmul.msk.f32.gmra.mxu3 %vm360_vm6, %v6121_v59  ;;  %3567 = vmatmul.msk.f32.gmra.mxu0 %vm1106_vm5, %v3115_v53  ;;  %v5084_v53 = vpop.f32.mrf.mxu1  ;;  %vm590_vm6 = vcmp.eq.s32.totalorder %v4517_v36, %v4291_v22 }
 0x1da   :  { %v1390_v34 = vpop.f32.mrf.mxu2 }
 0x1db   :  { %v1500_v39 = vpop.f32.mrf.mxu3  ;;  %v1391_v16 = vadd.f32 %v1390_v34, %v4621_v12  ;;  %v3131_v12 = vsel %vm385_vm11, 1.0, %v6135_v13  ;;  %vm400_vm11 = vcmp.eq.s32.totalorder %v5010_v33, %v4347_v38 }
 0x1dc   :  { %v1501_v49 = vadd.f32 %v1500_v39, %v1388_v30 }
 0x1dd   :  { %v1619_v42 = vpop.f32.mrf.mxu0 }
 0x1de   :  { %v5074_v31 = vadd.f32 %v1613_v7, %v1501_v49 }
 0x1df   :  { %3496 = vmatmul.msk.f32.gmra.mxu1 %vm566_vm8, %v6121_v59  ;;  %3504 = vmatmul.msk.f32.gmra.mxu2 %vm375_vm9, %v6121_v59  ;;  %vm392_vm8 = vcmp.eq.s32.totalorder %v5010_v33, %v4312_v28  ;;  %vm409_vm9 = vcmp.eq.s32.totalorder %v4982_v32, %v4376_v45 }
 0x1e0   :  { %3535 = vmatmul.msk.f32.gmra.mxu3 %vm368_vm10, %v6121_v59  ;;  %3568 = vmatmul.msk.f32.gmra.mxu0 %vm1106_vm5, %v3123_v1  ;;  %vm407_vm10 = vcmp.eq.s32.totalorder %v4987_v37, %v4376_v45  ;;  %v3155_v28 = vsel %vm409_vm9, 1.0, %v6135_v13  ;;  %vm432_vm9 = vcmp.eq.s32.totalorder %v5010_v33, %v4454_v6 }
 0x1e2   :  { %v1393_v9 = vpop.f32.mrf.mxu2 }
 0x1e3   :  { %v1503_v7 = vpop.f32.mrf.mxu3  ;;  %v1394_v34 = vadd.f32 %v1393_v9, %v4648_v43  ;;  %v3139_v43 = vsel %vm393_vm15, 1.0, %v6135_v13  ;;  %v2568_v9 = vld [vmem:[%s6104_s4 + $0x40] sm:$0xff]  ;;  %vm425_vm15 = vcmp.eq.s32.totalorder %v4982_v32, %v4431_v61 }
 0x1e4   :  { %v1504_v30 = vadd.f32 %v1503_v7, %v1391_v16  ;;  %2676 = vmatpush.msra.mxu1 %v2568_v9 }
 0x1e5   :  { %v1622_v39 = vpop.f32.mrf.mxu0 }
 0x1e6   :  { %v5092_v15 = vadd.f32 %v1616_v2, %v1504_v30  ;;  %v5104_v2 = vpop.f32.mrf.mxu1 }
 0x1e7   :  { %3497 = vmatmul.msk.f32.gmra.mxu1 %vm574_vm12, %v6121_v59  ;;  %3505 = vmatmul.msk.f32.gmra.mxu2 %vm383_vm13, %v6121_v59  ;;  %vm417_vm12 = vcmp.eq.s32.totalorder %v4982_v32, %v4402_v52  ;;  %vm415_vm13 = vcmp.eq.s32.totalorder %v4987_v37, %v4402_v52 }
 0x1e8   :  { %3536 = vmatmul.msk.f32.gmra.mxu3 %vm376_vm14, %v6121_v59  ;;  %3569 = vmatmul.msk.f32.gmra.mxu0 %vm1106_vm5, %v3131_v12  ;;  %vm408_vm14 = vcmp.eq.s32.totalorder %v5010_v33, %v4376_v45  ;;  %v3171_v45 = vsel %vm425_vm15, 1.0, %v6135_v13  ;;  %vm448_vm15 = vcmp.eq.s32.totalorder %v5010_v33, %v4494_v26 }
 0x1ea   :  { %v1396_v49 = vpop.f32.mrf.mxu2 }
 0x1eb   :  { %v1506_v0 = vpop.f32.mrf.mxu3 }
 0x1ec   :  { %v1507_v1 = vadd.f32 %v1506_v0, %v1394_v34 }
 0x1ed   :  { %v1625_v16 = vpop.f32.mrf.mxu0 }
 0x1ee   :  { %v5110_v24 = vadd.f32 %v1619_v42, %v1507_v1  ;;  %v1397_v42 = vadd.f32 %v1396_v49, %v4666_v60  ;;  %v5131_v0 = vpop.f32.mrf.mxu1  ;;  %v3147_v60 = vsel %vm401_vm3, 1.0, %v6135_v13  ;;  %vm431_vm3 = vcmp.eq.s32.totalorder %v4987_v37, %v4454_v6 }
 0x1ef   :  { %3498 = vmatmul.msk.f32.gmra.mxu1 %vm582_vm0, %v6121_v59  ;;  %3506 = vmatmul.msk.f32.gmra.mxu2 %vm391_vm1, %v6121_v59  ;;  %vm423_vm0 = vcmp.eq.s32.totalorder %v4987_v37, %v4431_v61  ;;  %vm416_vm1 = vcmp.eq.s32.totalorder %v5010_v33, %v4402_v52 }
 0x1f0   :  { %3537 = vmatmul.msk.f32.gmra.mxu3 %vm384_vm2, %v6121_v59  ;;  %3570 = vmatmul.msk.f32.gmra.mxu0 %vm1106_vm5, %v3139_v43  ;;  %vm433_vm2 = vcmp.eq.s32.totalorder %v4982_v32, %v4454_v6 }
 0x1f1   :  { %v3179_v52 = vsel %vm433_vm2, 1.0, %v6135_v13  ;;  %vm456_vm2 = vcmp.eq.s32.totalorder %v5010_v33, %v4067_v11 }
 0x1f2   :  { %v1399_v7 = vpop.f32.mrf.mxu2 }
 0x1f3   :  { %v1509_v30 = vpop.f32.mrf.mxu3  ;;  %v1400_v36 = vadd.f32 %v1399_v7, %v4693_v5 }
 0x1f4   :  { %v1510_v12 = vadd.f32 %v1509_v30, %v1397_v42 }
 0x1f5   :  { %v1628_v25 = vpop.f32.mrf.mxu0 }
 0x1f6   :  { %v5129_v34 = vadd.f32 %v1622_v39, %v1510_v12  ;;  %v2567_v12 = vld [vmem:[%s6104_s4 + $0x38] sm:$0xff] }
 0x1f7   :  { %3499 = vmatmul.msk.f32.gmra.mxu1 %vm590_vm6, %v6121_v59  ;;  %3507 = vmatmul.msk.f32.gmra.mxu2 %vm399_vm7, %v6121_v59  ;;  %vm424_vm6 = vcmp.eq.s32.totalorder %v5010_v33, %v4431_v61  ;;  %vm441_vm7 = vcmp.eq.s32.totalorder %v4982_v32, %v4480_v21 }
 0x1f8   :  { %3538 = vmatmul.msk.f32.gmra.mxu3 %vm392_vm8, %v6121_v59  ;;  %3571 = vmatmul.msk.f32.gmra.mxu0 %vm1106_vm5, %v3147_v60  ;;  %vm439_vm8 = vcmp.eq.s32.totalorder %v4987_v37, %v4480_v21 }
 0x1f9   :  { %2677 = vmatpush.msra.mxu1 %v2567_v12 }
 0x1fa   :  { %v1402_v49 = vpop.f32.mrf.mxu2 }
 0x1fb   :  { %v1512_v39 = vpop.f32.mrf.mxu3  ;;  %v1403_v5 = vadd.f32 %v1402_v49, %v4536_v41  ;;  %v3163_v41 = vsel %vm417_vm12, 1.0, %v6135_v13  ;;  %vm440_vm12 = vcmp.eq.s32.totalorder %v5010_v33, %v4480_v21 }
 0x1fc   :  { %v1513_v1 = vadd.f32 %v1512_v39, %v1400_v36 }
 0x1fd   :  { %v1631_v43 = vpop.f32.mrf.mxu0 }
 0x1fe   :  { %v5145_v9 = vadd.f32 %v1625_v16, %v1513_v1 }
 0x1ff   :  { %3508 = vmatmul.msk.f32.gmra.mxu2 %vm407_vm10, %v6121_v59  ;;  %vm449_vm10 = vcmp.eq.s32.totalorder %v4982_v32, %v4494_v26 }
 0x200   :  { %3539 = vmatmul.msk.f32.gmra.mxu3 %vm400_vm11, %v6121_v59  ;;  %3572 = vmatmul.msk.f32.gmra.mxu0 %vm1106_vm5, %v3155_v28  ;;  %vm447_vm11 = vcmp.eq.s32.totalorder %v4987_v37, %v4494_v26  ;;  %v3195_v6 = vsel %vm449_vm10, 1.0, %v6135_v13  ;;  %vm472_vm10 = vcmp.eq.s32.totalorder %v5010_v33, %v4044_v3 }
 0x202   :  { %v1405_v42 = vpop.f32.mrf.mxu2 }
 0x203   :  { %v1515_v7 = vpop.f32.mrf.mxu3  ;;  %v1406_v60 = vadd.f32 %v1405_v42, %v4560_v50 }
 0x204   :  { %v1516_v30 = vadd.f32 %v1515_v7, %v1403_v5 }
 0x205   :  { %v1634_v16 = vpop.f32.mrf.mxu0 }
 0x206   :  { %v5161_v38 = vadd.f32 %v1628_v25, %v1516_v30 }
 0x207   :  { %3509 = vmatmul.msk.f32.gmra.mxu2 %vm415_vm13, %v6121_v59  ;;  %vm457_vm13 = vcmp.eq.s32.totalorder %v4982_v32, %v4067_v11 }
 0x208   :  { %3540 = vmatmul.msk.f32.gmra.mxu3 %vm408_vm14, %v6121_v59  ;;  %3573 = vmatmul.msk.f32.gmra.mxu0 %vm1106_vm5, %v3163_v41  ;;  %vm455_vm14 = vcmp.eq.s32.totalorder %v4987_v37, %v4067_v11  ;;  %v3203_v21 = vsel %vm457_vm13, 1.0, %v6135_v13  ;;  %vm480_vm13 = vcmp.eq.s32.totalorder %v5010_v33, %v4109_v23 }
 0x20a   :  { %v1408_v36 = vpop.f32.mrf.mxu2 }
 0x20b   :  { %v1518_v49 = vpop.f32.mrf.mxu3  ;;  %v1409_v50 = vadd.f32 %v1408_v36, %v4578_v57  ;;  %v6136_v57 = vld [vmem:[#allocation7_spill] sm:$0xff] }
 0x20c   :  { %v1519_v39 = vadd.f32 %v1518_v49, %v1406_v60  ;;  %v3187_v49 = vsel %vm441_vm7, 1.0, %v6135_v13  ;;  %vm464_vm7 = vcmp.eq.s32.totalorder %v5010_v33, %v4065_v10 }
 0x20d   :  { %v1637_v25 = vpop.f32.mrf.mxu0 }
 0x20e   :  { %v5174_v1 = vadd.f32 %v1631_v43, %v1519_v39  ;;  %v6137_v39 = vld [vmem:[#allocation8_spill] sm:$0xff] }
 0x20f   :  { %3510 = vmatmul.msk.f32.gmra.mxu2 %vm423_vm0, %v6121_v59  ;;  %vm465_vm0 = vcmp.eq.s32.totalorder %v4982_v32, %v4065_v10 }
 0x210   :  { %3541 = vmatmul.msk.f32.gmra.mxu3 %vm416_vm1, %v6121_v59  ;;  %3574 = vmatmul.msk.f32.gmra.mxu0 %vm1106_vm5, %v3171_v45  ;;  %vm463_vm1 = vcmp.eq.s32.totalorder %v4987_v37, %v4065_v10  ;;  %v2564_v10 = vld [vmem:[%s6104_s4 + $0x20] sm:$0xff] }
 0x212   :  { %v1411_v28 = vpop.f32.mrf.mxu2 }
 0x213   :  { %v1521_v5 = vpop.f32.mrf.mxu3  ;;  %v1412_v30 = vadd.f32 %v1411_v28, %v6136_v57 }
 0x214   :  { %v1522_v42 = vadd.f32 %v1521_v5, %v1409_v50 }
 0x215   :  { %v1640_v43 = vpop.f32.mrf.mxu0 }
 0x216   :  { %v5187_v7 = vadd.f32 %v1634_v16, %v1522_v42  ;;  %v2566_v16 = vld [vmem:[%s6104_s4 + $0x30] sm:$0xff] }
 0x217   :  { %3511 = vmatmul.msk.f32.gmra.mxu2 %vm431_vm3, %v6121_v59  ;;  %2678 = vmatpush.msra.mxu1 %v2566_v16  ;;  %v2565_v16 = vld [vmem:[%s6104_s4 + $0x28] sm:$0xff]  ;;  %vm473_vm3 = vcmp.eq.s32.totalorder %v4982_v32, %v4044_v3 }
 0x218   :  { %3542 = vmatmul.msk.f32.gmra.mxu3 %vm424_vm6, %v6121_v59  ;;  %3575 = vmatmul.msk.f32.gmra.mxu0 %vm1106_vm5, %v3179_v52  ;;  %v6138_v52 = vld [vmem:[#allocation9_spill] sm:$0xff]  ;;  %vm471_vm6 = vcmp.eq.s32.totalorder %v4987_v37, %v4044_v3  ;;  %v3219_v11 = vsel %vm473_vm3, 1.0, %v6135_v13  ;;  %vm505_vm3 = vcmp.eq.s32.totalorder %v4982_v32, %v4208_v55 }
 0x219   :  { %2679 = vmatpush.msra.mxu1 %v2565_v16 }
 0x21a   :  { %v1414_v12 = vpop.f32.mrf.mxu2 }
 0x21b   :  { %v1524_v41 = vpop.f32.mrf.mxu3  ;;  %v1415_v45 = vadd.f32 %v1414_v12, %v6137_v39  ;;  %2680 = vmatpush.msra.mxu1 %v2564_v10 }
 0x21c   :  { %v1525_v60 = vadd.f32 %v1524_v41, %v1412_v30 }
 0x21d   :  { %v1643_v36 = vpop.f32.mrf.mxu0 }
 0x21e   :  { %v5203_v61 = vadd.f32 %v1637_v25, %v1525_v60 }
 0x21f   :  { %3512 = vmatmul.msk.f32.gmra.mxu2 %vm439_vm8, %v6121_v59  ;;  %vm481_vm8 = vcmp.eq.s32.totalorder %v4982_v32, %v4109_v23 }
 0x220   :  { %3543 = vmatmul.msk.f32.gmra.mxu3 %vm432_vm9, %v6121_v59  ;;  %3576 = vmatmul.msk.f32.gmra.mxu0 %vm1106_vm5, %v3187_v49  ;;  %v6139_v49 = vld [vmem:[#allocation10_spill] sm:$0xff]  ;;  %vm479_vm9 = vcmp.eq.s32.totalorder %v4987_v37, %v4109_v23  ;;  %v5303_v23 = vpop.f32.mrf.mxu1 }
 0x222   :  { %v1417_v50 = vpop.f32.mrf.mxu2 }
 0x223   :  { %v1527_v28 = vpop.f32.mrf.mxu3  ;;  %v1418_v57 = vadd.f32 %v1417_v50, %v6138_v52 }
 0x224   :  { %v1528_v5 = vadd.f32 %v1527_v28, %v1415_v45 }
 0x225   :  { %v1646_v25 = vpop.f32.mrf.mxu0 }
 0x226   :  { %v5216_v42 = vadd.f32 %v1640_v43, %v1528_v5  ;;  %v3211_v5 = vsel %vm465_vm0, 1.0, %v6135_v13  ;;  %vm488_vm0 = vcmp.eq.s32.totalorder %v5010_v33, %v4141_v35 }
 0x227   :  { %3513 = vmatmul.msk.f32.gmra.mxu2 %vm447_vm11, %v6121_v59  ;;  %vm489_vm11 = vcmp.eq.s32.totalorder %v4982_v32, %v4141_v35 }
 0x228   :  { %3544 = vmatmul.msk.f32.gmra.mxu3 %vm440_vm12, %v6121_v59  ;;  %3577 = vmatmul.msk.f32.gmra.mxu0 %vm1106_vm5, %v3195_v6  ;;  %v6140_v6 = vld [vmem:[#allocation11_spill] sm:$0xff]  ;;  %vm487_vm12 = vcmp.eq.s32.totalorder %v4987_v37, %v4141_v35  ;;  %v3235_v3 = vsel %vm489_vm11, 1.0, %v6135_v13  ;;  %vm521_vm11 = vcmp.eq.s32.totalorder %v4982_v32, %v4269_v14 }
 0x22a   :  { %v1420_v30 = vpop.f32.mrf.mxu2 }
 0x22b   :  { %v1530_v12 = vpop.f32.mrf.mxu3  ;;  %v1421_v39 = vadd.f32 %v1420_v30, %v6139_v49 }
 0x22c   :  { %v1531_v41 = vadd.f32 %v1530_v12, %v1418_v57 }
 0x22d   :  { %v1649_v43 = vpop.f32.mrf.mxu0 }
 0x22e   :  { %v5229_v60 = vadd.f32 %v1643_v36, %v1531_v41 }
 0x22f   :  { %3514 = vmatmul.msk.f32.gmra.mxu2 %vm455_vm14, %v6121_v59  ;;  %vm497_vm14 = vcmp.eq.s32.totalorder %v4982_v32, %v4175_v46 }
 0x230   :  { %3545 = vmatmul.msk.f32.gmra.mxu3 %vm448_vm15, %v6121_v59  ;;  %3578 = vmatmul.msk.f32.gmra.mxu0 %vm1106_vm5, %v3203_v21  ;;  %v6141_v21 = vld [vmem:[#allocation12_spill] sm:$0xff]  ;;  %vm495_vm15 = vcmp.eq.s32.totalorder %v4987_v37, %v4175_v46 }
 0x232   :  { %v1423_v36 = vpop.f32.mrf.mxu2 }
 0x233   :  { %v1533_v45 = vpop.f32.mrf.mxu3  ;;  %v1424_v52 = vadd.f32 %v1423_v36, %v6140_v6 }
 0x234   :  { %v1534_v50 = vadd.f32 %v1533_v45, %v1421_v39 }
 0x235   :  { %v1652_v26 = vpop.f32.mrf.mxu0 }
 0x236   :  { %v5245_v28 = vadd.f32 %v1646_v25, %v1534_v50  ;;  %v3227_v50 = vsel %vm481_vm8, 1.0, %v6135_v13  ;;  %vm513_vm8 = vcmp.eq.s32.totalorder %v4982_v32, %v4239_v63 }
 0x237   :  { %3515 = vmatmul.msk.f32.gmra.mxu2 %vm463_vm1, %v6121_v59 }
 0x238   :  { %3546 = vmatmul.msk.f32.gmra.mxu3 %vm456_vm2, %v6121_v59  ;;  %3579 = vmatmul.msk.f32.gmra.mxu0 %vm1106_vm5, %v3211_v5 }
 0x23a   :  { %v1426_v57 = vpop.f32.mrf.mxu2 }
 0x23b   :  { %v1536_v30 = vpop.f32.mrf.mxu3  ;;  %v1427_v16 = vadd.f32 %v1426_v57, %v6141_v21 }
 0x23c   :  { %v1537_v12 = vadd.f32 %v1536_v30, %v1424_v52  ;;  %v6142_v52 = vld [vmem:[#allocation13_spill] sm:$0xff] }
 0x23d   :  { %v2011_v25 = vpop.f32.mrf.mxu0  ;;  %v1673_v57 = vadd.f32 %v4964_v20, %v6142_v52 }
 0x23e   :  { %v5258_v41 = vadd.f32 %v1649_v43, %v1537_v12  ;;  %v6143_v12 = vld [vmem:[#allocation14_spill] sm:$0xff] }
 0x23f   :  { %3516 = vmatmul.msk.f32.gmra.mxu2 %vm471_vm6, %v6121_v59  ;;  %vm503_vm6 = vcmp.eq.s32.totalorder %v4987_v37, %v4208_v55 }
 0x240   :  { %3547 = vmatmul.msk.f32.gmra.mxu3 %vm464_vm7, %v6121_v59  ;;  %3580 = vmatmul.msk.f32.gmra.mxu0 %vm1106_vm5, %v3219_v11  ;;  %v1676_v11 = vadd.f32 %v4984_v51, %v6143_v12  ;;  %vm496_vm7 = vcmp.eq.s32.totalorder %v5010_v33, %v4175_v46 }
 0x242   :  { %v1785_v49 = vpop.f32.mrf.mxu2 }
 0x243   :  { %v1539_v39 = vpop.f32.mrf.mxu3  ;;  %v1786_v30 = vadd.f32 %v1785_v49, %v1673_v57 }
 0x244   :  { %v1540_v36 = vadd.f32 %v1539_v39, %v1427_v16  ;;  %v6144_v39 = vlaneseq }
 0x245   :  { %v2014_v43 = vpop.f32.mrf.mxu0 }
 0x246   :  { %v5274_v45 = vadd.f32 %v1652_v26, %v1540_v36  ;;  %v5297_v36 = vshrl.u32 %v6144_v39, 7  ;;  %v2563_v39 = vld [vmem:[%s6104_s4 + $0x18] sm:$0xff] }
 0x247   :  { %3517 = vmatmul.msk.f32.gmra.mxu2 %vm479_vm9, %v6121_v59  ;;  %2681 = vmatpush.msra.mxu1 %v2563_v39  ;;  %vm511_vm9 = vcmp.eq.s32.totalorder %v4987_v37, %v4239_v63 }
 0x248   :  { %3548 = vmatmul.msk.f32.gmra.mxu3 %vm472_vm10, %v6121_v59  ;;  %3581 = vmatmul.msk.f32.gmra.mxu0 %vm1106_vm5, %v3227_v50  ;;  %vm2206_vm1 = vcmp.lt.s32.totalorder %v5297_v36, 6  ;;  %vm2141_vm2 = vcmp.lt.s32.totalorder %v5297_v36, 7  ;;  %vm504_vm10 = vcmp.eq.s32.totalorder %v5010_v33, %v4208_v55 }
 0x24a   :  { %v1788_v5 = vpop.f32.mrf.mxu2 }
 0x24b   :  { %v1898_v6 = vpop.f32.mrf.mxu3  ;;  %v1789_v20 = vadd.f32 %v1788_v5, %v1676_v11  ;;  %v6145_v5 = vld [vmem:[#allocation15_spill] sm:$0xff] }
 0x24c   :  { %v1899_v21 = vadd.f32 %v1898_v6, %v1786_v30  ;;  %v1679_v52 = vadd.f32 %v5007_v27, %v6145_v5  ;;  %v3251_v5 = vsel %vm505_vm3, 1.0, %v6135_v13  ;;  %vm537_vm3 = vcmp.eq.s32.totalorder %v4982_v32, %v4088_v17 }
 0x24d   :  { %v2017_v26 = vpop.f32.mrf.mxu0 }
 0x24e   :  { %v5299_v10 = vadd.f32 %v2011_v25, %v1899_v21  ;;  %v3243_v25 = vsel %vm497_vm14, 1.0, %v6135_v13  ;;  %vm529_vm14 = vcmp.eq.s32.totalorder %v4982_v32, %v4090_v18 }
 0x24f   :  { %3518 = vmatmul.msk.f32.gmra.mxu2 %vm487_vm12, %v6121_v59  ;;  %vm519_vm12 = vcmp.eq.s32.totalorder %v4987_v37, %v4269_v14 }
 0x250   :  { %3549 = vmatmul.msk.f32.gmra.mxu3 %vm480_vm13, %v6121_v59  ;;  %3582 = vmatmul.msk.f32.gmra.mxu0 %vm1106_vm5, %v3235_v3  ;;  %v2107_v35 = vrot.slane %v5299_v10, 1  ;;  %vm512_vm13 = vcmp.eq.s32.totalorder %v5010_v33, %v4239_v63 }
 0x252   :  { %v1791_v16 = vpop.f32.mrf.mxu2 }
 0x253   :  { %v1901_v49 = vpop.f32.mrf.mxu3  ;;  %v1792_v30 = vadd.f32 %v1791_v16, %v1679_v52 }
 0x254   :  { %v1902_v50 = vadd.f32 %v1901_v49, %v1789_v20 }
 0x255   :  { %v2020_v51 = vpop.f32.mrf.mxu0 }
 0x256   :  { %v5305_v6 = vadd.f32 %v2014_v43, %v1902_v50  ;;  %v2174_v43 = vrot.slane %v5299_v10, 2  ;;  %v5342_v50 = vpop.f32.mrf.mxu1 }
 0x257   :  { %3519 = vmatmul.msk.f32.gmra.mxu2 %vm495_vm15, %v6121_v59  ;;  %vm527_vm15 = vcmp.eq.s32.totalorder %v4987_v37, %v4090_v18 }
 0x258   :  { %3550 = vmatmul.msk.f32.gmra.mxu3 %vm488_vm0, %v6121_v59  ;;  %3583 = vmatmul.msk.f32.gmra.mxu0 %vm1106_vm5, %v3243_v25  ;;  %v2175_v57 = vrot.slane %v5305_v6, 2  ;;  %v2108_v27 = vrot.slane %v5305_v6, 1  ;;  %vm520_vm0 = vcmp.eq.s32.totalorder %v5010_v33, %v4269_v14 }
 0x25a   :  { %v1794_v3 = vpop.f32.mrf.mxu2  ;;  %v2237_v12 = vsel %vm2206_vm1, %v2174_v43, %v2175_v57  ;;  %v2172_v11 = vsel %vm2141_vm2, %v2107_v35, %v2108_v27 }
 0x25b   :  { %v1904_v21 = vpop.f32.mrf.mxu3  ;;  %2399 = vrot.lane.b32.xlu2 %v2237_v12, %s3717_s0  ;;  %2271 = vrot.lane.b32.xlu1 %v2172_v11, %s3718_s28 }
 0x25c   :  { %v1905_v20 = vadd.f32 %v1904_v21, %v1792_v30 }
 0x25d   :  { %v2023_v16 = vpop.f32.mrf.mxu0 }
 0x25e   :  { %v5335_v49 = vadd.f32 %v2017_v26, %v1905_v20  ;;  %v1682_v26 = vadd.f32 %v5037_v48, %v4795_v62 }
 0x25f   :  { %3520 = vmatmul.msk.f32.gmra.mxu2 %vm503_vm6, %v6121_v59  ;;  %vm535_vm6 = vcmp.eq.s32.totalorder %v4987_v37, %v4088_v17 }
 0x260   :  { %3551 = vmatmul.msk.f32.gmra.mxu3 %vm496_vm7, %v6121_v59  ;;  %3584 = vmatmul.msk.f32.gmra.mxu0 %vm1106_vm5, %v3251_v5  ;;  %v2109_v52 = vrot.slane %v5335_v49, 1  ;;  %v2176_v25 = vrot.slane %v5335_v49, 2  ;;  %v1795_v30 = vadd.f32 %v1794_v3, %v1682_v26  ;;  %v5376_v5 = vpop.f32.mrf.mxu1  ;;  %vm528_vm7 = vcmp.eq.s32.totalorder %v5010_v33, %v4090_v18 }
 0x262   :  { %v1797_v12 = vpop.f32.mrf.mxu2  ;;  %v2171_v11 = vsel %vm2141_vm2, %v2108_v27, %v2109_v52  ;;  %v2236_v46 = vsel %vm2206_vm1, %v2175_v57, %v2176_v25  ;;  %v3259_v57 = vsel %vm513_vm8, 1.0, %v6135_v13  ;;  %v6146_v27 = vld [vmem:[#allocation16_spill] sm:$0xff]  ;;  %vm545_vm8 = vcmp.eq.s32.totalorder %v4982_v32, %v4060_v8 }
 0x263   :  { %v1907_v21 = vpop.f32.mrf.mxu3  ;;  %2273 = vrot.lane.b32.xlu0 %v2171_v11, %s3718_s28  ;;  %2401 = vrot.lane.b32.xlu1 %v2236_v46, %s3717_s0  ;;  %v1685_v3 = vadd.f32 %v5062_v58, %v6146_v27  ;;  %v2562_v27 = vld [vmem:[%s6104_s4 + $0x10] sm:$0xff] }
 0x264   :  { %v1908_v62 = vadd.f32 %v1907_v21, %v1795_v30  ;;  %2682 = vmatpush.msra.mxu1 %v2562_v27 }
 0x265   :  { %v2026_v48 = vpop.f32.mrf.mxu0  ;;  %v1798_v26 = vadd.f32 %v1797_v12, %v1685_v3 }
 0x266   :  { %v5362_v20 = vadd.f32 %v2020_v51, %v1908_v62 }
 0x267   :  { %3521 = vmatmul.msk.f32.gmra.mxu2 %vm511_vm9, %v6121_v59  ;;  %vm543_vm9 = vcmp.eq.s32.totalorder %v4987_v37, %v4060_v8 }
 0x268   :  { %3552 = vmatmul.msk.f32.gmra.mxu3 %vm504_vm10, %v6121_v59  ;;  %3585 = vmatmul.msk.f32.gmra.mxu0 %vm1106_vm5, %v3259_v57  ;;  %v2177_v51 = vrot.slane %v5362_v20, 2  ;;  %v2110_v39 = vrot.slane %v5362_v20, 1  ;;  %vm536_vm10 = vcmp.eq.s32.totalorder %v5010_v33, %v4088_v17 }
 0x26a   :  { %v1800_v30 = vpop.f32.mrf.mxu2  ;;  %v2235_v55 = vsel %vm2206_vm1, %v2176_v25, %v2177_v51  ;;  %v2170_v11 = vsel %vm2141_vm2, %v2109_v52, %v2110_v39  ;;  %v3267_v52 = vsel %vm521_vm11, 1.0, %v6135_v13  ;;  %v6147_v25 = vld [vmem:[#allocation17_spill] sm:$0xff]  ;;  %vm553_vm11 = vcmp.eq.s32.totalorder %v4982_v32, %v4092_v19 }
 0x26b   :  { %v1910_v46 = vpop.f32.mrf.mxu3  ;;  %2403 = vrot.lane.b32.xlu0 %v2235_v55, %s3717_s0  ;;  %2275 = vrot.lane.b32.xlu2 %v2170_v11, %s3718_s28  ;;  %v1688_v12 = vadd.f32 %v5084_v53, %v6147_v25  ;;  %v5407_v55 = vpop.f32.mrf.mxu1 }
 0x26c   :  { %v1911_v58 = vadd.f32 %v1910_v46, %v1798_v26 }
 0x26d   :  { %v2029_v21 = vpop.f32.mrf.mxu0  ;;  %v1801_v3 = vadd.f32 %v1800_v30, %v1688_v12 }
 0x26e   :  { %v5386_v62 = vadd.f32 %v2023_v16, %v1911_v58 }
 0x26f   :  { %3522 = vmatmul.msk.f32.gmra.mxu2 %vm519_vm12, %v6121_v59  ;;  %vm551_vm12 = vcmp.eq.s32.totalorder %v4987_v37, %v4092_v19 }
 0x270   :  { %3553 = vmatmul.msk.f32.gmra.mxu3 %vm512_vm13, %v6121_v59  ;;  %3586 = vmatmul.msk.f32.gmra.mxu0 %vm1106_vm5, %v3267_v52  ;;  %v2178_v16 = vrot.slane %v5386_v62, 2  ;;  %v2111_v57 = vrot.slane %v5386_v62, 1  ;;  %vm544_vm13 = vcmp.eq.s32.totalorder %v5010_v33, %v4060_v8 }
 0x272   :  { %v1803_v63 = vpop.f32.mrf.mxu2  ;;  %v2234_v26 = vsel %vm2206_vm1, %v2177_v51, %v2178_v16  ;;  %v2169_v53 = vsel %vm2141_vm2, %v2110_v39, %v2111_v57  ;;  %v3275_v51 = vsel %vm529_vm14, 1.0, %v6135_v13  ;;  %v6148_v39 = vld [vmem:[#allocation18_spill] sm:$0xff]  ;;  %vm561_vm14 = vcmp.eq.s32.totalorder %v4982_v32, %v4123_v29 }
 0x273   :  { %v1913_v11 = vpop.f32.mrf.mxu3  ;;  %2405 = vrot.lane.b32.xlu2 %v2234_v26, %s3717_s0  ;;  %2277 = vrot.lane.b32.xlu1 %v2169_v53, %s3718_s28  ;;  %v1691_v52 = vadd.f32 %v5104_v2, %v6148_v39  ;;  %v5435_v53 = vpop.f32.mrf.mxu1 }
 0x274   :  { %v1914_v46 = vadd.f32 %v1913_v11, %v1801_v3 }
 0x275   :  { %v2032_v58 = vpop.f32.mrf.mxu0  ;;  %v1804_v12 = vadd.f32 %v1803_v63, %v1691_v52 }
 0x276   :  { %v5413_v30 = vadd.f32 %v2026_v48, %v1914_v46 }
 0x277   :  { %3523 = vmatmul.msk.f32.gmra.mxu2 %vm527_vm15, %v6121_v59  ;;  %vm559_vm15 = vcmp.eq.s32.totalorder %v4987_v37, %v4123_v29 }
 0x278   :  { %3554 = vmatmul.msk.f32.gmra.mxu3 %vm520_vm0, %v6121_v59  ;;  %3587 = vmatmul.msk.f32.gmra.mxu0 %vm1106_vm5, %v3275_v51  ;;  %v2179_v48 = vrot.slane %v5413_v30, 2  ;;  %v2112_v25 = vrot.slane %v5413_v30, 1  ;;  %vm552_vm0 = vcmp.eq.s32.totalorder %v5010_v33, %v4092_v19 }
 0x27a   :  { %v1806_v27 = vpop.f32.mrf.mxu2  ;;  %v2233_v3 = vsel %vm2206_vm1, %v2178_v16, %v2179_v48  ;;  %v2168_v14 = vsel %vm2141_vm2, %v2111_v57, %v2112_v25  ;;  %v3283_v16 = vsel %vm537_vm3, 1.0, %v6135_v13  ;;  %v6149_v57 = vld [vmem:[#allocation19_spill] sm:$0xff]  ;;  %vm569_vm3 = vcmp.eq.s32.totalorder %v4982_v32, %v4170_v44 }
 0x27b   :  { %v1916_v26 = vpop.f32.mrf.mxu3  ;;  %2407 = vrot.lane.b32.xlu1 %v2233_v3, %s3717_s0  ;;  %2279 = vrot.lane.b32.xlu0 %v2168_v14, %s3718_s28  ;;  %v1694_v46 = vadd.f32 %v5131_v0, %v6149_v57 }
 0x27c   :  { %v1917_v2 = vadd.f32 %v1916_v26, %v1804_v12 }
 0x27d   :  { %v2035_v11 = vpop.f32.mrf.mxu0  ;;  %v1807_v39 = vadd.f32 %v1806_v27, %v1694_v46  ;;  %v3291_v27 = vsel %vm545_vm8, 1.0, %v6135_v13  ;;  %vm577_vm8 = vcmp.eq.s32.totalorder %v4982_v32, %v4206_v54 }
 0x27e   :  { %v5437_v63 = vadd.f32 %v2029_v21, %v1917_v2  ;;  %v6150_v2 = vld [vmem:[#allocation20_spill] sm:$0xff] }
 0x27f   :  { %3524 = vmatmul.msk.f32.gmra.mxu2 %vm535_vm6, %v6121_v59  ;;  %vm567_vm6 = vcmp.eq.s32.totalorder %v4987_v37, %v4170_v44 }
 0x280   :  { %3555 = vmatmul.msk.f32.gmra.mxu3 %vm528_vm7, %v6121_v59  ;;  %3588 = vmatmul.msk.f32.gmra.mxu0 %vm1106_vm5, %v3283_v16  ;;  %v2113_v21 = vrot.slane %v5437_v63, 1  ;;  %v2180_v51 = vrot.slane %v5437_v63, 2  ;;  %vm560_vm7 = vcmp.eq.s32.totalorder %v5010_v33, %v4123_v29 }
 0x282   :  { %v1809_v52 = vpop.f32.mrf.mxu2  ;;  %v2167_v12 = vsel %vm2141_vm2, %v2112_v25, %v2113_v21  ;;  %v2232_v18 = vsel %vm2206_vm1, %v2179_v48, %v2180_v51  ;;  %v2561_v25 = vld [vmem:[%s6104_s4 + $0x8] sm:$0xff]  ;;  %v5466_v48 = vpop.f32.mrf.mxu1 }
 0x283   :  { %v1919_v3 = vpop.f32.mrf.mxu3  ;;  %2281 = vrot.lane.b32.xlu2 %v2167_v12, %s3718_s28  ;;  %2409 = vrot.lane.b32.xlu0 %v2232_v18, %s3717_s0 }
 0x284   :  { %v1920_v0 = vadd.f32 %v1919_v3, %v1807_v39  ;;  %2683 = vmatpush.msra.mxu1 %v2561_v25 }
 0x285   :  { %v2038_v14 = vpop.f32.mrf.mxu0 }
 0x286   :  { %v5459_v26 = vadd.f32 %v2032_v58, %v1920_v0  ;;  %v1697_v58 = vadd.f32 %v5303_v23, %v6150_v2 }
 0x287   :  { %3525 = vmatmul.msk.f32.gmra.mxu2 %vm543_vm9, %v6121_v59  ;;  %vm575_vm9 = vcmp.eq.s32.totalorder %v4987_v37, %v4206_v54 }
 0x288   :  { %3556 = vmatmul.msk.f32.gmra.mxu3 %vm536_vm10, %v6121_v59  ;;  %3589 = vmatmul.msk.f32.gmra.mxu0 %vm1106_vm5, %v3291_v27  ;;  %v2181_v16 = vrot.slane %v5459_v26, 2  ;;  %v2114_v57 = vrot.slane %v5459_v26, 1  ;;  %v1810_v46 = vadd.f32 %v1809_v52, %v1697_v58  ;;  %vm568_vm10 = vcmp.eq.s32.totalorder %v5010_v33, %v4170_v44 }
 0x28a   :  { %v1812_v39 = vpop.f32.mrf.mxu2  ;;  %v2231_v12 = vsel %vm2206_vm1, %v2180_v51, %v2181_v16  ;;  %v2166_v17 = vsel %vm2141_vm2, %v2113_v21, %v2114_v57  ;;  %v3299_v21 = vsel %vm553_vm11, 1.0, %v6135_v13  ;;  %v6151_v51 = vld [vmem:[#allocation21_spill] sm:$0xff]  ;;  %v5500_v27 = vpop.f32.mrf.mxu1  ;;  %vm585_vm11 = vcmp.eq.s32.totalorder %v4982_v32, %v4255_v4 }
 0x28b   :  { %v1922_v18 = vpop.f32.mrf.mxu3  ;;  %2411 = vrot.lane.b32.xlu2 %v2231_v12, %s3717_s0  ;;  %2283 = vrot.lane.b32.xlu1 %v2166_v17, %s3718_s28  ;;  %v1700_v52 = vadd.f32 %v5342_v50, %v6151_v51 }
 0x28c   :  { %v1923_v23 = vadd.f32 %v1922_v18, %v1810_v46 }
 0x28d   :  { %v2041_v3 = vpop.f32.mrf.mxu0  ;;  %v1813_v2 = vadd.f32 %v1812_v39, %v1700_v52 }
 0x28e   :  { %v5486_v0 = vadd.f32 %v2035_v11, %v1923_v23 }
 0x28f   :  { %3526 = vmatmul.msk.f32.gmra.mxu2 %vm551_vm12, %v6121_v59  ;;  %vm583_vm12 = vcmp.eq.s32.totalorder %v4987_v37, %v4255_v4 }
 0x290   :  { %3557 = vmatmul.msk.f32.gmra.mxu3 %vm544_vm13, %v6121_v59  ;;  %3590 = vmatmul.msk.f32.gmra.mxu0 %vm1106_vm5, %v3299_v21  ;;  %v2182_v11 = vrot.slane %v5486_v0, 2  ;;  %v2115_v25 = vrot.slane %v5486_v0, 1  ;;  %vm576_vm13 = vcmp.eq.s32.totalorder %v5010_v33, %v4206_v54 }
 0x292   :  { %v1815_v58 = vpop.f32.mrf.mxu2  ;;  %v2230_v8 = vsel %vm2206_vm1, %v2181_v16, %v2182_v11  ;;  %v2165_v46 = vsel %vm2141_vm2, %v2114_v57, %v2115_v25  ;;  %v3307_v16 = vsel %vm561_vm14, 1.0, %v6135_v13  ;;  %v6152_v57 = vld [vmem:[#allocation22_spill] sm:$0xff]  ;;  %vm593_vm14 = vcmp.eq.s32.totalorder %v4982_v32, %v4291_v22 }
 0x293   :  { %v1925_v12 = vpop.f32.mrf.mxu3  ;;  %2413 = vrot.lane.b32.xlu1 %v2230_v8, %s3717_s0  ;;  %2285 = vrot.lane.b32.xlu0 %v2165_v46, %s3718_s28  ;;  %v1703_v39 = vadd.f32 %v5376_v5, %v6152_v57 }
 0x294   :  { %v1926_v50 = vadd.f32 %v1925_v12, %v1813_v2  ;;  %v5528_v2 = vpop.f32.mrf.mxu1  ;;  %v6153_v12 = vld [vmem:[#allocation23_spill] sm:$0xff] }
 0x295   :  { %v2044_v17 = vpop.f32.mrf.mxu0  ;;  %v1816_v21 = vadd.f32 %v1815_v58, %v1703_v39 }
 0x296   :  { %v5510_v18 = vadd.f32 %v2038_v14, %v1926_v50  ;;  %v1706_v50 = vadd.f32 %v5407_v55, %v6153_v12 }
 0x297   :  { %3527 = vmatmul.msk.f32.gmra.mxu2 %vm559_vm15, %v6121_v59  ;;  %vm591_vm15 = vcmp.eq.s32.totalorder %v4987_v37, %v4291_v22 }
 0x298   :  { %3558 = vmatmul.msk.f32.gmra.mxu3 %vm552_vm0, %v6121_v59  ;;  %3591 = vmatmul.msk.f32.gmra.mxu0 %vm1106_vm5, %v3307_v16  ;;  %v2116_v14 = vrot.slane %v5510_v18, 1  ;;  %v2183_v23 = vrot.slane %v5510_v18, 2  ;;  %vm584_vm0 = vcmp.eq.s32.totalorder %v5010_v33, %v4255_v4 }
 0x29a   :  { %v1818_v51 = vpop.f32.mrf.mxu2  ;;  %v2164_v52 = vsel %vm2141_vm2, %v2115_v25, %v2116_v14  ;;  %v2229_v19 = vsel %vm2206_vm1, %v2182_v11, %v2183_v23  ;;  %v2560_v11 = vld [vmem:[%s6104_s4] sm:$0xff]  ;;  %v3315_v25 = vsel %vm569_vm3, 1.0, %v6135_v13  ;;  %vm2495_vm3 = vcmask 261120  }
 0x29b   :  { %v1928_v8 = vpop.f32.mrf.mxu3  ;;  %2287 = vrot.lane.b32.xlu2 %v2164_v52, %s3718_s28  ;;  %2415 = vrot.lane.b32.xlu0 %v2229_v19, %s3717_s0  ;;  %v1819_v57 = vadd.f32 %v1818_v51, %v1706_v50 }
 0x29c   :  { %v1929_v5 = vadd.f32 %v1928_v8, %v1816_v21  ;;  %2684 = vmatpush.msra.mxu1 %v2560_v11  ;;  %v5559_v19 = vpop.f32.mrf.mxu1 }
 0x29d   :  { %v2047_v46 = vpop.f32.mrf.mxu0 }
 0x29e   :  { %v5534_v58 = vadd.f32 %v2041_v3, %v1929_v5 }
 0x29f   :  { %3528 = vmatmul.msk.f32.gmra.mxu2 %vm567_vm6, %v6121_v59  ;;  %vm2572_vm6 = vcmask 785408  }
 0x2a0   :  { %3559 = vmatmul.msk.f32.gmra.mxu3 %vm560_vm7, %v6121_v59  ;;  %3592 = vmatmul.msk.f32.gmra.mxu0 %vm1106_vm5, %v3315_v25  ;;  %v2184_v3 = vrot.slane %v5534_v58, 2  ;;  %v2117_v16 = vrot.slane %v5534_v58, 1  ;;  %vm3021_vm7 = vcmask 1042434  }
 0x2a2   :  { %v1821_v39 = vpop.f32.mrf.mxu2  ;;  %v2228_v21 = vsel %vm2206_vm1, %v2183_v23, %v2184_v3  ;;  %v2163_v29 = vsel %vm2141_vm2, %v2116_v14, %v2117_v16  ;;  %v3323_v14 = vsel %vm577_vm8, 1.0, %v6135_v13  ;;  %v6154_v23 = vld [vmem:[#allocation24_spill] sm:$0xff]  ;;  %vm3024_vm8 = vcmask 1043459  }
 0x2a3   :  { %v1931_v52 = vpop.f32.mrf.mxu3  ;;  %2417 = vrot.lane.b32.xlu2 %v2228_v21, %s3717_s0  ;;  %2289 = vrot.lane.b32.xlu1 %v2163_v29, %s3718_s28  ;;  %v1709_v5 = vadd.f32 %v5435_v53, %v6154_v23 }
 0x2a4   :  { %v1932_v55 = vadd.f32 %v1931_v52, %v1819_v57 }
 0x2a5   :  { %v2050_v8 = vpop.f32.mrf.mxu0  ;;  %v1822_v25 = vadd.f32 %v1821_v39, %v1709_v5  ;;  %v5587_v39 = vpop.f32.mrf.mxu1 }
 0x2a6   :  { %v5561_v51 = vadd.f32 %v2044_v17, %v1932_v55 }
 0x2a7   :  { %3529 = vmatmul.msk.f32.gmra.mxu2 %vm575_vm9, %v6121_v59  ;;  %vm3027_vm9 = vcmask 1044484  }
 0x2a8   :  { %3560 = vmatmul.msk.f32.gmra.mxu3 %vm568_vm10, %v6121_v59  ;;  %3593 = vmatmul.msk.f32.gmra.mxu0 %vm1106_vm5, %v3323_v14  ;;  %v2185_v17 = vrot.slane %v5561_v51, 2  ;;  %v2118_v11 = vrot.slane %v5561_v51, 1  ;;  %vm3030_vm10 = vcmask 1045509  }
 0x2aa   :  { %v1824_v12 = vpop.f32.mrf.mxu2  ;;  %v2227_v50 = vsel %vm2206_vm1, %v2184_v3, %v2185_v17  ;;  %v2162_v44 = vsel %vm2141_vm2, %v2117_v16, %v2118_v11  ;;  %v3331_v3 = vsel %vm585_vm11, 1.0, %v6135_v13  ;;  %v6155_v16 = vld [vmem:[#allocation25_spill] sm:$0xff]  ;;  %vm3033_vm11 = vcmask 1046534  }
 0x2ab   :  { %v1934_v57 = vpop.f32.mrf.mxu3  ;;  %2419 = vrot.lane.b32.xlu1 %v2227_v50, %s3717_s0  ;;  %2291 = vrot.lane.b32.xlu0 %v2162_v44, %s3718_s28  ;;  %v1712_v52 = vadd.f32 %v5466_v48, %v6155_v16 }
 0x2ac   :  { %v1935_v53 = vadd.f32 %v1934_v57, %v1822_v25 }
 0x2ad   :  { %v2053_v21 = vpop.f32.mrf.mxu0  ;;  %v1825_v14 = vadd.f32 %v1824_v12, %v1712_v52  ;;  %v5621_v57 = vpop.f32.mrf.mxu1 }
 0x2ae   :  { %v5583_v29 = vadd.f32 %v2047_v46, %v1935_v53 }
 0x2af   :  { %3530 = vmatmul.msk.f32.gmra.mxu2 %vm583_vm12, %v6121_v59  ;;  %vm3036_vm12 = vcmask 1047559  }
 0x2b0   :  { %3561 = vmatmul.msk.f32.gmra.mxu3 %vm576_vm13, %v6121_v59  ;;  %3594 = vmatmul.msk.f32.gmra.mxu0 %vm1106_vm5, %v3331_v3  ;;  %v2119_v46 = vrot.slane %v5583_v29, 1  ;;  %v2186_v55 = vrot.slane %v5583_v29, 2 }
 0x2b2   :  { %v1827_v23 = vpop.f32.mrf.mxu2  ;;  %v2161_v5 = vsel %vm2141_vm2, %v2118_v11, %v2119_v46  ;;  %v2226_v54 = vsel %vm2206_vm1, %v2185_v17, %v2186_v55  ;;  %v3339_v17 = vsel %vm593_vm14, 1.0, %v6135_v13  ;;  %v6156_v11 = vld [vmem:[#allocation26_spill] sm:$0xff] }
 0x2b3   :  { %v1937_v25 = vpop.f32.mrf.mxu3  ;;  %2293 = vrot.lane.b32.xlu2 %v2161_v5, %s3718_s28  ;;  %2421 = vrot.lane.b32.xlu0 %v2226_v54, %s3717_s0  ;;  %v1715_v12 = vadd.f32 %v5500_v27, %v6156_v11 }
 0x2b4   :  { %v1938_v48 = vadd.f32 %v1937_v25, %v1825_v14  ;;  %v1718_v14 = vadd.f32 %v5528_v2, %v5019_v40  ;;  %v1721_v2 = vadd.f32 %v5559_v19, %v5035_v47 }
 0x2b5   :  { %v2056_v50 = vpop.f32.mrf.mxu0  ;;  %v1828_v37 = vadd.f32 %v1827_v23, %v1715_v12  ;;  %v5642_v25 = vpop.f32.mrf.mxu1 }
 0x2b6   :  { %v5607_v44 = vadd.f32 %v2050_v8, %v1938_v48  ;;  %v2400_v19 = vpop.permute.xlu2 %2399 }
 0x2b7   :  { %3531 = vmatmul.msk.f32.gmra.mxu2 %vm591_vm15, %v6121_v59 }
 0x2b8   :  { %3562 = vmatmul.msk.f32.gmra.mxu3 %vm584_vm0, %v6121_v59  ;;  %3595 = vmatmul.msk.f32.gmra.mxu0 %vm1106_vm5, %v3339_v17  ;;  %v2187_v32 = vrot.slane %v5607_v44, 2  ;;  %v2120_v8 = vrot.slane %v5607_v44, 1  ;;  %vm592_vm5 = vcmp.eq.s32.totalorder %v5010_v33, %v4291_v22 }
 0x2ba   :  { %v1830_v53 = vpop.f32.mrf.mxu2  ;;  %v2225_v4 = vsel %vm2206_vm1, %v2186_v55, %v2187_v32  ;;  %v2160_v13 = vsel %vm2141_vm2, %v2119_v46, %v2120_v8 }
 0x2bb   :  { %v1940_v3 = vpop.f32.mrf.mxu3  ;;  %2423 = vrot.lane.b32.xlu2 %v2225_v4, %s3717_s0  ;;  %2295 = vrot.lane.b32.xlu1 %v2160_v13, %s3718_s28  ;;  %v1831_v23 = vadd.f32 %v1830_v53, %v1718_v14  ;;  %v1724_v14 = vadd.f32 %v5587_v39, %v5053_v56 }
 0x2bc   :  { %v1941_v27 = vadd.f32 %v1940_v3, %v1828_v37 }
 0x2bd   :  { %v2059_v16 = vpop.f32.mrf.mxu0  ;;  %v5658_v53 = vpop.f32.mrf.mxu1 }
 0x2be   :  { %v5629_v52 = vadd.f32 %v2053_v21, %v1941_v27 }
 0x2c0   :  { %3563 = vmatmul.msk.f32.gmra.mxu3 %vm592_vm5, %v6121_v59  ;;  %v2188_v55 = vrot.slane %v5629_v52, 2  ;;  %v2121_v46 = vrot.slane %v5629_v52, 1 }
 0x2c2   :  { %v1833_v5 = vpop.f32.mrf.mxu2  ;;  %v2224_v54 = vsel %vm2206_vm1, %v2187_v32, %v2188_v55  ;;  %v2159_v21 = vsel %vm2141_vm2, %v2120_v8, %v2121_v46 }
 0x2c3   :  { %v1943_v22 = vpop.f32.mrf.mxu3  ;;  %2425 = vrot.lane.b32.xlu1 %v2224_v54, %s3717_s0  ;;  %2297 = vrot.lane.b32.xlu0 %v2159_v21, %s3718_s28  ;;  %v1834_v11 = vadd.f32 %v1833_v5, %v1721_v2 }
 0x2c4   :  { %v1944_v59 = vadd.f32 %v1943_v22, %v1831_v23 }
 0x2c5   :  { %v2062_v33 = vpop.f32.mrf.mxu0 }
 0x2c6   :  { %v5646_v40 = vadd.f32 %v2056_v50, %v1944_v59 }
 0x2c8   :  { %v2122_v48 = vrot.slane %v5646_v40, 1  ;;  %v2189_v17 = vrot.slane %v5646_v40, 2 }
 0x2ca   :  { %v1836_v12 = vpop.f32.mrf.mxu2  ;;  %v2158_v32 = vsel %vm2141_vm2, %v2121_v46, %v2122_v48  ;;  %v2223_v8 = vsel %vm2206_vm1, %v2188_v55, %v2189_v17 }
 0x2cb   :  { %v1946_v37 = vpop.f32.mrf.mxu3  ;;  %2299 = vrot.lane.b32.xlu2 %v2158_v32, %s3718_s28  ;;  %2427 = vrot.lane.b32.xlu0 %v2223_v8, %s3717_s0  ;;  %v1837_v23 = vadd.f32 %v1836_v12, %v1724_v14 }
 0x2cc   :  { %v1947_v50 = vadd.f32 %v1946_v37, %v1834_v11  ;;  %v2276_v37 = vpop.permute.xlu2 %2275 }
 0x2cd   :  { %v2272_v47 = vpop.permute.xlu1 %2271  ;;  %v2065_v3 = vpop.f32.mrf.mxu0 }
 0x2ce   :  { %v5660_v4 = vadd.f32 %v2059_v16, %v1947_v50  ;;  %v2496_v13 = vsel %vm2495_vm3, %v5299_v10, %v2272_v47 }
 0x2cf   :  { %v2528_v27 = vsel %vm48_vm4, %v2496_v13, %v2400_v19 }
 0x2d0   :  { %3596 = vmatmul.msk.f32.vlgmr.msra.gmra.mxu1 %vm2572_vm6, %v2528_v27  ;;  %v2190_v55 = vrot.slane %v5660_v4, 2  ;;  %v2123_v46 = vrot.slane %v5660_v4, 1 }
 0x2d2   :  { %v1839_v5 = vpop.f32.mrf.mxu2  ;;  %v2222_v16 = vsel %vm2206_vm1, %v2189_v17, %v2190_v55  ;;  %v2157_v54 = vsel %vm2141_vm2, %v2122_v48, %v2123_v46  ;;  %v1727_v17 = vadd.f32 %v5621_v57, %v5074_v31  ;;  %v1735_v48 = vpop.f32.mrf.mxu1  ;;  %v2498_v57 = vsel %vm2495_vm3, %v5335_v49, %v2276_v37 }
 0x2d3   :  { %v1949_v21 = vpop.f32.mrf.mxu3  ;;  %2429 = vrot.lane.b32.xlu2 %v2222_v16, %s3717_s0  ;;  %2301 = vrot.lane.b32.xlu1 %v2157_v54, %s3718_s28 }
 0x2d4   :  { %v1950_v56 = vadd.f32 %v1949_v21, %v1837_v23  ;;  %v1840_v50 = vadd.f32 %v1839_v5, %v1727_v17 }
 0x2d5   :  { %v2274_v39 = vpop.permute.xlu0 %2273  ;;  %v2402_v22 = vpop.permute.xlu1 %2401 }
 0x2d6   :  { %v5676_v59 = vadd.f32 %v2062_v33, %v1950_v56  ;;  %v2497_v2 = vsel %vm2495_vm3, %v5305_v6, %v2274_v39  ;;  %v2068_v11 = vpop.f32.mrf.mxu0  ;;  %v2406_v39 = vpop.permute.xlu2 %2405 }
 0x2d7   :  { %v2529_v12 = vsel %vm48_vm4, %v2497_v2, %v2402_v22 }
 0x2d8   :  { %3597 = vmatmul.msk.f32.gmra.mxu1 %vm2572_vm6, %v2529_v12  ;;  %v2191_v32 = vrot.slane %v5676_v59, 2  ;;  %v2124_v8 = vrot.slane %v5676_v59, 1 }
 0x2da   :  { %v1842_v33 = vpop.f32.mrf.mxu2  ;;  %v2221_v47 = vsel %vm2206_vm1, %v2190_v55, %v2191_v32  ;;  %v2156_v6 = vsel %vm2141_vm2, %v2123_v46, %v2124_v8  ;;  %v1730_v55 = vadd.f32 %v5642_v25, %v5092_v15  ;;  %v1738_v16 = vpop.f32.mrf.mxu1 }
 0x2db   :  { %v1952_v19 = vpop.f32.mrf.mxu3  ;;  %2431 = vrot.lane.b32.xlu1 %v2221_v47, %s3717_s0  ;;  %2303 = vrot.lane.b32.xlu0 %v2156_v6, %s3718_s28 }
 0x2dc   :  { %v1953_v31 = vadd.f32 %v1952_v19, %v1840_v50  ;;  %v1843_v54 = vadd.f32 %v1842_v33, %v1730_v55  ;;  %v1736_v55 = vadd.f32 %v1735_v48, %v5129_v34 }
 0x2dd   :  { %v2404_v13 = vpop.permute.xlu0 %2403 }
 0x2de   :  { %v5694_v27 = vadd.f32 %v2065_v3, %v1953_v31  ;;  %v2530_v14 = vsel %vm48_vm4, %v2498_v57, %v2404_v13  ;;  %v2071_v23 = vpop.f32.mrf.mxu0 }
 0x2e0   :  { %3598 = vmatmul.msk.f32.gmra.mxu1 %vm2572_vm6, %v2530_v14  ;;  %v2125_v46 = vrot.slane %v5694_v27, 1  ;;  %v2192_v5 = vrot.slane %v5694_v27, 2 }
 0x2e2   :  { %v1845_v21 = vpop.f32.mrf.mxu2  ;;  %v2155_v49 = vsel %vm2141_vm2, %v2124_v8, %v2125_v46  ;;  %v2220_v3 = vsel %vm2206_vm1, %v2191_v32, %v2192_v5  ;;  %v1733_v8 = vadd.f32 %v5658_v53, %v5110_v24  ;;  %v1741_v24 = vpop.f32.mrf.mxu1 }
 0x2e3   :  { %v1955_v56 = vpop.f32.mrf.mxu3  ;;  %2305 = vrot.lane.b32.xlu2 %v2155_v49, %s3718_s28  ;;  %2433 = vrot.lane.b32.xlu0 %v2220_v3, %s3717_s0 }
 0x2e4   :  { %v1956_v15 = vadd.f32 %v1955_v56, %v1843_v54  ;;  %v1846_v50 = vadd.f32 %v1845_v21, %v1733_v8  ;;  %v2282_v54 = vpop.permute.xlu2 %2281 }
 0x2e5   :  { %v2278_v25 = vpop.permute.xlu1 %2277  ;;  %v2501_v48 = vsel %vm2495_vm3, %v5413_v30, %v2282_v54 }
 0x2e6   :  { %v5708_v22 = vadd.f32 %v2068_v11, %v1956_v15  ;;  %v2499_v2 = vsel %vm2495_vm3, %v5362_v20, %v2278_v25  ;;  %v2074_v12 = vpop.f32.mrf.mxu0 }
 0x2e7   :  { %v2531_v17 = vsel %vm48_vm4, %v2499_v2, %v2406_v39 }
 0x2e8   :  { %3599 = vmatmul.msk.f32.gmra.mxu1 %vm2572_vm6, %v2531_v17  ;;  %v2193_v32 = vrot.slane %v5708_v22, 2  ;;  %v2126_v37 = vrot.slane %v5708_v22, 1  ;;  %v1739_v17 = vadd.f32 %v1738_v16, %v5145_v9 }
 0x2ea   :  { %v1848_v33 = vpop.f32.mrf.mxu2  ;;  %v2219_v11 = vsel %vm2206_vm1, %v2192_v5, %v2193_v32  ;;  %v2154_v20 = vsel %vm2141_vm2, %v2125_v46, %v2126_v37  ;;  %v1744_v2 = vpop.f32.mrf.mxu1 }
 0x2eb   :  { %v1958_v47 = vpop.f32.mrf.mxu3  ;;  %2435 = vrot.lane.b32.xlu2 %v2219_v11, %s3717_s0  ;;  %2307 = vrot.lane.b32.xlu1 %v2154_v20, %s3718_s28  ;;  %v1849_v21 = vadd.f32 %v1848_v33, %v1736_v55 }
 0x2ec   :  { %v1959_v53 = vadd.f32 %v1958_v47, %v1846_v50  ;;  %v2412_v11 = vpop.permute.xlu2 %2411 }
 0x2ed   :  { %v2408_v6 = vpop.permute.xlu1 %2407  ;;  %v2280_v19 = vpop.permute.xlu0 %2279 }
 0x2ee   :  { %v5724_v31 = vadd.f32 %v2071_v23, %v1959_v53  ;;  %v2500_v57 = vsel %vm2495_vm3, %v5386_v62, %v2280_v19  ;;  %v2077_v13 = vpop.f32.mrf.mxu0  ;;  %v1742_v19 = vadd.f32 %v1741_v24, %v5161_v38 }
 0x2ef   :  { %v2532_v14 = vsel %vm48_vm4, %v2500_v57, %v2408_v6 }
 0x2f0   :  { %3600 = vmatmul.msk.f32.gmra.mxu1 %vm2572_vm6, %v2532_v14  ;;  %v2194_v46 = vrot.slane %v5724_v31, 2  ;;  %v2127_v5 = vrot.slane %v5724_v31, 1 }
 0x2f2   :  { %v1851_v49 = vpop.f32.mrf.mxu2  ;;  %v2218_v23 = vsel %vm2206_vm1, %v2193_v32, %v2194_v46  ;;  %v2153_v62 = vsel %vm2141_vm2, %v2126_v37, %v2127_v5  ;;  %v1747_v55 = vpop.f32.mrf.mxu1 }
 0x2f3   :  { %v1961_v3 = vpop.f32.mrf.mxu3  ;;  %2437 = vrot.lane.b32.xlu1 %v2218_v23, %s3717_s0  ;;  %2309 = vrot.lane.b32.xlu0 %v2153_v62, %s3718_s28  ;;  %v1852_v37 = vadd.f32 %v1851_v49, %v1739_v17 }
 0x2f4   :  { %v1962_v34 = vadd.f32 %v1961_v3, %v1849_v21  ;;  %v1745_v3 = vadd.f32 %v1744_v2, %v5174_v1 }
 0x2f5   :  { %v2410_v56 = vpop.permute.xlu0 %2409 }
 0x2f6   :  { %v5741_v15 = vadd.f32 %v2074_v12, %v1962_v34  ;;  %v2533_v25 = vsel %vm48_vm4, %v2501_v48, %v2410_v56  ;;  %v2080_v39 = vpop.f32.mrf.mxu0 }
 0x2f8   :  { %3601 = vmatmul.msk.f32.gmra.mxu1 %vm2572_vm6, %v2533_v25  ;;  %v2128_v8 = vrot.slane %v5741_v15, 1  ;;  %v2195_v32 = vrot.slane %v5741_v15, 2  ;;  %v2288_v25 = vpop.permute.xlu2 %2287 }
 0x2f9   :  { %v2504_v2 = vsel %vm2495_vm3, %v5486_v0, %v2288_v25 }
 0x2fa   :  { %v1854_v50 = vpop.f32.mrf.mxu2  ;;  %v2152_v30 = vsel %vm2141_vm2, %v2127_v5, %v2128_v8  ;;  %v2217_v12 = vsel %vm2206_vm1, %v2194_v46, %v2195_v32 }
 0x2fb   :  { %v1964_v33 = vpop.f32.mrf.mxu3  ;;  %2311 = vrot.lane.b32.xlu2 %v2152_v30, %s3718_s28  ;;  %2439 = vrot.lane.b32.xlu0 %v2217_v12, %s3717_s0  ;;  %v1855_v46 = vadd.f32 %v1854_v50, %v1742_v19 }
 0x2fc   :  { %v1965_v9 = vadd.f32 %v1964_v33, %v1852_v37  ;;  %v1748_v33 = vadd.f32 %v1747_v55, %v5187_v7 }
 0x2fd   :  { %v2284_v16 = vpop.permute.xlu1 %2283 }
 0x2fe   :  { %v5754_v20 = vadd.f32 %v2077_v13, %v1965_v9  ;;  %v2502_v47 = vsel %vm2495_vm3, %v5437_v63, %v2284_v16  ;;  %v2083_v53 = vpop.f32.mrf.mxu0 }
 0x2ff   :  { %v2534_v6 = vsel %vm48_vm4, %v2502_v47, %v2412_v11 }
 0x300   :  { %3602 = vmatmul.msk.f32.gmra.mxu1 %vm2572_vm6, %v2534_v6  ;;  %v2196_v57 = vrot.slane %v5754_v20, 2  ;;  %v2129_v14 = vrot.slane %v5754_v20, 1  ;;  %v2418_v55 = vpop.permute.xlu2 %2417 }
 0x302   :  { %v1857_v5 = vpop.f32.mrf.mxu2  ;;  %v2216_v13 = vsel %vm2206_vm1, %v2195_v32, %v2196_v57  ;;  %v2151_v63 = vsel %vm2141_vm2, %v2128_v8, %v2129_v14  ;;  %v1750_v32 = vpop.f32.mrf.mxu1 }
 0x303   :  { %v1967_v54 = vpop.f32.mrf.mxu3  ;;  %2441 = vrot.lane.b32.xlu2 %v2216_v13, %s3717_s0  ;;  %2313 = vrot.lane.b32.xlu1 %v2151_v63, %s3718_s28  ;;  %v1858_v17 = vadd.f32 %v1857_v5, %v1745_v3  ;;  %v1751_v63 = vadd.f32 %v1750_v32, %v5203_v61 }
 0x304   :  { %v1968_v38 = vadd.f32 %v1967_v54, %v1855_v46 }
 0x305   :  { %v2414_v24 = vpop.permute.xlu1 %2413  ;;  %v2286_v21 = vpop.permute.xlu0 %2285 }
 0x306   :  { %v5769_v49 = vadd.f32 %v2080_v39, %v1968_v38  ;;  %v2503_v23 = vsel %vm2495_vm3, %v5459_v26, %v2286_v21  ;;  %v2086_v34 = vpop.f32.mrf.mxu0 }
 0x307   :  { %v2535_v62 = vsel %vm48_vm4, %v2503_v23, %v2414_v24 }
 0x308   :  { %3603 = vmatmul.msk.f32.gmra.mxu1 %vm2572_vm6, %v2535_v62  ;;  %v2197_v48 = vrot.slane %v5769_v49, 2  ;;  %v2130_v56 = vrot.slane %v5769_v49, 1 }
 0x30a   :  { %v1860_v8 = vpop.f32.mrf.mxu2  ;;  %v2215_v39 = vsel %vm2206_vm1, %v2196_v57, %v2197_v48  ;;  %v2150_v26 = vsel %vm2141_vm2, %v2129_v14, %v2130_v56  ;;  %v1753_v57 = vpop.f32.mrf.mxu1 }
 0x30b   :  { %v1970_v37 = vpop.f32.mrf.mxu3  ;;  %2443 = vrot.lane.b32.xlu1 %v2215_v39, %s3717_s0  ;;  %2315 = vrot.lane.b32.xlu0 %v2150_v26, %s3718_s28  ;;  %v1861_v11 = vadd.f32 %v1860_v8, %v1748_v33  ;;  %v1754_v39 = vadd.f32 %v1753_v57, %v5216_v42 }
 0x30c   :  { %v1971_v1 = vadd.f32 %v1970_v37, %v1858_v17 }
 0x30d   :  { %v2416_v50 = vpop.permute.xlu0 %2415  ;;  %v2294_v37 = vpop.permute.xlu2 %2293 }
 0x30e   :  { %v5786_v30 = vadd.f32 %v2083_v53, %v1971_v1  ;;  %v2536_v12 = vsel %vm48_vm4, %v2504_v2, %v2416_v50  ;;  %v2089_v47 = vpop.f32.mrf.mxu0  ;;  %v2507_v33 = vsel %vm2495_vm3, %v5561_v51, %v2294_v37 }
 0x310   :  { %3604 = vmatmul.msk.f32.gmra.mxu1 %vm2572_vm6, %v2536_v12  ;;  %v2131_v9 = vrot.slane %v5786_v30, 1  ;;  %v2198_v16 = vrot.slane %v5786_v30, 2 }
 0x312   :  { %v1863_v6 = vpop.f32.mrf.mxu2  ;;  %v2149_v19 = vsel %vm2141_vm2, %v2130_v56, %v2131_v9  ;;  %v2214_v0 = vsel %vm2206_vm1, %v2197_v48, %v2198_v16  ;;  %v1756_v17 = vpop.f32.mrf.mxu1 }
 0x313   :  { %v1973_v53 = vpop.f32.mrf.mxu3  ;;  %2317 = vrot.lane.b32.xlu2 %v2149_v19, %s3718_s28  ;;  %2445 = vrot.lane.b32.xlu0 %v2214_v0, %s3717_s0  ;;  %v1864_v24 = vadd.f32 %v1863_v6, %v1751_v63  ;;  %v1757_v6 = vadd.f32 %v1756_v17, %v5229_v60 }
 0x314   :  { %v1974_v7 = vadd.f32 %v1973_v53, %v1861_v11 }
 0x315   :  { %v2290_v14 = vpop.permute.xlu1 %2289 }
 0x316   :  { %v5799_v46 = vadd.f32 %v2086_v34, %v1974_v7  ;;  %v2505_v5 = vsel %vm2495_vm3, %v5510_v18, %v2290_v14  ;;  %v2092_v61 = vpop.f32.mrf.mxu0 }
 0x317   :  { %v2537_v13 = vsel %vm48_vm4, %v2505_v5, %v2418_v55 }
 0x318   :  { %3605 = vmatmul.msk.f32.gmra.mxu1 %vm2572_vm6, %v2537_v13  ;;  %v2199_v54 = vrot.slane %v5799_v46, 2  ;;  %v2132_v38 = vrot.slane %v5799_v46, 1  ;;  %v2424_v13 = vpop.permute.xlu2 %2423 }
 0x31a   :  { %v1866_v21 = vpop.f32.mrf.mxu2  ;;  %v2213_v23 = vsel %vm2206_vm1, %v2198_v16, %v2199_v54  ;;  %v2148_v62 = vsel %vm2141_vm2, %v2131_v9, %v2132_v38  ;;  %v1759_v53 = vpop.f32.mrf.mxu1 }
 0x31b   :  { %v1976_v3 = vpop.f32.mrf.mxu3  ;;  %2447 = vrot.lane.b32.xlu2 %v2213_v23, %s3717_s0  ;;  %2319 = vrot.lane.b32.xlu1 %v2148_v62, %s3718_s28  ;;  %v1867_v1 = vadd.f32 %v1866_v21, %v1754_v39 }
 0x31c   :  { %v1977_v18 = vadd.f32 %v1976_v3, %v1864_v24  ;;  %v1760_v24 = vadd.f32 %v1759_v53, %v5245_v28 }
 0x31d   :  { %v2420_v34 = vpop.permute.xlu1 %2419  ;;  %v2292_v48 = vpop.permute.xlu0 %2291 }
 0x31e   :  { %v5814_v56 = vadd.f32 %v2089_v47, %v1977_v18  ;;  %v2506_v25 = vsel %vm2495_vm3, %v5534_v58, %v2292_v48  ;;  %v2095_v47 = vpop.f32.mrf.mxu0 }
 0x31f   :  { %v2538_v8 = vsel %vm48_vm4, %v2506_v25, %v2420_v34 }
 0x320   :  { %3606 = vmatmul.msk.f32.gmra.mxu1 %vm2572_vm6, %v2538_v8  ;;  %v2200_v26 = vrot.slane %v5814_v56, 2  ;;  %v2133_v32 = vrot.slane %v5814_v56, 1 }
 0x322   :  { %v1869_v2 = vpop.f32.mrf.mxu2  ;;  %v2212_v50 = vsel %vm2206_vm1, %v2199_v54, %v2200_v26  ;;  %v2147_v58 = vsel %vm2141_vm2, %v2132_v38, %v2133_v32  ;;  %v1762_v34 = vpop.f32.mrf.mxu1 }
 0x323   :  { %v1979_v12 = vpop.f32.mrf.mxu3  ;;  %2449 = vrot.lane.b32.xlu1 %v2212_v50, %s3717_s0  ;;  %2321 = vrot.lane.b32.xlu0 %v2147_v58, %s3718_s28  ;;  %v1870_v7 = vadd.f32 %v1869_v2, %v1757_v6 }
 0x324   :  { %v1980_v42 = vadd.f32 %v1979_v12, %v1867_v1 }
 0x325   :  { %v2422_v9 = vpop.permute.xlu0 %2421  ;;  %v2300_v2 = vpop.permute.xlu2 %2299 }
 0x326   :  { %v5831_v16 = vadd.f32 %v2092_v61, %v1980_v42  ;;  %v2539_v11 = vsel %vm48_vm4, %v2507_v33, %v2422_v9  ;;  %v2098_v62 = vpop.f32.mrf.mxu0  ;;  %v2510_v9 = vsel %vm2495_vm3, %v5629_v52, %v2300_v2 }
 0x328   :  { %3607 = vmatmul.msk.f32.gmra.mxu1 %vm2572_vm6, %v2539_v11  ;;  %v2134_v19 = vrot.slane %v5831_v16, 1  ;;  %v2201_v0 = vrot.slane %v5831_v16, 2 }
 0x32a   :  { %v1872_v57 = vpop.f32.mrf.mxu2  ;;  %v2146_v51 = vsel %vm2141_vm2, %v2133_v32, %v2134_v19  ;;  %v2211_v14 = vsel %vm2206_vm1, %v2200_v26, %v2201_v0  ;;  %v1763_v32 = vadd.f32 %v1762_v34, %v5258_v41  ;;  %v1765_v33 = vpop.f32.mrf.mxu1 }
 0x32b   :  { %v1982_v55 = vpop.f32.mrf.mxu3  ;;  %2323 = vrot.lane.b32.xlu2 %v2146_v51, %s3718_s28  ;;  %2451 = vrot.lane.b32.xlu0 %v2211_v14, %s3717_s0  ;;  %v1873_v3 = vadd.f32 %v1872_v57, %v1760_v24 }
 0x32c   :  { %v1983_v60 = vadd.f32 %v1982_v55, %v1870_v7 }
 0x32d   :  { %v2296_v5 = vpop.permute.xlu1 %2295 }
 0x32e   :  { %v5844_v63 = vadd.f32 %v2095_v47, %v1983_v60  ;;  %v2508_v54 = vsel %vm2495_vm3, %v5583_v29, %v2296_v5  ;;  %v2101_v42 = vpop.f32.mrf.mxu0  ;;  %v2430_v5 = vpop.permute.xlu2 %2429 }
 0x32f   :  { %v2540_v38 = vsel %vm48_vm4, %v2508_v54, %v2424_v13 }
 0x330   :  { %3608 = vmatmul.msk.f32.gmra.mxu1 %vm2572_vm6, %v2540_v38  ;;  %v2202_v21 = vrot.slane %v5844_v63, 2  ;;  %v2135_v23 = vrot.slane %v5844_v63, 1 }
 0x332   :  { %v2210_v61 = vsel %vm2206_vm1, %v2201_v0, %v2202_v21  ;;  %v2145_v18 = vsel %vm2141_vm2, %v2134_v19, %v2135_v23  ;;  %v1875_v28 = vpop.f32.mrf.mxu2  ;;  %v1766_v0 = vadd.f32 %v1765_v33, %v5274_v45 }
 0x333   :  { %v1985_v29 = vpop.f32.mrf.mxu3  ;;  %2453 = vrot.lane.b32.xlu2 %v2210_v61, %s3717_s0  ;;  %2325 = vrot.lane.b32.xlu1 %v2145_v18, %s3718_s28  ;;  %v1876_v50 = vadd.f32 %v1875_v28, %v1763_v32 }
 0x334   :  { %v1986_v48 = vadd.f32 %v1985_v29, %v1873_v3 }
 0x335   :  { %v2426_v25 = vpop.permute.xlu1 %2425  ;;  %v2298_v17 = vpop.permute.xlu0 %2297 }
 0x336   :  { %v5859_v8 = vadd.f32 %v2098_v62, %v1986_v48  ;;  %v2509_v39 = vsel %vm2495_vm3, %v5607_v44, %v2298_v17  ;;  %v2104_v45 = vpop.f32.mrf.mxu0 }
 0x337   :  { %v2541_v26 = vsel %vm48_vm4, %v2509_v39, %v2426_v25 }
 0x338   :  { %3609 = vmatmul.msk.f32.gmra.mxu1 %vm2572_vm6, %v2541_v26  ;;  %v2203_v37 = vrot.slane %v5859_v8, 2  ;;  %v2136_v1 = vrot.slane %v5859_v8, 1 }
 0x33a   :  { %v2209_v58 = vsel %vm2206_vm1, %v2202_v21, %v2203_v37  ;;  %v2144_v12 = vsel %vm2141_vm2, %v2135_v23, %v2136_v1  ;;  %v1878_v19 = vpop.f32.mrf.mxu2 }
 0x33b   :  { %v1988_v44 = vpop.f32.mrf.mxu3  ;;  %2455 = vrot.lane.b32.xlu1 %v2209_v58, %s3717_s0  ;;  %2327 = vrot.lane.b32.xlu0 %v2144_v12, %s3718_s28  ;;  %v1879_v57 = vadd.f32 %v1878_v19, %v1766_v0 }
 0x33c   :  { %v1989_v41 = vadd.f32 %v1988_v44, %v1876_v50 }
 0x33d   :  { %v2428_v11 = vpop.permute.xlu0 %2427  ;;  %v2306_v28 = vpop.permute.xlu2 %2305 }
 0x33e   :  { %v5876_v47 = vadd.f32 %v2101_v42, %v1989_v41  ;;  %v2542_v6 = vsel %vm48_vm4, %v2510_v9, %v2428_v11  ;;  %v2513_v25 = vsel %vm2495_vm3, %v5676_v59, %v2306_v28 }
 0x340   :  { %3610 = vmatmul.msk.f32.gmra.mxu1 %vm2572_vm6, %v2542_v6  ;;  %v2137_v53 = vrot.slane %v5876_v47, 1  ;;  %v2204_v7 = vrot.slane %v5876_v47, 2 }
 0x342   :  { %v2143_v51 = vsel %vm2141_vm2, %v2136_v1, %v2137_v53  ;;  %v2208_v52 = vsel %vm2206_vm1, %v2203_v37, %v2204_v7 }
 0x343   :  { %v1991_v14 = vpop.f32.mrf.mxu3  ;;  %2329 = vrot.lane.b32.xlu2 %v2143_v51, %s3718_s28  ;;  %2457 = vrot.lane.b32.xlu0 %v2208_v52, %s3717_s0 }
 0x344   :  { %v1992_v55 = vadd.f32 %v1991_v14, %v1879_v57 }
 0x345   :  { %v2302_v60 = vpop.permute.xlu1 %2301  ;;  %v2436_v10 = vpop.permute.xlu2 %2435 }
 0x346   :  { %v5889_v13 = vadd.f32 %v2104_v45, %v1992_v55  ;;  %v2511_v54 = vsel %vm2495_vm3, %v5646_v40, %v2302_v60 }
 0x347   :  { %v2543_v38 = vsel %vm48_vm4, %v2511_v54, %v2430_v5 }
 0x348   :  { %3611 = vmatmul.msk.f32.gmra.mxu1 %vm2572_vm6, %v2543_v38  ;;  %v2205_v24 = vrot.slane %v5889_v13, 2  ;;  %v2138_v21 = vrot.slane %v5889_v13, 1 }
 0x34a   :  { %v2207_v23 = vsel %vm2206_vm1, %v2204_v7, %v2205_v24  ;;  %v2142_v62 = vsel %vm2141_vm2, %v2137_v53, %v2138_v21  ;;  %v2173_v3 = vsel %vm2141_vm2, %v2138_v21, %v2107_v35  ;;  %v2238_v35 = vsel %vm2206_vm1, %v2205_v24, %v2174_v43 }
 0x34b   :  { %2459 = vrot.lane.b32.xlu2 %v2207_v23, %s3717_s0  ;;  %2331 = vrot.lane.b32.xlu1 %v2142_v62, %s3718_s28  ;;  %vm3018_vm2 = vcmask 1041409  }
 0x34c   :  { %2333 = vrot.lane.b32.xlu0 %v2173_v3, %s3718_s28 }
 0x34d   :  { %v5908_v40 = vpop.f32.mrf.mxu1  ;;  %v2432_v61 = vpop.permute.xlu1 %2431 }
 0x34e   :  { %v2304_v18 = vpop.permute.xlu0 %2303 }
 0x34f   :  { %v2512_v34 = vsel %vm2495_vm3, %v5660_v4, %v2304_v18 }
 0x350   :  { %v2544_v29 = vsel %vm48_vm4, %v2512_v34, %v2432_v61  ;;  %v5964_v61 = vadd.s32 8, %v5297_v36 }
 0x351   :  { %3612 = vmatmul.msk.f32.gmra.mxu1 %vm2572_vm6, %v2544_v29 }
 0x352   :  { %vm2784_vm1 = vcmp.lt.s32.totalorder %v5964_v61, 14 }
 0x353   :  { %2461 = vrot.lane.b32.xlu1 %v2238_v35, %s3717_s0 }
 0x355   :  { %v5919_v48 = vpop.f32.mrf.mxu1  ;;  %v2312_v58 = vpop.permute.xlu2 %2311 }
 0x356   :  { %v2434_v17 = vpop.permute.xlu0 %2433  ;;  %v2516_v42 = vsel %vm2495_vm3, %v5724_v31, %v2312_v58 }
 0x357   :  { %v2545_v4 = vsel %vm48_vm4, %v2513_v25, %v2434_v17 }
 0x359   :  { %3613 = vmatmul.msk.f32.gmra.mxu1 %vm2572_vm6, %v2545_v4 }
 0x35d   :  { %v5925_v39 = vpop.f32.mrf.mxu1  ;;  %v2308_v26 = vpop.permute.xlu1 %2307 }
 0x35e   :  { %v2514_v43 = vsel %vm2495_vm3, %v5694_v27, %v2308_v26  ;;  %v2442_v33 = vpop.permute.xlu2 %2441  ;;  %v2790_v26 = vsel %vm2784_vm1, %v5919_v48, -1e+30 }
 0x35f   :  { %v2546_v32 = vsel %vm48_vm4, %v2514_v43, %v2436_v10  ;;  %v2822_v48 = vsel %vm2495_vm3, %v2790_v26, -inf }
 0x361   :  { %3614 = vmatmul.msk.f32.gmra.mxu1 %vm2572_vm6, %v2546_v32 }
 0x365   :  { %v2695_v37 = vpop.f32.mrf.mxu1  ;;  %v2310_v1 = vpop.permute.xlu0 %2309 }
 0x366   :  { %v2438_v2 = vpop.permute.xlu1 %2437  ;;  %v2515_v59 = vsel %vm2495_vm3, %v5708_v22, %v2310_v1 }
 0x367   :  { %v2547_v50 = vsel %vm48_vm4, %v2515_v59, %v2438_v2 }
 0x369   :  { %3615 = vmatmul.msk.f32.gmra.mxu1 %vm2572_vm6, %v2547_v50 }
 0x36d   :  { %v2698_v12 = vpop.f32.mrf.mxu1  ;;  %v2440_v27 = vpop.permute.xlu0 %2439 }
 0x36e   :  { %v2548_v44 = vsel %vm48_vm4, %v2516_v42, %v2440_v27  ;;  %v2318_v7 = vpop.permute.xlu2 %2317  ;;  %v2839_v43 = vsel %vm2495_vm3, %v2698_v12, -inf }
 0x36f   :  { %v2519_v57 = vsel %vm2495_vm3, %v5769_v49, %v2318_v7 }
 0x371   :  { %3616 = vmatmul.msk.f32.gmra.mxu1 %vm2572_vm6, %v2548_v44 }
 0x375   :  { %v2314_v41 = vpop.permute.xlu1 %2313  ;;  %v2701_v22 = vpop.f32.mrf.mxu1 }
 0x376   :  { %v2517_v9 = vsel %vm2495_vm3, %v5741_v15, %v2314_v41  ;;  %v2448_v55 = vpop.permute.xlu2 %2447  ;;  %v2794_v28 = vsel %vm2784_vm1, %v2701_v22, -1e+30 }
 0x377   :  { %v2549_v11 = vsel %vm48_vm4, %v2517_v9, %v2442_v33  ;;  %v2840_v25 = vsel %vm2495_vm3, %v2794_v28, -inf  ;;  %v2821_v9 = vsel %vm2495_vm3, %v5908_v40, -inf }
 0x378   :  { %v2841_v2 = vmax.f32 %v2839_v43, %v2840_v25 }
 0x379   :  { %3617 = vmatmul.msk.f32.gmra.mxu1 %vm2572_vm6, %v2549_v11 }
 0x37d   :  { %v2444_v6 = vpop.permute.xlu1 %2443  ;;  %v2316_v19 = vpop.permute.xlu0 %2315 }
 0x37e   :  { %v2704_v0 = vpop.f32.mrf.mxu1  ;;  %v2518_v31 = vsel %vm2495_vm3, %v5754_v20, %v2316_v19  ;;  %v2823_v19 = vmax.f32 %v2821_v9, %v2822_v48 }
 0x37f   :  { %v2550_v53 = vsel %vm48_vm4, %v2518_v31, %v2444_v6  ;;  %v2848_v12 = vsel %vm2495_vm3, %v2704_v0, -inf }
 0x381   :  { %3618 = vmatmul.msk.f32.gmra.mxu1 %vm2572_vm6, %v2550_v53 }
 0x385   :  { %v2446_v15 = vpop.permute.xlu0 %2445  ;;  %v2324_v21 = vpop.permute.xlu2 %2323 }
 0x386   :  { %v2707_v51 = vpop.f32.mrf.mxu1  ;;  %v2551_v52 = vsel %vm48_vm4, %v2519_v57, %v2446_v15  ;;  %v2522_v23 = vsel %vm2495_vm3, %v5814_v56, %v2324_v21  ;;  %v2792_v56 = vsel %vm2784_vm1, %v2695_v37, -1e+30 }
 0x387   :  { %v2831_v36 = vsel %vm2495_vm3, %v2792_v56, -inf  ;;  %v2796_v17 = vsel %vm2784_vm1, %v2707_v51, -1e+30 }
 0x388   :  { %v2849_v59 = vsel %vm2495_vm3, %v2796_v17, -inf }
 0x389   :  { %3619 = vmatmul.msk.f32.gmra.mxu1 %vm2572_vm6, %v2551_v52  ;;  %v2850_v41 = vmax.f32 %v2848_v12, %v2849_v59 }
 0x38b   :  { %v2851_v0 = vrot.slane %v2850_v41, 4 }
 0x38d   :  { %v2320_v14 = vpop.permute.xlu1 %2319 }
 0x38e   :  { %v2520_v45 = vsel %vm2495_vm3, %v5786_v30, %v2320_v14  ;;  %v2710_v20 = vpop.f32.mrf.mxu1 }
 0x38f   :  { %v2552_v60 = vsel %vm48_vm4, %v2520_v45, %v2448_v55  ;;  %v2857_v33 = vsel %vm2495_vm3, %v2710_v20, -inf  ;;  %v2824_v55 = vrot.slane %v2823_v19, 4 }
 0x391   :  { %3620 = vmatmul.msk.f32.gmra.mxu1 %vm2572_vm6, %v2552_v60 }
 0x395   :  { %v2450_v5 = vpop.permute.xlu1 %2449  ;;  %v2322_v54 = vpop.permute.xlu0 %2321 }
 0x396   :  { %v2713_v38 = vpop.f32.mrf.mxu1  ;;  %v2521_v49 = vsel %vm2495_vm3, %v5799_v46, %v2322_v54  ;;  %v2454_v46 = vpop.permute.xlu2 %2453  ;;  %v2852_v54 = vmax.f32 %v2850_v41, %v2851_v0 }
 0x397   :  { %v2553_v24 = vsel %vm48_vm4, %v2521_v49, %v2450_v5  ;;  %v2798_v4 = vsel %vm2784_vm1, %v2713_v38, -1e+30 }
 0x398   :  { %v2858_v58 = vsel %vm2495_vm3, %v2798_v4, -inf }
 0x399   :  { %3621 = vmatmul.msk.f32.gmra.mxu1 %vm2572_vm6, %v2553_v24  ;;  %v2859_v22 = vmax.f32 %v2857_v33, %v2858_v58  ;;  %v2825_v24 = vmax.f32 %v2823_v19, %v2824_v55 }
 0x39b   :  { %v2860_v51 = vrot.slane %v2859_v22, 4  ;;  %v2826_v28 = vrot.slane %v2825_v24, 2 }
 0x39d   :  { %v2452_v30 = vpop.permute.xlu0 %2451  ;;  %v2861_v49 = vmax.f32 %v2859_v22, %v2860_v51 }
 0x39e   :  { %v2716_v62 = vpop.f32.mrf.mxu1  ;;  %v2554_v3 = vsel %vm48_vm4, %v2522_v23, %v2452_v30  ;;  %v2330_v11 = vpop.permute.xlu2 %2329 }
 0x39f   :  { %v2866_v6 = vsel %vm2495_vm3, %v2716_v62, -inf  ;;  %v2525_v7 = vsel %vm2495_vm3, %v5859_v8, %v2330_v11  ;;  %v2853_v62 = vrot.slane %v2852_v54, 2 }
 0x3a1   :  { %3622 = vmatmul.msk.f32.gmra.mxu1 %vm2572_vm6, %v2554_v3  ;;  %v2854_v4 = vmax.f32 %v2852_v54, %v2853_v62 }
 0x3a3   :  { %v2855_v59 = vrot.slane %v2854_v4, 1 }
 0x3a5   :  { %v2326_v18 = vpop.permute.xlu1 %2325  ;;  %v2856_v22 = vmax.f32 %v2854_v4, %v2855_v59 }
 0x3a6   :  { %v2523_v34 = vsel %vm2495_vm3, %v5831_v16, %v2326_v18  ;;  %v2719_v29 = vpop.f32.mrf.mxu1  ;;  %v2830_v16 = vsel %vm2495_vm3, %v5925_v39, -inf }
 0x3a7   :  { %v2555_v35 = vsel %vm48_vm4, %v2523_v34, %v2454_v46  ;;  %v2832_v10 = vmax.f32 %v2830_v16, %v2831_v36  ;;  %v2800_v32 = vsel %vm2784_vm1, %v2719_v29, -1e+30  ;;  %v2862_v34 = vrot.slane %v2861_v49, 2  ;;  %v2460_v29 = vpop.permute.xlu2 %2459 }
 0x3a8   :  { %v2867_v27 = vsel %vm2495_vm3, %v2800_v32, -inf  ;;  %v2827_v32 = vmax.f32 %v2825_v24, %v2826_v28 }
 0x3a9   :  { %3623 = vmatmul.msk.f32.gmra.mxu1 %vm2572_vm6, %v2555_v35  ;;  %v2833_v44 = vrot.slane %v2832_v10, 4  ;;  %v2868_v31 = vmax.f32 %v2866_v6, %v2867_v27  ;;  %v6020_v27 = vld [vmem:[%s6105_s5] ss:$0 sm:$0xff]  ;;  %s3719_s5 = smov [#allocation2]  }
 0x3aa   :  { %v2828_v12 = vrot.slane %v2827_v32, 1  ;;  %s3066_s14 = sshll.u32 %s3719_s5, 4  ;;  %s3067_s14 = int_to_ptr.vmem [resolvable:$true] %s3066_s14 }
 0x3ab   :  { %v2834_v53 = vmax.f32 %v2832_v10, %v2833_v44  ;;  %v2869_v40 = vrot.slane %v2868_v31, 4  ;;  %v2863_v10 = vmax.f32 %v2861_v49, %v2862_v34 }
 0x3ad   :  { %v2456_v37 = vpop.permute.xlu1 %2455  ;;  %v2328_v1 = vpop.permute.xlu0 %2327  ;;  %v2835_v5 = vrot.slane %v2834_v53, 2  ;;  %v2870_v21 = vmax.f32 %v2868_v31, %v2869_v40  ;;  %v2864_v58 = vrot.slane %v2863_v10, 1  ;;  %v2829_v31 = vmax.f32 %v2827_v32, %v2828_v12 }
 0x3ae   :  { %v2722_v50 = vpop.f32.mrf.mxu1  ;;  %v2524_v39 = vsel %vm2495_vm3, %v5844_v63, %v2328_v1  ;;  %v2842_v63 = vrot.slane %v2841_v2, 4 }
 0x3af   :  { %v2556_v42 = vsel %vm48_vm4, %v2524_v39, %v2456_v37  ;;  %v2875_v20 = vsel %vm2495_vm3, %v2722_v50, -inf  ;;  %v2836_v30 = vmax.f32 %v2834_v53, %v2835_v5  ;;  %v2871_v36 = vrot.slane %v2870_v21, 2 }
 0x3b0   :  { %v2843_v15 = vmax.f32 %v2841_v2, %v2842_v63  ;;  %v2865_v19 = vmax.f32 %v2863_v10, %v2864_v58  ;;  %v2969_v40 = vadd.f32 %v6020_v27, %v2829_v31 }
 0x3b1   :  { %3624 = vmatmul.msk.f32.gmra.mxu1 %vm2572_vm6, %v2556_v42  ;;  %v2837_v16 = vrot.slane %v2836_v30, 1  ;;  %v2872_v37 = vmax.f32 %v2870_v21, %v2871_v36 }
 0x3b2   :  { %v2844_v8 = vrot.slane %v2843_v15, 2  ;;  %v2985_v24 = vmax.f32 %v2969_v40, 0.0 }
 0x3b3   :  { %v2838_v2 = vmax.f32 %v2836_v30, %v2837_v16  ;;  %v2873_v44 = vrot.slane %v2872_v37, 1 }
 0x3b4   :  { %v2845_v46 = vmax.f32 %v2843_v15, %v2844_v8  ;;  %v2972_v15 = vadd.f32 %v6020_v27, %v2856_v22 }
 0x3b5   :  { %v2458_v57 = vpop.permute.xlu0 %2457  ;;  %v2970_v63 = vadd.f32 %v6020_v27, %v2838_v2  ;;  %v2874_v53 = vmax.f32 %v2872_v37, %v2873_v44 }
 0x3b6   :  { %v2725_v52 = vpop.f32.mrf.mxu1  ;;  %v2557_v14 = vsel %vm48_vm4, %v2525_v7, %v2458_v57  ;;  %v2846_v26 = vrot.slane %v2845_v46, 1  ;;  %v2988_v54 = vmax.f32 %v2972_v15, 0.0 }
 0x3b7   :  { %v2802_v45 = vsel %vm2784_vm1, %v2725_v52, -1e+30  ;;  %v2986_v57 = vmax.f32 %v2970_v63, 0.0 }
 0x3b8   :  { %v2876_v60 = vsel %vm2495_vm3, %v2802_v45, -inf  ;;  %v2847_v39 = vmax.f32 %v2845_v46, %v2846_v26  ;;  %v2974_v45 = vadd.f32 %v6020_v27, %v2874_v53  ;;  %v3023_v62 = vrot.slane %v2988_v54, 5 }
 0x3b9   :  { %v2877_v38 = vmax.f32 %v2875_v20, %v2876_v60  ;;  %3625 = vmatmul.msk.f32.gmra.mxu1 %vm2572_vm6, %v2557_v14  ;;  %v2973_v14 = vadd.f32 %v6020_v27, %v2865_v19  ;;  %v3017_v5 = vrot.slane %v2986_v57, 7 }
 0x3ba   :  { %v2971_v6 = vadd.f32 %v6020_v27, %v2847_v39  ;;  %v2990_v21 = vmax.f32 %v2974_v45, 0.0 }
 0x3bb   :  { %v2878_v23 = vrot.slane %v2877_v38, 4  ;;  %v2989_v49 = vmax.f32 %v2973_v14, 0.0 }
 0x3bc   :  { %v2987_v52 = vmax.f32 %v2971_v6, 0.0  ;;  %v3029_v28 = vrot.slane %v2990_v21, 3 }
 0x3bd   :  { %v2879_v3 = vmax.f32 %v2877_v38, %v2878_v23  ;;  %v2332_v18 = vpop.permute.xlu1 %2331  ;;  %v3026_v46 = vrot.slane %v2989_v49, 4 }
 0x3be   :  { %v2526_v56 = vsel %vm2495_vm3, %v5876_v47, %v2332_v18  ;;  %v2728_v35 = vpop.f32.mrf.mxu1  ;;  %v2334_v43 = vpop.permute.xlu0 %2333  ;;  %v3020_v8 = vrot.slane %v2987_v52, 6  ;;  %v3019_v18 = vsel %vm3018_vm2, %v3017_v5, %v2985_v24 }
 0x3bf   :  { %v2558_v25 = vsel %vm48_vm4, %v2526_v56, %v2460_v29  ;;  %v2880_v17 = vrot.slane %v2879_v3, 2  ;;  %v2527_v47 = vsel %vm2495_vm3, %v5889_v13, %v2334_v43  ;;  %v2884_v9 = vsel %vm2495_vm3, %v2728_v35, -inf }
 0x3c0   :  { %v3022_v29 = vsel %vm3021_vm7, %v3020_v8, %v3019_v18 }
 0x3c1   :  { %3626 = vmatmul.msk.f32.gmra.mxu1 %vm2572_vm6, %v2558_v25  ;;  %v2881_v1 = vmax.f32 %v2879_v3, %v2880_v17  ;;  %v3025_v26 = vsel %vm3024_vm8, %v3023_v62, %v3022_v29 }
 0x3c2   :  { %v3028_v10 = vsel %vm3027_vm9, %v3026_v46, %v3025_v26 }
 0x3c3   :  { %v2882_v33 = vrot.slane %v2881_v1, 1  ;;  %v3031_v43 = vsel %vm3030_vm10, %v3029_v28, %v3028_v10 }
 0x3c5   :  { %v2462_v50 = vpop.permute.xlu1 %2461  ;;  %v2883_v7 = vmax.f32 %v2881_v1, %v2882_v33 }
 0x3c6   :  { %v2559_v42 = vsel %vm48_vm4, %v2527_v47, %v2462_v50  ;;  %v2731_v48 = vpop.f32.mrf.mxu1 }
 0x3c7   :  { %v2804_v41 = vsel %vm2784_vm1, %v2731_v48, -1e+30  ;;  %v2975_v60 = vadd.f32 %v6020_v27, %v2883_v7 }
 0x3c8   :  { %v2885_v13 = vsel %vm2495_vm3, %v2804_v41, -inf }
 0x3c9   :  { %v2886_v11 = vmax.f32 %v2884_v9, %v2885_v13  ;;  %3627 = vmatmul.msk.f32.gmra.mxu1 %vm2572_vm6, %v2559_v42  ;;  %v2991_v30 = vmax.f32 %v2975_v60, 0.0 }
 0x3cb   :  { %v2887_v0 = vrot.slane %v2886_v11, 4  ;;  %v3032_v17 = vrot.slane %v2991_v30, 2 }
 0x3cd   :  { %v2888_v51 = vmax.f32 %v2886_v11, %v2887_v0  ;;  %v3034_v37 = vsel %vm3033_vm11, %v3032_v17, %v3031_v43 }
 0x3ce   :  { %v2734_v55 = vpop.f32.mrf.mxu1 }
 0x3cf   :  { %v2889_v20 = vrot.slane %v2888_v51, 2  ;;  %v2893_v36 = vsel %vm2495_vm3, %v2734_v55, -inf }
 0x3d1   :  { %v2890_v38 = vmax.f32 %v2888_v51, %v2889_v20 }
 0x3d3   :  { %v2891_v23 = vrot.slane %v2890_v38, 1 }
 0x3d5   :  { %v2892_v3 = vmax.f32 %v2890_v38, %v2891_v23 }
 0x3d6   :  { %v2737_v34 = vpop.f32.mrf.mxu1 }
 0x3d7   :  { %v2806_v56 = vsel %vm2784_vm1, %v2737_v34, -1e+30  ;;  %v2976_v35 = vadd.f32 %v6020_v27, %v2892_v3 }
 0x3d8   :  { %v2894_v25 = vsel %vm2495_vm3, %v2806_v56, -inf }
 0x3d9   :  { %v2895_v16 = vmax.f32 %v2893_v36, %v2894_v25  ;;  %v2992_v4 = vmax.f32 %v2976_v35, 0.0 }
 0x3db   :  { %v3035_v32 = vrot.slane %v2992_v4, 1  ;;  %v2896_v59 = vrot.slane %v2895_v16, 4 }
 0x3dd   :  { %v3037_v1 = vsel %vm3036_vm12, %v3035_v32, %v3034_v37  ;;  %v2897_v47 = vmax.f32 %v2895_v16, %v2896_v59 }
 0x3de   :  { %3052 = vrot.lane.b32.xlu2 %v3037_v1, %s3718_s28  ;;  %v2740_v2 = vpop.f32.mrf.mxu1 }
 0x3df   :  { %v2898_v39 = vrot.slane %v2897_v47, 2  ;;  %v2902_v42 = vsel %vm2495_vm3, %v2740_v2, -inf }
 0x3e1   :  { %v2899_v44 = vmax.f32 %v2897_v47, %v2898_v39 }
 0x3e3   :  { %v2900_v13 = vrot.slane %v2899_v44, 1 }
 0x3e5   :  { %v2901_v11 = vmax.f32 %v2899_v44, %v2900_v13 }
 0x3e6   :  { %v2743_v50 = vpop.f32.mrf.mxu1 }
 0x3e7   :  { %v2808_v58 = vsel %vm2784_vm1, %v2743_v50, -1e+30  ;;  %v2977_v53 = vadd.f32 %v6020_v27, %v2901_v11 }
 0x3e8   :  { %v2903_v48 = vsel %vm2495_vm3, %v2808_v58, -inf }
 0x3e9   :  { %v2904_v12 = vmax.f32 %v2902_v42, %v2903_v48  ;;  %v2993_v14 = vmax.f32 %v2977_v53, 0.0 }
 0x3eb   :  { %v2905_v41 = vrot.slane %v2904_v12, 4 }
 0x3ed   :  { %v2906_v33 = vmax.f32 %v2904_v12, %v2905_v41 }
 0x3ee   :  { %v2746_v9 = vpop.f32.mrf.mxu1 }
 0x3ef   :  { %v2907_v63 = vrot.slane %v2906_v33, 2  ;;  %v2911_v57 = vsel %vm2495_vm3, %v2746_v9, -inf }
 0x3f1   :  { %v2908_v22 = vmax.f32 %v2906_v33, %v2907_v63 }
 0x3f3   :  { %v2909_v6 = vrot.slane %v2908_v22, 1 }
 0x3f5   :  { %v2910_v19 = vmax.f32 %v2908_v22, %v2909_v6  ;;  %v6157_v22 = vld [vmem:[#allocation5_spill] sm:$0xff] }
 0x3f6   :  { %v2749_v31 = vpop.f32.mrf.mxu1 }
 0x3f7   :  { %v2978_v0 = vadd.f32 %v6020_v27, %v2910_v19  ;;  %v2810_v7 = vsel %vm2784_vm1, %v2749_v31, -1e+30 }
 0x3f8   :  { %v2912_v15 = vsel %vm2495_vm3, %v2810_v7, -inf }
 0x3f9   :  { %v2994_v51 = vmax.f32 %v2978_v0, 0.0  ;;  %v2913_v52 = vmax.f32 %v2911_v57, %v2912_v15 }
 0x3fb   :  { %v3038_v55 = vrot.slane %v2994_v51, 7  ;;  %v2914_v40 = vrot.slane %v2913_v52, 4 }
 0x3fd   :  { %v2915_v45 = vmax.f32 %v2913_v52, %v2914_v40  ;;  %v3039_v20 = vsel %vm3018_vm2, %v3038_v55, %v2993_v14 }
 0x3fe   :  { %v2752_v60 = vpop.f32.mrf.mxu1 }
 0x3ff   :  { %v2916_v5 = vrot.slane %v2915_v45, 2  ;;  %v2920_v23 = vsel %vm2495_vm3, %v2752_v60, -inf }
 0x401   :  { %v2917_v54 = vmax.f32 %v2915_v45, %v2916_v5 }
 0x403   :  { %v2918_v38 = vrot.slane %v2917_v54, 1 }
 0x405   :  { %v2919_v8 = vmax.f32 %v2917_v54, %v2918_v38 }
 0x406   :  { %v2755_v49 = vpop.f32.mrf.mxu1 }
 0x407   :  { %v2979_v24 = vadd.f32 %v6020_v27, %v2919_v8  ;;  %v2812_v21 = vsel %vm2784_vm1, %v2755_v49, -1e+30 }
 0x408   :  { %v2921_v30 = vsel %vm2495_vm3, %v2812_v21, -inf }
 0x409   :  { %v2995_v62 = vmax.f32 %v2979_v24, 0.0  ;;  %v2922_v3 = vmax.f32 %v2920_v23, %v2921_v30 }
 0x40b   :  { %v3040_v18 = vrot.slane %v2995_v62, 6  ;;  %v2923_v46 = vrot.slane %v2922_v3, 4 }
 0x40d   :  { %v2924_v34 = vmax.f32 %v2922_v3, %v2923_v46  ;;  %v3041_v29 = vsel %vm3021_vm7, %v3040_v18, %v3039_v20 }
 0x40e   :  { %v2758_v56 = vpop.f32.mrf.mxu1 }
 0x40f   :  { %v2925_v35 = vrot.slane %v2924_v34, 2  ;;  %v2929_v50 = vsel %vm2495_vm3, %v2758_v56, -inf }
 0x411   :  { %v2926_v28 = vmax.f32 %v2924_v34, %v2925_v35 }
 0x413   :  { %v2927_v36 = vrot.slane %v2926_v28, 1 }
 0x415   :  { %v2928_v25 = vmax.f32 %v2926_v28, %v2927_v36 }
 0x416   :  { %v2761_v17 = vpop.f32.mrf.mxu1 }
 0x417   :  { %v2980_v16 = vadd.f32 %v6020_v27, %v2928_v25  ;;  %v2814_v37 = vsel %vm2784_vm1, %v2761_v17, -1e+30 }
 0x418   :  { %v2930_v59 = vsel %vm2495_vm3, %v2814_v37, -inf }
 0x419   :  { %v2996_v4 = vmax.f32 %v2980_v16, 0.0  ;;  %v2931_v39 = vmax.f32 %v2929_v50, %v2930_v59 }
 0x41b   :  { %v3042_v26 = vrot.slane %v2996_v4, 5  ;;  %v2932_v48 = vrot.slane %v2931_v39, 4 }
 0x41d   :  { %v3043_v10 = vsel %vm3024_vm8, %v3042_v26, %v3041_v29  ;;  %v2933_v6 = vmax.f32 %v2931_v39, %v2932_v48 }
 0x41e   :  { %v2764_v43 = vpop.f32.mrf.mxu1 }
 0x41f   :  { %v2938_v58 = vsel %vm2495_vm3, %v2764_v43, -inf  ;;  %v2934_v0 = vrot.slane %v2933_v6, 2 }
 0x421   :  { %v2935_v51 = vmax.f32 %v2933_v6, %v2934_v0 }
 0x423   :  { %v2936_v55 = vrot.slane %v2935_v51, 1 }
 0x425   :  { %v2937_v8 = vmax.f32 %v2935_v51, %v2936_v55 }
 0x426   :  { %v2767_v32 = vpop.f32.mrf.mxu1 }
 0x427   :  { %v2816_v1 = vsel %vm2784_vm1, %v2767_v32, -1e+30  ;;  %v2981_v30 = vadd.f32 %v6020_v27, %v2937_v8 }
 0x428   :  { %v2939_v47 = vsel %vm2495_vm3, %v2816_v1, -inf  ;;  %v6158_v1 = vld [vmem:[#allocation6_spill] sm:$0xff] }
 0x429   :  { %v2940_v42 = vmax.f32 %v2938_v58, %v2939_v47  ;;  %v2997_v46 = vmax.f32 %v2981_v30, 0.0 }
 0x42b   :  { %v2941_v44 = vrot.slane %v2940_v42, 4  ;;  %v3044_v28 = vrot.slane %v2997_v46, 4 }
 0x42d   :  { %v2942_v19 = vmax.f32 %v2940_v42, %v2941_v44  ;;  %v3045_v4 = vsel %vm3027_vm9, %v3044_v28, %v3043_v10 }
 0x42e   :  { %v2770_v2 = vpop.f32.mrf.mxu1 }
 0x42f   :  { %v2947_v33 = vsel %vm2495_vm3, %v2770_v2, -inf  ;;  %v2943_v57 = vrot.slane %v2942_v19, 2 }
 0x431   :  { %v2944_v52 = vmax.f32 %v2942_v19, %v2943_v57 }
 0x433   :  { %v2945_v45 = vrot.slane %v2944_v52, 1 }
 0x435   :  { %v2946_v49 = vmax.f32 %v2944_v52, %v2945_v45 }
 0x436   :  { %v2773_v12 = vpop.f32.mrf.mxu1 }
 0x437   :  { %v2818_v41 = vsel %vm2784_vm1, %v2773_v12, -1e+30  ;;  %v2982_v62 = vadd.f32 %v6020_v27, %v2946_v49 }
 0x438   :  { %v2948_v9 = vsel %vm2495_vm3, %v2818_v41, -inf  ;;  %v3053_v13 = vpop.permute.xlu2 %3052 }
 0x439   :  { %v2949_v63 = vmax.f32 %v2947_v33, %v2948_v9  ;;  %v3058_v11 = vsel %vm2495_vm3, %v6157_v22, %v3053_v13  ;;  %v2998_v34 = vmax.f32 %v2982_v62, 0.0 }
 0x43a   :  { %3060 = vst.msk [vmem:[#allocation2] sm:$0xff] %vm48_vm4, %v3058_v11 }
 0x43b   :  { %v2950_v31 = vrot.slane %v2949_v63, 4  ;;  %v3046_v25 = vrot.slane %v2998_v34, 3 }
 0x43d   :  { %v2951_v53 = vmax.f32 %v2949_v63, %v2950_v31  ;;  %v3047_v26 = vsel %vm3030_vm10, %v3046_v25, %v3045_v4 }
 0x43e   :  { %v2776_v7 = vpop.f32.mrf.mxu1 }
 0x43f   :  { %v2952_v15 = vrot.slane %v2951_v53, 2  ;;  %v2956_v5 = vsel %vm2495_vm3, %v2776_v7, -inf }
 0x441   :  { %v2953_v14 = vmax.f32 %v2951_v53, %v2952_v15 }
 0x443   :  { %v2954_v60 = vrot.slane %v2953_v14, 1 }
 0x445   :  { %v2955_v21 = vmax.f32 %v2953_v14, %v2954_v60 }
 0x446   :  { %v2779_v40 = vpop.f32.mrf.mxu1 }
 0x447   :  { %v2820_v20 = vsel %vm2784_vm1, %v2779_v40, -1e+30  ;;  %v2983_v18 = vadd.f32 %v6020_v27, %v2955_v21 }
 0x448   :  { %v2957_v54 = vsel %vm2495_vm3, %v2820_v20, -inf }
 0x449   :  { %v2958_v38 = vmax.f32 %v2956_v5, %v2957_v54  ;;  %v2999_v56 = vmax.f32 %v2983_v18, 0.0 }
 0x44b   :  { %v2959_v24 = vrot.slane %v2958_v38, 4  ;;  %v3048_v17 = vrot.slane %v2999_v56, 2 }
 0x44d   :  { %v2960_v23 = vmax.f32 %v2958_v38, %v2959_v24  ;;  %v3049_v32 = vsel %vm3033_vm11, %v3048_v17, %v3047_v26 }
 0x44f   :  { %v2961_v3 = vrot.slane %v2960_v23, 2 }
 0x451   :  { %v2962_v61 = vmax.f32 %v2960_v23, %v2961_v3 }
 0x453   :  { %v2963_v29 = vrot.slane %v2962_v61, 1 }
 0x455   :  { %v2964_v35 = vmax.f32 %v2962_v61, %v2963_v29 }
 0x457   :  { %v2984_v36 = vadd.f32 %v6020_v27, %v2964_v35 }
 0x459   :  { %v3000_v16 = vmax.f32 %v2984_v36, 0.0 }
 0x45b   :  { %v3050_v43 = vrot.slane %v3000_v16, 1 }
 0x45d   :  { %v3051_v37 = vsel %vm3036_vm12, %v3050_v43, %v3049_v32 }
 0x45e   :  { %3054 = vrot.lane.b32.xlu0 %v3051_v37, %s3718_s28 }
 0x4d0   :  { %v3055_v27 = vpop.permute.xlu0 %3054 }
 0x4d1   :  { %v3059_v10 = vsel %vm2495_vm3, %v6158_v1, %v3055_v27 }
 0x4d2   :  { %3061 = vst.msk [vmem:[#allocation2 + $0x8] sm:$0xff] %vm48_vm4, %v3059_v10 }
 0x4d3   :  { %3074 = dma.vmem_to_hbm [thread:$0]  %s3067_s14, 256, %s3069_s2, [#allocation3], %s3720_s15, %s3720_s15, %s3721_s16  }
 0x4d4   :  { %3712 = dma.done.wait [#allocation3], 256  }
 0x4d5   :  { %3713 = vsyncadd [#allocation3], 4294967040 }
 0x4d6   :  { %3079 = vsyncpa [#allocation3], 1 }

</bundles_post_ra>
